<compile_context>
chip_gen: v5e
topology: v5e:2x2
jax: 0.10.0
libtpu: 0.0.40
codegen_flags: <defaults>
</compile_context>

<pallas_src>
import numpy as np

import jax
import jax.numpy as jnp
from jax import lax
from jax.experimental import pallas as pl
from jax.experimental.pallas import tpu as pltpu


def cbam_kernel(x_ref, w1_ref, w2_ref, k_ref, b_ref, o_ref):
    # x_ref block: (nb, C, HW), lane-dense (HW is the minor/lane axis).
    x = x_ref[...].astype(jnp.float32)                      # compute in f32

    # ---------------- channel attention ----------------
    # Global average pool: single mean over the flattened spatial axis.
    avg = jnp.mean(x, axis=-1)                              # (nb, C)
    # Shared MLP on the VPU: (C -> C/r -> C) is far too small for the MXU.
    h = jnp.maximum(
        jnp.sum(avg[:, None, :] * w1_ref[...][None, :, :], axis=-1), 0.0)   # (nb, Cr)
    y = jnp.sum(h[:, None, :] * w2_ref[...][None, :, :], axis=-1)           # (nb, C)
    # Both pooling branches of the reference module are avg pools -> 2*MLP(avg).
    ca = jax.nn.sigmoid(2.0 * y)                            # (nb, C)
    out1 = x * ca[:, :, None]                               # (nb, C, HW)

    # ---------------- spatial attention ----------------
    avg_map = jnp.mean(out1, axis=1)                        # (nb, HW)
    max_map = jnp.max(out1, axis=1)                         # (nb, HW)
    # 7x7 conv folded into dense (HW, HW) matrices -> one MXU matmul per map
    # instead of 98 lane-misaligned shifted slices + zero-pad concatenates.
    conv = (jnp.dot(avg_map, k_ref[0], preferred_element_type=jnp.float32,
                    precision=lax.Precision.HIGHEST)
            + jnp.dot(max_map, k_ref[1], preferred_element_type=jnp.float32,
                      precision=lax.Precision.HIGHEST)
            + b_ref[0])                                     # (nb, HW)
    sa = jax.nn.sigmoid(conv)                               # (nb, HW)

    # Lane-dense, full-width (unmasked) store.
    o_ref[...] = (out1 * sa[:, None, :]).astype(o_ref.dtype)


def build_spatial_conv_matrix(wc, H, W):
    """Unfold Conv2d(2, 1, 7, padding=3) into K of shape (2, H*W, H*W) so that
    conv(maps)[p] == avg_flat @ K[0, :, p] + max_flat @ K[1, :, p] (bias added
    separately).  Index lists are static numpy; values are gathered from wc so
    this stays jit-friendly."""
    HW = H * W
    m_l, s_l, d_l, dy_l, dx_l = [], [], [], [], []
    for m in range(2):
        for dy in range(7):
            for dx in range(7):
                for i in range(H):
                    si = i + dy - 3
                    if si < 0 or si >= H:
                        continue
                    for j in range(W):
                        sj = j + dx - 3
                        if sj < 0 or sj >= W:
                            continue
                        m_l.append(m)
                        s_l.append(si * W + sj)
                        d_l.append(i * W + j)
                        dy_l.append(dy)
                        dx_l.append(dx)
    vals = wc[0, np.asarray(m_l), np.asarray(dy_l), np.asarray(dx_l)]
    K = jnp.zeros((2, HW, HW), jnp.float32)
    return K.at[np.asarray(m_l), np.asarray(s_l), np.asarray(d_l)].set(
        vals.astype(jnp.float32))


def cbam_pallas(x, w1, w2, wc, b, *, nb=None):
    """x: (N, C, H, W) float32 or bfloat16 (I/O dtype preserved, compute f32)."""
    N, C, H, W = x.shape
    HW = H * W
    Cr = w1.shape[0]
    K = build_spatial_conv_matrix(wc, H, W)
    xf = x.reshape(N, C, HW)                     # lane-dense view (free reshape)

    if nb is None:
        bytes_per_sample = 2 * C * HW * x.dtype.itemsize      # in + out
        vmem_budget = 16 * 1024 * 1024                        # conservative for v7x (64 MiB VMEM)
        nb = min(
            max(1, N // 2),                                   # keep >= 2 grid steps (v7x: 2 TCs)
            max(1, (1 << 20) // bytes_per_sample),            # ~1 MiB of traffic per grid step
            max(1, vmem_budget // (2 * bytes_per_sample)),    # double-buffered blocks fit VMEM
        )
        while N % nb:                                         # use a divisor of N
            nb -= 1

    grid = (N // nb,)

    out = pl.pallas_call(
        cbam_kernel,
        out_shape=jax.ShapeDtypeStruct((N, C, HW), x.dtype),
        grid=grid,
        in_specs=[
            pl.BlockSpec((nb, C, HW), lambda n: (n, 0, 0)),        # x: nb samples / step
            pl.BlockSpec((Cr, C), lambda n: (0, 0)),               # MLP weight 1 (VMEM-resident)
            pl.BlockSpec((C, Cr), lambda n: (0, 0)),               # MLP weight 2 (VMEM-resident)
            pl.BlockSpec((2, HW, HW), lambda n: (0, 0, 0)),        # folded 7x7 conv matrices
            pl.BlockSpec(memory_space=pltpu.MemorySpace.SMEM),     # conv bias (1,)
        ],
        out_specs=pl.BlockSpec((nb, C, HW), lambda n: (n, 0, 0)),
        compiler_params=pltpu.CompilerParams(dimension_semantics=("parallel",)),
    )(xf, w1, w2, K, b)
    return out.reshape(N, C, H, W)


def cbam_reference(x, w1, w2, wc, b):
    """Pure-JAX reference mirroring the PyTorch module semantics (f32)."""
    hp = lax.Precision.HIGHEST
    avg = jnp.mean(x, axis=(2, 3))                                   # (N, C)
    h = jax.nn.relu(jnp.dot(avg, w1.T, precision=hp))                # (N, Cr)
    y = jnp.dot(h, w2.T, precision=hp)                               # (N, C)
    ca = jax.nn.sigmoid(2.0 * y)[:, :, None, None]                   # (N, C, 1, 1)
    out1 = ca * x
    avg_map = jnp.mean(out1, axis=1, keepdims=True)
    max_map = jnp.max(out1, axis=1, keepdims=True)
    m = jnp.concatenate([avg_map, max_map], axis=1)                  # (N, 2, H, W)
    conv = lax.conv_general_dilated(
        m, wc, window_strides=(1, 1), padding=((3, 3), (3, 3)),
        dimension_numbers=("NCHW", "OIHW", "NCHW"), precision=hp) + b[0]
    sa = jax.nn.sigmoid(conv)                                        # (N, 1, H, W)
    return sa * out1


if __name__ == "__main__":
    N, C, H, W = 2, 32, 16, 16
    ratio = 16
    Cr = max(1, C // ratio)

    key = jax.random.PRNGKey(0)
    k1, k2, k3, k4, k5 = jax.random.split(key, 5)
    x = jax.random.normal(k1, (N, C, H, W), jnp.float32)
    # deterministic synthetic parameters (shapes match the PyTorch module)
    w1 = 0.2 * jax.random.normal(k2, (Cr, C), jnp.float32)           # Conv2d(C, C//16, 1, bias=False)
    w2 = 0.2 * jax.random.normal(k3, (C, Cr), jnp.float32)           # Conv2d(C//16, C, 1, bias=False)
    wc = 0.1 * jax.random.normal(k4, (1, 2, 7, 7), jnp.float32)      # Conv2d(2, 1, 7, padding=3)
    b = 0.1 * jax.random.normal(k5, (1,), jnp.float32)               # its bias

    # ---- float32 I/O ----
    out = jax.block_until_ready(cbam_pallas(x, w1, w2, wc, b))
    ref = cbam_reference(x, w1, w2, wc, b)
    assert out.shape == (N, C, H, W)
    # Tolerance leaves headroom for reduced-precision MXU passes of the folded
    # conv matmul on some generations; with full-f32 matmul the error is ~1e-6.
    err = float(jnp.max(jnp.abs(out - ref)))
    assert jnp.allclose(out, ref, atol=2e-2, rtol=2e-2), err

    # ---- bfloat16 I/O (halves HBM traffic; compute stays f32 in-kernel) ----
    x_bf = x.astype(jnp.bfloat16)
    out_bf = jax.block_until_ready(cbam_pallas(x_bf, w1, w2, wc, b))
    assert out_bf.dtype == jnp.bfloat16
    ref_bf = cbam_reference(x_bf.astype(jnp.float32), w1, w2, wc, b)
    err_bf = float(jnp.max(jnp.abs(out_bf.astype(jnp.float32) - ref_bf)))
    assert jnp.allclose(out_bf.astype(jnp.float32), ref_bf, atol=6e-2, rtol=6e-2), err_bf

    print("KERNEL_OK")
</pallas_src>

<mosaic_0001>
module attributes {stable_mosaic.version = 11 : i64} {
  func.func @cbam_kernel(%arg0: i32, %arg1: memref<1x32x256xf32, #tpu.memory_space<vmem>>, %arg2: memref<2x32xf32, #tpu.memory_space<vmem>>, %arg3: memref<32x2xf32, #tpu.memory_space<vmem>>, %arg4: memref<2x256x256xf32, #tpu.memory_space<vmem>>, %arg5: memref<1xf32, #tpu.memory_space<smem>>, %arg6: memref<1x32x256xf32, #tpu.memory_space<vmem>>) attributes {dimension_semantics = [#tpu.dimension_semantics<parallel>], iteration_bounds = array<i64: 2>, scalar_prefetch = 0 : i64, scratch_operands = 0 : i64, tpu.core_type = #tpu.core_type<tc>, window_params = [{transform_indices = @transform_0, window_bounds = array<i64: 1, 32, 256>}, {pipeline_mode = #tpu.pipeline_mode<synchronous>, transform_indices = @transform_1, window_bounds = array<i64: 2, 32>}, {pipeline_mode = #tpu.pipeline_mode<synchronous>, transform_indices = @transform_2, window_bounds = array<i64: 32, 2>}, {pipeline_mode = #tpu.pipeline_mode<synchronous>, transform_indices = @transform_3, window_bounds = array<i64: 2, 256, 256>}, {transform_indices = @transform_4, window_bounds = array<i64: 1>}, {transform_indices = @transform_5, window_bounds = array<i64: 1, 32, 256>}]} {
    %c0 = arith.constant 0 : index
    %c0_0 = arith.constant 0 : index
    %c0_1 = arith.constant 0 : index
    %0 = vector.load %arg1[%c0, %c0_0, %c0_1] : memref<1x32x256xf32, #tpu.memory_space<vmem>>, vector<1x32x256xf32>
    %cst = arith.constant dense<0.000000e+00> : vector<1x32xf32>
    %1 = vector.multi_reduction <add>, %0, %cst [2] : vector<1x32x256xf32> to vector<1x32xf32>
    %cst_2 = arith.constant 2.560000e+02 : f32
    %2 = vector.broadcast %cst_2 : f32 to vector<1x32xf32>
    %3 = arith.divf %1, %2 : vector<1x32xf32>
    %4 = vector.shape_cast %3 : vector<1x32xf32> to vector<1x1x32xf32>
    %c0_3 = arith.constant 0 : index
    %c0_4 = arith.constant 0 : index
    %5 = vector.load %arg2[%c0_3, %c0_4] : memref<2x32xf32, #tpu.memory_space<vmem>>, vector<2x32xf32>
    %6 = vector.shape_cast %5 : vector<2x32xf32> to vector<1x2x32xf32>
    %7 = vector.broadcast %4 : vector<1x1x32xf32> to vector<1x2x32xf32>
    %8 = arith.mulf %7, %6 : vector<1x2x32xf32>
    %cst_5 = arith.constant dense<0.000000e+00> : vector<1x2xf32>
    %9 = vector.multi_reduction <add>, %8, %cst_5 [2] : vector<1x2x32xf32> to vector<1x2xf32>
    %cst_6 = arith.constant 0.000000e+00 : f32
    %10 = vector.broadcast %cst_6 : f32 to vector<1x2xf32>
    %11 = arith.maximumf %9, %10 : vector<1x2xf32>
    %12 = vector.shape_cast %11 : vector<1x2xf32> to vector<1x1x2xf32>
    %c0_7 = arith.constant 0 : index
    %c0_8 = arith.constant 0 : index
    %13 = vector.load %arg3[%c0_7, %c0_8] : memref<32x2xf32, #tpu.memory_space<vmem>>, vector<32x2xf32>
    %14 = vector.shape_cast %13 : vector<32x2xf32> to vector<1x32x2xf32>
    %15 = vector.broadcast %12 : vector<1x1x2xf32> to vector<1x32x2xf32>
    %16 = arith.mulf %15, %14 : vector<1x32x2xf32>
    %cst_9 = arith.constant dense<0.000000e+00> : vector<1x32xf32>
    %17 = vector.multi_reduction <add>, %16, %cst_9 [2] : vector<1x32x2xf32> to vector<1x32xf32>
    %cst_10 = arith.constant 2.000000e+00 : f32
    %18 = vector.broadcast %cst_10 : f32 to vector<1x32xf32>
    %19 = arith.mulf %18, %17 : vector<1x32xf32>
    %20 = arith.negf %19 : vector<1x32xf32>
    %21 = math.exp %20 : vector<1x32xf32>
    %cst_11 = arith.constant 1.000000e+00 : f32
    %22 = vector.broadcast %cst_11 : f32 to vector<1x32xf32>
    %23 = arith.addf %22, %21 : vector<1x32xf32>
    %24 = arith.divf %22, %23 : vector<1x32xf32>
    %25 = vector.shape_cast %24 : vector<1x32xf32> to vector<1x32x1xf32>
    %26 = vector.broadcast %25 : vector<1x32x1xf32> to vector<1x32x256xf32>
    %27 = arith.mulf %0, %26 : vector<1x32x256xf32>
    %cst_12 = arith.constant dense<0.000000e+00> : vector<1x256xf32>
    %28 = vector.multi_reduction <add>, %27, %cst_12 [1] : vector<1x32x256xf32> to vector<1x256xf32>
    %cst_13 = arith.constant 3.200000e+01 : f32
    %29 = vector.broadcast %cst_13 : f32 to vector<1x256xf32>
    %30 = arith.divf %28, %29 : vector<1x256xf32>
    %cst_14 = arith.constant dense<0xFF800000> : vector<1x256xf32>
    %31 = vector.multi_reduction <maximumf>, %27, %cst_14 [1] : vector<1x32x256xf32> to vector<1x256xf32>
    %c0_15 = arith.constant 0 : index
    %c0_16 = arith.constant 0 : index
    %c0_17 = arith.constant 0 : index
    %32 = vector.load %arg4[%c0_15, %c0_16, %c0_17] : memref<2x256x256xf32, #tpu.memory_space<vmem>>, vector<1x256x256xf32>
    %33 = vector.shape_cast %32 : vector<1x256x256xf32> to vector<256x256xf32>
    %cst_18 = arith.constant dense<0.000000e+00> : vector<1x256xf32>
    %34 = tpu.matmul %30, %33, %cst_18 {dimension_numbers = #tpu.dot_dimension_numbers<[1], [0], [0], [1], [0, 0, 1, 1], [], []>, precision = #tpu.contract_precision<fp32>} : vector<1x256xf32>, vector<256x256xf32>, vector<1x256xf32> -> vector<1x256xf32>
    %c1 = arith.constant 1 : index
    %c0_19 = arith.constant 0 : index
    %c0_20 = arith.constant 0 : index
    %35 = vector.load %arg4[%c1, %c0_19, %c0_20] : memref<2x256x256xf32, #tpu.memory_space<vmem>>, vector<1x256x256xf32>
    %36 = vector.shape_cast %35 : vector<1x256x256xf32> to vector<256x256xf32>
    %cst_21 = arith.constant dense<0.000000e+00> : vector<1x256xf32>
    %37 = tpu.matmul %31, %36, %cst_21 {dimension_numbers = #tpu.dot_dimension_numbers<[1], [0], [0], [1], [0, 0, 1, 1], [], []>, precision = #tpu.contract_precision<fp32>} : vector<1x256xf32>, vector<256x256xf32>, vector<1x256xf32> -> vector<1x256xf32>
    %38 = arith.addf %34, %37 : vector<1x256xf32>
    %c0_22 = arith.constant 0 : index
    %39 = memref.load %arg5[%c0_22] : memref<1xf32, #tpu.memory_space<smem>>
    %40 = vector.broadcast %39 : f32 to vector<1x256xf32>
    %41 = arith.addf %38, %40 : vector<1x256xf32>
    %42 = arith.negf %41 : vector<1x256xf32>
    %43 = math.exp %42 : vector<1x256xf32>
    %cst_23 = arith.constant 1.000000e+00 : f32
    %44 = vector.broadcast %cst_23 : f32 to vector<1x256xf32>
    %45 = arith.addf %44, %43 : vector<1x256xf32>
    %46 = arith.divf %44, %45 : vector<1x256xf32>
    %47 = vector.shape_cast %46 : vector<1x256xf32> to vector<1x1x256xf32>
    %48 = vector.broadcast %47 : vector<1x1x256xf32> to vector<1x32x256xf32>
    %49 = arith.mulf %27, %48 : vector<1x32x256xf32>
    %c0_24 = arith.constant 0 : index
    %c0_25 = arith.constant 0 : index
    %c0_26 = arith.constant 0 : index
    %50 = vector.load %arg6[%c0_24, %c0_25, %c0_26] : memref<1x32x256xf32, #tpu.memory_space<vmem>>, vector<1x32x256xf32>
    tpu.vector_store %arg6[%c0_24, %c0_25, %c0_26], %49 {strides = array<i32>} : memref<1x32x256xf32, #tpu.memory_space<vmem>>, vector<1x32x256xf32>,
    return
  }
  func.func @transform_0(%arg0: i32) -> (i32, i32, i32) {
    %c0_i32 = arith.constant 0 : i32
    %c0_i32_0 = arith.constant 0 : i32
    %c0_i32_1 = arith.constant 0 : i32
    return %arg0, %c0_i32, %c0_i32_0 : i32, i32, i32
  }
  func.func @transform_1(%arg0: i32) -> (i32, i32) {
    %c0_i32 = arith.constant 0 : i32
    %c0_i32_0 = arith.constant 0 : i32
    %c0_i32_1 = arith.constant 0 : i32
    return %c0_i32, %c0_i32_0 : i32, i32
  }
  func.func @transform_2(%arg0: i32) -> (i32, i32) {
    %c0_i32 = arith.constant 0 : i32
    %c0_i32_0 = arith.constant 0 : i32
    %c0_i32_1 = arith.constant 0 : i32
    return %c0_i32, %c0_i32_0 : i32, i32
  }
  func.func @transform_3(%arg0: i32) -> (i32, i32, i32) {
    %c0_i32 = arith.constant 0 : i32
    %c0_i32_0 = arith.constant 0 : i32
    %c0_i32_1 = arith.constant 0 : i32
    %c0_i32_2 = arith.constant 0 : i32
    return %c0_i32, %c0_i32_0, %c0_i32_1 : i32, i32, i32
  }
  func.func @transform_4(%arg0: i32) -> i32 {
    %c0_i32 = arith.constant 0 : i32
    %c0_i32_0 = arith.constant 0 : i32
    return %c0_i32 : i32
  }
  func.func @transform_5(%arg0: i32) -> (i32, i32, i32) {
    %c0_i32 = arith.constant 0 : i32
    %c0_i32_0 = arith.constant 0 : i32
    %c0_i32_1 = arith.constant 0 : i32
    return %arg0, %c0_i32, %c0_i32_0 : i32, i32, i32
  }
}

</mosaic_0001>

<bundles_post_ra>
// kernel: tpu_custom_call.1
= control target key start
LH: loop header
LB: loop body
LE: loop exit
PB: predicated region body
PF: predicated region fallthrough
CT: control target
= control target key end

     0   :  { %s7055_s0 = inlined_call_operand.hbm [shape: f32[2,32,256], index: 0, kind: input, shape index: {}]   ;;  %s7056_s1 = inlined_call_operand.vmem [shape: f32[2,32], index: 1, kind: input, shape index: {}]   ;;  %s7057_s2 = inlined_call_operand.vmem [shape: f32[32,2], index: 2, kind: input, shape index: {}]   ;;  %s7058_s3 = inlined_call_operand.hbm [shape: f32[2,256,256], index: 3, kind: input, shape index: {}]   ;;  %s7059_s4 = inlined_call_operand.<no memory space> [shape: f32[1], index: 4, kind: input, shape index: {}]   ;;  %s7060_s5 = inlined_call_operand.hbm [shape: f32[2,32,256], index: 5, kind: output, shape index: {}]  }
   0x1   :  { %10 = sst [smem:[#allocation2]] %s7059_s4 }
   0x2   :  { %11 = vsyncpa [#allocation4], 0 }
   0x3   :  { %13 = vsyncpa [#allocation4 + $0x1], 0 }
   0x4   :  { %14 = vsyncpa [#allocation7], 0 }
   0x5   :  { %15 = vsyncpa [#allocation5], 0 }
   0x6   :  { %17 = vsyncpa [#allocation5 + $0x1], 0  ;;  %s4392_s20 = smov 0   ;;  %s4394_s21 = smov 0  }
   0x7   :  { %s4396_s22 = smov 0   ;;  %s4398_s23 = smov 0  }
   0x8 LB: > { %s4413_s4 = sadd.s32 4294967295, %s4349_s23   ;;  %s4080_s24 = sadd.s32 4294967294, %s4349_s23   ;;  %s4349_s23 = sphi %s4398_s23, %s7402_s23   ;;  %s4345_s22 = sphi %s4396_s22, %s7401_s22   ;;  %s4341_s21 = sphi %s4394_s21, %s7400_s21   ;;  %s4337_s20 = sphi %s4392_s20, %s7399_s20  }
   0x9   : > { %p43_p0 = scmp.ne.s32.totalorder %s4341_s21, %s4337_s20  ;;  %p44_p1 = scmp.eq.s32.totalorder %s4413_s4, 0 }
   0xa   : > { %p151_p2 = scmp.eq.s32.totalorder %s4413_s4, 1  ;;  %p157_p3 = scmp.eq.s32.totalorder %s4080_s24, 1 }
   0xb   : > { %p4422_p4 = por %p44_p1, %p43_p0  ;;  %p4081_p5 = scmp.ge.s32.totalorder %s4349_s23, 1 }
   0xc   : > { %p4427_p6 = por %p157_p3, %p43_p0  ;;  %p164_p7 = scmp.lt.s32.totalorder %s4349_s23, 3 }
   0xd   : > { %s181_s29 = sshll.u32 %s7058_s3, 4  ;;  %s4351_s6 = smov [#allocation6]   ;;  %s182_s29 = int_to_ptr.hbm [resolvable:$true] %s181_s29 }
   0xe   : > { %p4435_p8 = pnand %p4081_p5, %p164_p7  ;;  %s183_s7 = sshll.u32 %s4351_s6, 4  ;;  %s184_s7 = int_to_ptr.vmem [resolvable:$true] %s183_s7 }
   0xf   : > { %s4445_s8 = sadd.s32 1, %s4349_s23   ;;  %s4352_s9 = smov 256  }
  0x10   : > { %p4112_p9 = pneg %p4435_p8  ;;  %s4353_s10 = smov 16  }
  0x11   : > { %s27_s11 = ssub.s32 %s4349_s23, %s4445_s8  ;;  %s30_s12 = sadd.s32 1, %s4345_s22 }
  0x12   : > { %p4113_p10 = pnand %p4112_p9, %p44_p1  ;;  %p28_p12 = scmp.eq.s32.totalorder %s27_s11, 0 }
  0x13   : > { %p37_p13 = scmp.ne.s32.totalorder %s4345_s22, %s4341_s21  ;;  %p38_p0 = scmp.eq.s32.totalorder %s4349_s23, 0 }
  0x14   : > { %4115 = dma.hbm_to_vmem [thread:$0]  (!%p4113_p10), %s182_s29, 16384, %s184_s7, [#allocation7], %s4352_s9, %s4352_s9, %s4353_s10  }
  0x15   : > { %s4457_s13 = scalar_select %p28_p12, %s4345_s22, %s30_s12  }
  0x16   : > { %p4461_p3 = por %p151_p2, %p37_p13  ;;  %p4125_p5 = scmp.lt.s32.totalorder %s4349_s23, 2 }
  0x17   : > { %s200_s15 = sand.u32 1, %s4345_s22   ;;  %s4102_s16 = sshll.u32 %s4349_s23, 6 }
  0x18   : > { %p39_p7 = por %p38_p0, %p37_p13  ;;  %s4084_s17 = sshll.u32 %s200_s15, 6 }
  0x19   : > { %s209_s24 = scalar_lea.hbm %s7055_s0, %s4102_s16  ;;  %s204_s28 = scalar_lea.vmem [#allocation3], %s4084_s17 }
  0x1a   : > { %s210_s27 = sshll.u32 %s209_s24, 4  ;;  %s212_s29 = sshll.u32 %s204_s28, 4  ;;  %s211_s27 = int_to_ptr.hbm [resolvable:$true] %s210_s27  ;;  %s213_s29 = int_to_ptr.vmem [resolvable:$true] %s212_s29 }
  0x1b   : > { %p4471_p9 = pnand %p4125_p5, %p39_p7  ;;  %s201_s7 = scalar_lea.sflag [#allocation4], %s200_s15 }
  0x1c   : > { %s4249_s11 = sshra.s32 %s211_s27, 4  ;;  %s4256_s17 = scalar_lea.hbm %s7055_s0, 128  ;;  %s4250_s11 = int_to_ptr.hbm [resolvable:$true] %s4249_s11 }
  0x1d   : > { %s4251_s12 = scalar_lea.hbm %s4250_s11, 64  ;;  %p4253_p10 = pneg %p4471_p9 }
  0x1e   : > { %p4252_p2 = scmp.ne.s32.totalorder %s4250_s11, %s4251_s12  ;;  %p4257_p0 = scmp.lt.s32.totalorder %s4250_s11, %s7055_s0 }
  0x1f   : > { %p4258_p5 = scmp.lt.s32.totalorder %s4256_s17, %s4251_s12 }
  0x20   : > { %p4254_p12 = pnand %p4253_p10, %p4252_p2 }
  0x21   : > { %p4259_p7 = por %p4258_p5, %p4257_p0 }
  0x22   : > { %p4255_p13 = pneg %p4254_p12 }
  0x24   : > { %p4260_p11 = pnand %p4259_p7, %p4255_p13 }
  0x26   : > { %4263 = shalt.err (!%p4260_p11)
}
  0x27   : > { %4119 = dma.hbm_to_vmem [thread:$0]  (!%p4471_p9), %s211_s27, 1024, %s213_s29, %s201_s7, %s4352_s9, %s4352_s9, %s4353_s10  }
  0x28   : > { %224 = sbr.rel (%p4435_p8) target bundleno = 1352 (0x548), region = 40 }
  0x2d   : > { %s4491_s15 = sand.u32 1, %s4341_s21  }
  0x2e   : > { %s4088_s28 = sshll.u32 %s4491_s15, 6  ;;  %s227_s11 = scalar_lea.sflag [#allocation4], %s4491_s15 }
  0x2f   : > { %s4497_s12 = scalar_lea.vmem [#allocation3], %s4088_s28 }
  0x30   : > { %4324 = dma.done.wait (%p4422_p4), %s227_s11, 1024  }
  0x31   : > { %4326 = vsyncadd (%p4422_p4), %s227_s11, 4294966272 }
  0x32   : > { %4328 = dma.done.wait (%p44_p1), [#allocation7], 16384  }
  0x33   : > { %4330 = vsyncadd (%p44_p1), [#allocation7], 4294950912  ;;  %v297_v0 = vlaneseq  ;;  %v267_v3 = vld [vmem:[%s4497_s12 + $0x20] sm:$0xff]  ;;  %v268_v4 = vld [vmem:[%s4497_s12 + $0x28] sm:$0xff]  ;;  %v4354_v36 = vmov 0   ;;  %v4355_v37 = vmov 256.0  }
  0x34   : > { %v263_v5 = vld [vmem:[%s4497_s12] sm:$0xff]  ;;  %v277_v6 = vadd.f32 %v268_v4, %v267_v3  ;;  %v264_v7 = vld [vmem:[%s4497_s12 + $0x8] sm:$0xff]  ;;  %v269_v11 = vld [vmem:[%s4497_s12 + $0x30] sm:$0xff]  ;;  %4183 = vrcp.f32 %v4355_v37  ;;  %vm399_vm1 = vcmask 130112   ;;  %vm403_vm2 = vcmask 195712   ;;  %s6997_s17 = sld [smem:[#allocation2]] }
  0x35   : > { %v4508_v1 = vshrl.u32 %v297_v0, 7  ;;  %v294_v8 = vld [vmem:[%s7056_s1] sm:$0x3]  ;;  %v271_v9 = vadd.f32 %v264_v7, %v263_v5  ;;  %v270_v12 = vld [vmem:[%s4497_s12 + $0x38] sm:$0xff]  ;;  %v265_v13 = vld [vmem:[%s4497_s12 + $0x10] sm:$0xff]  ;;  %vm407_vm3 = vcmask 261312  }
  0x36   : > { %v296_v10 = vperm.slane %v294_v8, 0  ;;  %278 = vadd.xlane.f32.xlu1 %v277_v6  ;;  %v266_v14 = vld [vmem:[%s4497_s12 + $0x18] sm:$0xff]  ;;  %v280_v15 = vadd.f32 %v270_v12, %v269_v11  ;;  %v321_v18 = vperm.slane %v294_v8, 1  ;;  %v4528_v19 = vld [vmem:[%s7057_s2] sm:$0xff]  ;;  %v4543_v25 = vld [vmem:[%s7057_s2 + $0x10] sm:$0xff]  ;;  %vm416_vm4 = vcmask 1041409  }
  0x37   : > { %4168 = vset.pattern.permute.xlu2 %v4508_v1  ;;  %v305_v2 = vadd.s32 8, %v4508_v1  ;;  %4169 = vset.pattern.permute.xlu0 %v4508_v1  ;;  %v274_v16 = vadd.f32 %v266_v14, %v265_v13  ;;  %v311_v17 = vadd.s32 16, %v4508_v1  ;;  %v453_v20 = vperm.slane %v4528_v19, 3  ;;  %v4534_v21 = vld [vmem:[%s7057_s2 + $0x18] sm:$0xff]  ;;  %v4549_v27 = vld [vmem:[%s7057_s2 + $0x8] sm:$0xff]  ;;  %s7006_s19 = scalar_lea.vmem [#allocation8], %s4088_s28 }
  0x38   : > { %272 = vadd.xlane.f32.xlu0 %v271_v9  ;;  %v635_v22 = vperm.slane %v4534_v21, 5  ;;  %v439_v23 = vperm.slane %v4528_v19, 1  ;;  %v317_v24 = vadd.s32 24, %v4508_v1  ;;  %v586_v26 = vperm.slane %v4543_v25, 6  ;;  %s4103_s24 = sshll.u32 %s4413_s4, 6  ;;  %s3994_s25 = sshll.u32 %s7006_s19, 4  ;;  %s3995_s25 = int_to_ptr.vmem [resolvable:$true] %s3994_s25 }
  0x39   : > { %4171 = vset.pattern.permute.xlu1 %v305_v2  ;;  %v495_v28 = vperm.slane %v4549_v27, 1  ;;  %v537_v29 = vperm.slane %v4549_v27, 7  ;;  %v551_v30 = vperm.slane %v4543_v25, 1  ;;  %v607_v31 = vperm.slane %v4534_v21, 1  ;;  %s3982_s4 = scalar_lea.sflag [#allocation5], %s4491_s15  ;;  %s4299_s6 = scalar_lea.hbm %s7060_s5, 128 }
  0x3a   : > { %v502_v32 = vperm.slane %v4549_v27, 2  ;;  %v432_v33 = vperm.slane %v4528_v19, 0  ;;  %v614_v34 = vperm.slane %v4534_v21, 2  ;;  %v488_v35 = vperm.slane %v4549_v27, 0  ;;  %v4184_v40 = vpop.eup %4183 }
  0x3b   : > { %v565_v38 = vperm.slane %v4543_v25, 3  ;;  %v544_v39 = vperm.slane %v4543_v25, 0  ;;  %v284_v41 = vmul.f32 256.0, %v4184_v40  ;;  %v460_v42 = vperm.slane %v4528_v19, 4 }
  0x3c   : > { %v600_v43 = vperm.slane %v4534_v21, 0  ;;  %v446_v46 = vperm.slane %v4528_v19, 2  ;;  %vm288_vm0 = vweird.f32 %v4184_v40  ;;  %v558_v52 = vperm.slane %v4543_v25, 2 }
  0x3d   : > { %v285_v44 = vsub.f32 1.0, %v284_v41  ;;  %v509_v55 = vperm.slane %v4549_v27, 3  ;;  %v621_v58 = vperm.slane %v4534_v21, 3  ;;  %v530_v37 = vperm.slane %v4549_v27, 6 }
  0x3e   : > { %281 = vadd.xlane.f32.xlu1 %v280_v15  ;;  %v481_v41 = vperm.slane %v4528_v19, 7  ;;  %vm419_vm5 = vcmask 254976   ;;  %vm881_vm6 = vcmask 1042434   ;;  %vm883_vm7 = vcmask 1043459  }
  0x3f   : > { %301 = vperm.xlu2 %4168, %v296_v10   ;;  %v286_v45 = vmul.f32 %v4184_v40, %v285_v44  ;;  %v649_v44 = vperm.slane %v4534_v21, 7  ;;  %vm885_vm8 = vcmask 1044484   ;;  %vm887_vm9 = vcmask 1045509  }
  0x40   : > { %275 = vadd.xlane.f32.xlu0 %v274_v16  ;;  %vm889_vm10 = vcmask 1046534   ;;  %vm891_vm11 = vcmask 1047559   ;;  %vm918_vm12 = vcmask 15360  }
  0x41   : > { %v287_v47 = vadd.f32 %v4184_v40, %v286_v45 }
  0x43   : > { %v289_v49 = vsel %vm288_vm0, %v4184_v40, %v287_v47  ;;  %v628_v40 = vperm.slane %v4534_v21, 4 }
  0x47   : > { %4170 = vset.pattern.permute.xlu2 %v305_v2 }
  0x4f   : > { %307 = vperm.xlu2 %4170, %v296_v10  }
  0x54   : > { %326 = vperm.xlu0 %4169, %v321_v18  }
  0x57   : > { %4172 = vset.pattern.permute.xlu2 %v311_v17  ;;  %332 = vperm.xlu1 %4171, %v321_v18  }
  0x5c   : > { %458 = vperm.xlu0 %4169, %v453_v20  }
  0x5f   : > { %313 = vperm.xlu2 %4172, %v296_v10   ;;  %4175 = vset.pattern.permute.xlu1 %v4508_v1 }
  0x64   : > { %640 = vperm.xlu0 %4169, %v635_v22  }
  0x67   : > { %338 = vperm.xlu2 %4172, %v321_v18   ;;  %444 = vperm.xlu1 %4175, %v439_v23  }
  0x6c   : > { %591 = vperm.xlu0 %4169, %v586_v26  }
  0x6f   : > { %4173 = vset.pattern.permute.xlu2 %v317_v24  ;;  %500 = vperm.xlu1 %4175, %v495_v28   ;;  %v572_v24 = vperm.slane %v4543_v25, 4  ;;  %v467_v28 = vperm.slane %v4528_v19, 5 }
  0x74   : > { %542 = vperm.xlu0 %4169, %v537_v29  }
  0x77   : > { %319 = vperm.xlu2 %4173, %v296_v10   ;;  %556 = vperm.xlu1 %4175, %v551_v30  }
  0x7c   : > { %4180 = vset.pattern.permute.xlu0 %v4354_v36 }
  0x7f   : > { %344 = vperm.xlu2 %4173, %v321_v18   ;;  %612 = vperm.xlu1 %4175, %v607_v31   ;;  %v579_v31 = vperm.slane %v4543_v25, 5 }
  0x87   : > { %4174 = vset.pattern.permute.xlu2 %v4508_v1  ;;  %507 = vperm.xlu1 %4175, %v502_v32  }
  0x8f   : > { %437 = vperm.xlu2 %4174, %v432_v33   ;;  %619 = vperm.xlu1 %4175, %v614_v34  }
  0x97   : > { %493 = vperm.xlu2 %4174, %v488_v35   ;;  %570 = vperm.xlu1 %4175, %v565_v38   ;;  %v516_v35 = vperm.slane %v4549_v27, 4 }
  0x99   : > { %v302_v48 = vpop.permute.xlu2 %301 }
  0x9f   : > { %549 = vperm.xlu2 %4174, %v544_v39   ;;  %465 = vperm.xlu1 %4175, %v460_v42  }
  0xa7   : > { %605 = vperm.xlu2 %4174, %v600_v43   ;;  %4176 = vset.pattern.permute.xlu1 %v4354_v36  ;;  %v523_v43 = vperm.slane %v4549_v27, 5  ;;  %v642_v27 = vperm.slane %v4534_v21, 6 }
  0xa9   : > { %v308_v54 = vpop.permute.xlu2 %307  ;;  %v279_v56 = vpop.xlane.xlu1 %278 }
  0xaa   : > { %v292_v7 = vmul.f32 %v289_v49, %v279_v56 }
  0xab   : > { %v273_v50 = vpop.xlane.xlu0 %272 }
  0xac   : > { %v290_v51 = vmul.f32 %v289_v49, %v273_v50 }
  0xae   : > { %v354_v53 = vmul.f32 %v302_v48, %v290_v51  ;;  %v474_v48 = vperm.slane %v4528_v19, 6 }
  0xaf   : > { %451 = vperm.xlu2 %4174, %v446_v46  }
  0xb0   : > { %371 = vperm.xlu1 %4176, %v354_v53  }
  0xb1   : > { %v282_v60 = vpop.xlane.xlu1 %281 }
  0xb2   : > { %v293_v11 = vmul.f32 %v289_v49, %v282_v60  ;;  %v593_v60 = vperm.slane %v4543_v25, 7 }
  0xb3   : > { %v276_v59 = vpop.xlane.xlu0 %275 }
  0xb4   : > { %v291_v62 = vmul.f32 %v289_v49, %v276_v59 }
  0xb6   : > { %v355_v3 = vmul.f32 %v308_v54, %v291_v62 }
  0xb7   : > { %563 = vperm.xlu2 %4174, %v558_v52   ;;  %v4625_v52 = vand.u32 127, %v297_v0 }
  0xb9   : > { %v314_v57 = vpop.permute.xlu2 %313  ;;  %v397_v54 = vadd.s32 4294967288, %v4625_v52  ;;  %v405_v19 = vadd.s32 4294967272, %v4625_v52 }
  0xba   : > { %v356_v9 = vmul.f32 %v314_v57, %v292_v7 }
  0xbf   : > { %514 = vperm.xlu2 %4174, %v509_v55   ;;  %v401_v55 = vadd.s32 4294967280, %v4625_v52 }
  0xc1   : > { %v339_v61 = vpop.permute.xlu2 %338 }
  0xc2   : > { %v360_v8 = vmul.f32 %v339_v61, %v292_v7 }
  0xc6   : > { %v327_v63 = vpop.permute.xlu0 %326 }
  0xc7   : > { %626 = vperm.xlu2 %4174, %v621_v58   ;;  %v358_v2 = vmul.f32 %v327_v63, %v290_v51 }
  0xc9   : > { %383 = vperm.xlu1 %4176, %v358_v2   ;;  %v333_v4 = vpop.permute.xlu1 %332 }
  0xca   : > { %v359_v5 = vmul.f32 %v333_v4, %v291_v62 }
  0xcc   : > { %386 = vperm.xlu0 %4180, %v359_v5  }
  0xce   : > { %v4600_v32 = vpop.permute.xlu0 %458 }
  0xcf   : > { %4177 = vset.pattern.permute.xlu2 %v4354_v36 }
  0xd0   : > { %374 = vperm.xlu2 %4177, %v355_v3  }
  0xd1   : > { %v320_v6 = vpop.permute.xlu2 %319  ;;  %389 = vperm.xlu1 %4176, %v360_v8  }
  0xd2   : > { %v357_v13 = vmul.f32 %v320_v6, %v293_v11 }
  0xd6   : > { %v4608_v38 = vpop.permute.xlu0 %640 }
  0xd8   : > { %377 = vperm.xlu2 %4177, %v356_v9  }
  0xd9   : > { %v345_v10 = vpop.permute.xlu2 %344  ;;  %v4575_v15 = vpop.permute.xlu1 %444 }
  0xda   : > { %v361_v12 = vmul.f32 %v345_v10, %v293_v11 }
  0xdc   : > { %392 = vperm.xlu1 %4176, %v361_v12  }
  0xde   : > { %v4618_v45 = vpop.permute.xlu0 %591 }
  0xe0   : > { %380 = vperm.xlu2 %4177, %v357_v13  }
  0xe1   : > { %v4579_v17 = vpop.permute.xlu1 %500 }
  0xe4   : > { %4179 = vset.pattern.permute.xlu1 %v4508_v1 }
  0xe6   : > { %v4622_v50 = vpop.permute.xlu0 %542 }
  0xe8   : > { %4178 = vset.pattern.permute.xlu2 %v4508_v1 }
  0xe9   : > { %v4573_v14 = vpop.permute.xlu2 %437  ;;  %v4583_v20 = vpop.permute.xlu1 %556 }
  0xec   : > { %577 = vperm.xlu1 %4179, %v572_v24  }
  0xf0   : > { %521 = vperm.xlu2 %4178, %v516_v35  }
  0xf1   : > { %v4577_v16 = vpop.permute.xlu2 %493  ;;  %v4587_v23 = vpop.permute.xlu1 %612 }
  0xf4   : > { %472 = vperm.xlu1 %4179, %v467_v28  }
  0xf8   : > { %633 = vperm.xlu2 %4178, %v628_v40  }
  0xf9   : > { %v4581_v18 = vpop.permute.xlu2 %549  ;;  %v4592_v26 = vpop.permute.xlu1 %507 }
  0xfc   : > { %584 = vperm.xlu1 %4179, %v579_v31  }
 0x100   : > { %528 = vperm.xlu2 %4178, %v523_v43  }
 0x101   : > { %v4585_v22 = vpop.permute.xlu2 %605  ;;  %v4597_v30 = vpop.permute.xlu1 %619 }
 0x104   : > { %535 = vperm.xlu1 %4179, %v530_v37  }
 0x108   : > { %479 = vperm.xlu2 %4178, %v474_v48  }
 0x109   : > { %v4590_v1 = vpop.permute.xlu2 %451  ;;  %v4604_v34 = vpop.permute.xlu1 %570 }
 0x10c   : > { %486 = vperm.xlu1 %4179, %v481_v41  }
 0x110   : > { %647 = vperm.xlu2 %4178, %v642_v27  }
 0x111   : > { %v4595_v29 = vpop.permute.xlu2 %563  ;;  %v4614_v42 = vpop.permute.xlu1 %465 }
 0x114   : > { %654 = vperm.xlu1 %4179, %v649_v44  }
 0x118   : > { %598 = vperm.xlu2 %4178, %v593_v60  }
 0x119   : > { %v4602_v33 = vpop.permute.xlu2 %514 }
 0x11c   : > { %4182 = vset.pattern.permute.xlu1 %v4354_v36 }
 0x120   : > { %4181 = vset.pattern.permute.xlu2 %v4354_v36 }
 0x121   : > { %v4610_v39 = vpop.permute.xlu2 %626 }
 0x122   : > { %v372_v46 = vpop.permute.xlu1 %371 }
 0x123   : > { %v396_v62 = vperm.slane %v372_v46, %v4625_v52 }
 0x12a   : > { %v375_v47 = vpop.permute.xlu2 %374 }
 0x12b   : > { %v398_v58 = vperm.slane %v375_v47, %v397_v54 }
 0x12d   : > { %v400_v3 = vsel %vm399_vm1, %v398_v58, %v396_v62 }
 0x132   : > { %v378_v51 = vpop.permute.xlu2 %377 }
 0x133   : > { %v402_v61 = vperm.slane %v378_v51, %v401_v55 }
 0x135   : > { %v404_v6 = vsel %vm403_vm2, %v402_v61, %v400_v3 }
 0x13a   : > { %v381_v57 = vpop.permute.xlu2 %380 }
 0x13b   : > { %v384_v49 = vpop.permute.xlu1 %383  ;;  %v406_v21 = vperm.slane %v381_v57, %v405_v19 }
 0x13c   : > { %v409_v63 = vperm.slane %v384_v49, %v4625_v52 }
 0x13d   : > { %v408_v25 = vsel %vm407_vm3, %v406_v21, %v404_v6 }
 0x13e   : > { %v387_v56 = vpop.permute.xlu0 %386 }
 0x13f   : > { %v410_v59 = vperm.slane %v387_v56, %v397_v54 }
 0x141   : > { %v411_v4 = vsel %vm399_vm1, %v410_v59, %v409_v63 }
 0x143   : > { %v390_v53 = vpop.permute.xlu1 %389 }
 0x144   : > { %v412_v0 = vperm.slane %v390_v53, %v401_v55 }
 0x146   : > { %v413_v7 = vsel %vm403_vm2, %v412_v0, %v411_v4 }
 0x14e   : > { %v393_v2 = vpop.permute.xlu1 %392 }
 0x14f   : > { %v414_v5 = vperm.slane %v393_v2, %v405_v19 }
 0x151   : > { %v415_v8 = vsel %vm407_vm3, %v414_v5, %v413_v7 }
 0x152   : > { %v417_v9 = vsel %vm416_vm4, %v415_v8, %v408_v25 }
 0x153   : > { %v420_v10 = vsel %vm419_vm5, %v417_v9, 0.0 }
 0x154   : > { %421 = vadd.xlane.f32.xlu0 %v420_v10 }
 0x1c7   : > { %v422_v11 = vpop.xlane.xlu0 %421 }
 0x1c8   : > { %v4636_v12 = vmax.f32 %v422_v11, 0.0 }
 0x1ca   : > { %v688_v13 = vmul.f32 %v4573_v14, %v4636_v12  ;;  %v689_v24 = vmul.f32 %v4575_v15, %v4636_v12  ;;  %v696_v28 = vmul.f32 %v4577_v16, %v4636_v12  ;;  %v697_v31 = vmul.f32 %v4579_v17, %v4636_v12 }
 0x1cb   : > { %v705_v36 = vmul.f32 %v4583_v20, %v4636_v12  ;;  %v704_v35 = vmul.f32 %v4581_v18, %v4636_v12  ;;  %v712_v14 = vmul.f32 %v4585_v22, %v4636_v12  ;;  %v690_v15 = vmul.f32 %v4590_v1, %v4636_v12  ;;  %v522_v22 = vpop.permute.xlu2 %521  ;;  %v578_v1 = vpop.permute.xlu1 %577 }
 0x1cc   : > { %756 = vperm.xlu2 %4181, %v689_v24   ;;  %753 = vperm.xlu0 %4180, %v688_v13   ;;  %v713_v16 = vmul.f32 %v4587_v23, %v4636_v12  ;;  %v698_v17 = vmul.f32 %v4592_v26, %v4636_v12  ;;  %v714_v18 = vmul.f32 %v4597_v30, %v4636_v12 }
 0x1cd   : > { %777 = vperm.xlu1 %4182, %v696_v28   ;;  %v706_v20 = vmul.f32 %v4595_v29, %v4636_v12  ;;  %v691_v23 = vmul.f32 %v4600_v32, %v4636_v12  ;;  %v707_v37 = vmul.f32 %v4604_v34, %v4636_v12  ;;  %v699_v26 = vmul.f32 %v4602_v33, %v4636_v12 }
 0x1ce   : > { %v715_v29 = vmul.f32 %v4610_v39, %v4636_v12  ;;  %v700_v41 = vmul.f32 %v522_v22, %v4636_v12  ;;  %v692_v43 = vmul.f32 %v4614_v42, %v4636_v12  ;;  %v708_v34 = vmul.f32 %v578_v1, %v4636_v12 }
 0x1cf   : > { %v717_v42 = vmul.f32 %v4608_v38, %v4636_v12  ;;  %v710_v27 = vmul.f32 %v4618_v45, %v4636_v12  ;;  %v703_v56 = vmul.f32 %v4622_v50, %v4636_v12 }
 0x1d3   : > { %v634_v30 = vpop.permute.xlu2 %633  ;;  %v473_v40 = vpop.permute.xlu1 %472 }
 0x1d4   : > { %780 = vperm.xlu2 %4181, %v697_v31   ;;  %804 = vperm.xlu0 %4180, %v705_v36   ;;  %v693_v44 = vmul.f32 %v473_v40, %v4636_v12  ;;  %v716_v46 = vmul.f32 %v634_v30, %v4636_v12 }
 0x1d5   : > { %801 = vperm.xlu1 %4182, %v704_v35  }
 0x1db   : > { %v529_v32 = vpop.permute.xlu2 %528  ;;  %v585_v33 = vpop.permute.xlu1 %584 }
 0x1dc   : > { %825 = vperm.xlu2 %4181, %v712_v14   ;;  %759 = vperm.xlu0 %4180, %v690_v15   ;;  %v701_v39 = vmul.f32 %v529_v32, %v4636_v12  ;;  %v709_v48 = vmul.f32 %v585_v33, %v4636_v12 }
 0x1dd   : > { %828 = vperm.xlu1 %4182, %v713_v16  }
 0x1e3   : > { %v480_v47 = vpop.permute.xlu2 %479  ;;  %v536_v49 = vpop.permute.xlu1 %535 }
 0x1e4   : > { %783 = vperm.xlu2 %4181, %v698_v17   ;;  %831 = vperm.xlu0 %4180, %v714_v18   ;;  %v694_v51 = vmul.f32 %v480_v47, %v4636_v12  ;;  %v702_v53 = vmul.f32 %v536_v49, %v4636_v12 }
 0x1e5   : > { %807 = vperm.xlu1 %4182, %v706_v20  }
 0x1eb   : > { %v648_v54 = vpop.permute.xlu2 %647  ;;  %v487_v55 = vpop.permute.xlu1 %486 }
 0x1ec   : > { %762 = vperm.xlu2 %4181, %v691_v23   ;;  %810 = vperm.xlu0 %4180, %v707_v37   ;;  %v718_v38 = vmul.f32 %v648_v54, %v4636_v12  ;;  %v695_v19 = vmul.f32 %v487_v55, %v4636_v12 }
 0x1ed   : > { %786 = vperm.xlu1 %4182, %v699_v26  }
 0x1f3   : > { %v599_v57 = vpop.permute.xlu2 %598  ;;  %v655_v58 = vpop.permute.xlu1 %654 }
 0x1f4   : > { %834 = vperm.xlu2 %4181, %v715_v29   ;;  %789 = vperm.xlu0 %4180, %v700_v41   ;;  %v711_v45 = vmul.f32 %v599_v57, %v4636_v12  ;;  %v719_v59 = vmul.f32 %v655_v58, %v4636_v12 }
 0x1f5   : > { %765 = vperm.xlu1 %4182, %v692_v43  }
 0x1fc   : > { %813 = vperm.xlu2 %4181, %v708_v34   ;;  %768 = vperm.xlu0 %4180, %v693_v44  }
 0x1fd   : > { %837 = vperm.xlu1 %4182, %v716_v46  }
 0x204   : > { %792 = vperm.xlu2 %4181, %v701_v39   ;;  %840 = vperm.xlu0 %4180, %v717_v42  }
 0x205   : > { %816 = vperm.xlu1 %4182, %v709_v48  }
 0x20c   : > { %771 = vperm.xlu2 %4181, %v694_v51   ;;  %819 = vperm.xlu0 %4180, %v710_v27  }
 0x20d   : > { %795 = vperm.xlu1 %4182, %v702_v53  }
 0x214   : > { %843 = vperm.xlu2 %4181, %v718_v38   ;;  %798 = vperm.xlu0 %4180, %v703_v56  }
 0x215   : > { %774 = vperm.xlu1 %4182, %v695_v19  }
 0x21c   : > { %822 = vperm.xlu2 %4181, %v711_v45  }
 0x21d   : > { %846 = vperm.xlu1 %4182, %v719_v59  }
 0x226   : > { %v757_v60 = vpop.permute.xlu2 %756 }
 0x227   : > { %v849_v50 = vperm.slane %v757_v60, %v4625_v52 }
 0x22e   : > { %v781_v61 = vpop.permute.xlu2 %780 }
 0x22f   : > { %v857_v3 = vperm.slane %v781_v61, %v4625_v52 }
 0x236   : > { %v4690_v0 = vpop.permute.xlu2 %825 }
 0x23e   : > { %v784_v62 = vpop.permute.xlu2 %783  ;;  %v754_v21 = vpop.permute.xlu0 %753 }
 0x23f   : > { %v778_v63 = vpop.permute.xlu1 %777  ;;  %v848_v2 = vperm.slane %v754_v21, %v4625_v52  ;;  %v858_v33 = vperm.slane %v784_v62, %v4625_v52 }
 0x240   : > { %v856_v4 = vperm.slane %v778_v63, %v4625_v52  ;;  %v872_v63 = vperm.slane %v4690_v0, %v4625_v52 }
 0x241   : > { %v880_v5 = vsel %vm416_vm4, %v849_v50, %v848_v2 }
 0x242   : > { %v893_v6 = vsel %vm416_vm4, %v857_v3, %v856_v4 }
 0x243   : > { %v894_v55 = vsel %vm881_vm6, %v858_v33, %v893_v6 }
 0x246   : > { %v763_v7 = vpop.permute.xlu2 %762  ;;  %v805_v25 = vpop.permute.xlu0 %804 }
 0x247   : > { %v802_v8 = vpop.permute.xlu1 %801  ;;  %v865_v22 = vperm.slane %v805_v25, %v4625_v52  ;;  %v851_v38 = vperm.slane %v763_v7, %v4625_v52 }
 0x248   : > { %v864_v20 = vperm.slane %v802_v8, %v4625_v52 }
 0x24a   : > { %v900_v30 = vsel %vm416_vm4, %v865_v22, %v864_v20 }
 0x24e   : > { %v4698_v9 = vpop.permute.xlu2 %834  ;;  %v760_v10 = vpop.permute.xlu0 %759 }
 0x24f   : > { %v4700_v11 = vpop.permute.xlu1 %828  ;;  %v850_v43 = vperm.slane %v760_v10, %v4625_v52 }
 0x250   : > { %v873_v45 = vperm.slane %v4700_v11, %v4625_v52 }
 0x251   : > { %v882_v27 = vsel %vm881_vm6, %v850_v43, %v880_v5 }
 0x252   : > { %v884_v59 = vsel %vm883_vm7, %v851_v38, %v882_v27  ;;  %v907_v25 = vsel %vm416_vm4, %v873_v45, %v872_v63  ;;  %v1149_v27 = vld [vmem:[#allocation6 + $0x2a0] sm:$0xff] }
 0x253   : > { %v4825_v38 = vand.u32 4294901760, %v1149_v27 }
 0x255   : > { %v4836_v45 = vsub.f32 %v1149_v27, %v4825_v38 }
 0x256   : > { %v814_v12 = vpop.permute.xlu2 %813  ;;  %v4702_v13 = vpop.permute.xlu0 %831 }
 0x257   : > { %v808_v24 = vpop.permute.xlu1 %807  ;;  %v868_v32 = vperm.slane %v814_v12, %v4625_v52  ;;  %v874_v62 = vperm.slane %v4702_v13, %v4625_v52 }
 0x258   : > { %v866_v23 = vperm.slane %v808_v24, %v4625_v52  ;;  %v875_v24 = vperm.slane %v4698_v9, %v4625_v52 }
 0x259   : > { %v908_v11 = vsel %vm881_vm6, %v874_v62, %v907_v25 }
 0x25a   : > { %v901_v40 = vsel %vm881_vm6, %v866_v23, %v900_v30  ;;  %v1157_v30 = vld [vmem:[#allocation6 + $0x2e0] sm:$0xff] }
 0x25e   : > { %v811_v28 = vpop.permute.xlu0 %810  ;;  %v793_v36 = vpop.permute.xlu2 %792 }
 0x25f   : > { %v787_v31 = vpop.permute.xlu1 %786  ;;  %v867_v26 = vperm.slane %v811_v28, %v4625_v52  ;;  %v861_v21 = vperm.slane %v793_v36, %v4625_v52 }
 0x260   : > { %v859_v46 = vperm.slane %v787_v31, %v4625_v52 }
 0x261   : > { %v902_v29 = vsel %vm883_vm7, %v867_v26, %v901_v40 }
 0x262   : > { %v903_v39 = vsel %vm885_vm8, %v868_v32, %v902_v29  ;;  %v895_v57 = vsel %vm883_vm7, %v859_v46, %v894_v55  ;;  %v4783_v29 = vand.u32 4294901760, %v1157_v30  ;;  %v1153_v32 = vld [vmem:[#allocation6 + $0x2c0] sm:$0xff] }
 0x263   : > { %v4804_v46 = vand.u32 4294901760, %v1153_v32 }
 0x266   : > { %v790_v35 = vpop.permute.xlu0 %789  ;;  %v4704_v15 = vpop.permute.xlu2 %771 }
 0x267   : > { %v766_v14 = vpop.permute.xlu1 %765  ;;  %v860_v48 = vperm.slane %v790_v35, %v4625_v52  ;;  %v854_v4 = vperm.slane %v4704_v15, %v4625_v52 }
 0x268   : > { %v852_v53 = vperm.slane %v766_v14, %v4625_v52  ;;  %v909_v14 = vsel %vm883_vm7, %v875_v24, %v908_v11  ;;  %v1139_v24 = vld [vmem:[#allocation6 + $0x250] sm:$0xff] }
 0x269   : > { %v896_v60 = vsel %vm885_vm8, %v860_v48, %v895_v57 }
 0x26a   : > { %v886_v50 = vsel %vm885_vm8, %v852_v53, %v884_v59  ;;  %v897_v7 = vsel %vm887_vm9, %v861_v21, %v896_v60  ;;  %v1266_v21 = vand.u32 4294901760, %v4836_v45 }
 0x26e   : > { %v769_v16 = vpop.permute.xlu0 %768  ;;  %v4708_v18 = vpop.permute.xlu2 %843 }
 0x26f   : > { %v4706_v17 = vpop.permute.xlu1 %837  ;;  %v853_v56 = vperm.slane %v769_v16, %v4625_v52  ;;  %v878_v9 = vperm.slane %v4708_v18, %v4625_v52 }
 0x270   : > { %v876_v0 = vperm.slane %v4706_v17, %v4625_v52 }
 0x271   : > { %v888_v2 = vsel %vm887_vm9, %v853_v56, %v886_v50 }
 0x272   : > { %v890_v12 = vsel %vm889_vm10, %v854_v4, %v888_v2  ;;  %v910_v15 = vsel %vm885_vm8, %v876_v0, %v909_v14  ;;  %v1267_v4 = vsub.f32 %v4836_v45, %v1266_v21 }
 0x276   : > { %v4712_v1 = vpop.permute.xlu0 %840  ;;  %v823_v34 = vpop.permute.xlu2 %822 }
 0x277   : > { %v817_v37 = vpop.permute.xlu1 %816  ;;  %v871_v51 = vperm.slane %v823_v34, %v4625_v52  ;;  %v877_v28 = vperm.slane %v4712_v1, %v4625_v52 }
 0x278   : > { %v869_v41 = vperm.slane %v817_v37, %v4625_v52  ;;  %v1159_v37 = vld [vmem:[#allocation6 + $0x2f0] sm:$0xff] }
 0x279   : > { %v911_v16 = vsel %vm887_vm9, %v877_v28, %v910_v15  ;;  %v4778_v26 = vand.u32 4294901760, %v1159_v37  ;;  %v1137_v15 = vld [vmem:[#allocation6 + $0x240] sm:$0xff] }
 0x27a   : > { %v904_v49 = vsel %vm887_vm9, %v869_v41, %v903_v39  ;;  %v912_v22 = vsel %vm889_vm10, %v878_v9, %v911_v16  ;;  %v4789_v41 = vsub.f32 %v1157_v30, %v4783_v29  ;;  %v1151_v39 = vld [vmem:[#allocation6 + $0x2b0] sm:$0xff] }
 0x27b   : > { %v4781_v40 = vsub.f32 %v1159_v37, %v4778_v26  ;;  %1390 = vmatpush.msra.mxu3 %v4778_v26  ;;  %1194 = vmatpush.msra.mxu0 %v4778_v26 }
 0x27c   : > { %v1242_v33 = vand.u32 4294901760, %v4789_v41 }
 0x27d   : > { %v1236_v18 = vand.u32 4294901760, %v4781_v40  ;;  %1337 = vmatpush.msra.mxu2 %v4781_v40  ;;  %1392 = vmatpush.msra.mxu3 %v4783_v29 }
 0x27e   : > { %v820_v44 = vpop.permute.xlu0 %819  ;;  %1196 = vmatpush.msra.mxu0 %v4783_v29 }
 0x27f   : > { %v796_v47 = vpop.permute.xlu1 %795  ;;  %v870_v42 = vperm.slane %v820_v44, %v4625_v52  ;;  %v1237_v34 = vsub.f32 %v4781_v40, %v1236_v18  ;;  %1340 = vmatpush.msra.mxu2 %v4789_v41 }
 0x280   : > { %v862_v61 = vperm.slane %v796_v47, %v4625_v52 }
 0x281   : > { %v905_v54 = vsel %vm889_vm10, %v870_v42, %v904_v49  ;;  %v1238_v47 = vand.u32 4294901760, %v1237_v34  ;;  %v1243_v42 = vsub.f32 %v4789_v41, %v1242_v33  ;;  %v4813_v49 = vsub.f32 %v1153_v32, %v4804_v46  ;;  %v1133_v34 = vld [vmem:[#allocation6 + $0x220] sm:$0xff] }
 0x282   : > { %v906_v19 = vsel %vm891_vm11, %v871_v51, %v905_v54  ;;  %v898_v10 = vsel %vm889_vm10, %v862_v61, %v897_v7  ;;  %v4817_v51 = vand.u32 4294901760, %v1151_v39  ;;  %v1145_v61 = vld [vmem:[#allocation6 + $0x280] sm:$0xff]  ;;  %v4921_v27 = vand.u32 4294901760, %v1133_v34 }
 0x283   : > { %v925_v58 = vsel %vm918_vm12, %v906_v19, 0.0  ;;  %1239 = vmatpush.msra.mxu1 %v1238_v47  ;;  %v1244_v53 = vand.u32 4294901760, %v1243_v42  ;;  %v1254_v55 = vand.u32 4294901760, %v4813_v49  ;;  %v1147_v19 = vld [vmem:[#allocation6 + $0x290] sm:$0xff]  ;;  %v4847_v63 = vand.u32 4294901760, %v1145_v61 }
 0x284   : > { %926 = vadd.xlane.f32.xlu1 %v925_v58  ;;  %v4828_v56 = vsub.f32 %v1151_v39, %v4817_v51  ;;  %v4838_v59 = vand.u32 4294901760, %v1147_v19 }
 0x285   : > { %1245 = vmatpush.msra.mxu1 %v1244_v53  ;;  %v1255_v58 = vsub.f32 %v4813_v49, %v1254_v55 }
 0x286   : > { %v799_v3 = vpop.permute.xlu0 %798  ;;  %v1260_v60 = vand.u32 4294901760, %v4828_v56  ;;  %v4845_v50 = vsub.f32 %v1147_v19, %v4838_v59 }
 0x287   : > { %v775_v5 = vpop.permute.xlu1 %774  ;;  %v863_v6 = vperm.slane %v799_v3, %v4625_v52  ;;  %v1256_v62 = vand.u32 4294901760, %v1255_v58  ;;  %v1143_v3 = vld [vmem:[#allocation6 + $0x270] sm:$0xff] }
 0x288   : > { %v855_v8 = vperm.slane %v775_v5, %v4625_v52  ;;  %v1261_v2 = vsub.f32 %v4828_v56, %v1260_v60  ;;  %v1272_v5 = vand.u32 4294901760, %v4845_v50  ;;  %v4862_v7 = vand.u32 4294901760, %v1143_v3 }
 0x289   : > { %v899_v13 = vsel %vm891_vm11, %v863_v6, %v898_v10  ;;  %v4860_v6 = vsub.f32 %v1145_v61, %v4847_v63  ;;  %v1268_v10 = vand.u32 4294901760, %v1267_v4  ;;  %v4931_v61 = vsub.f32 %v1133_v34, %v4921_v27 }
 0x28a   : > { %v892_v31 = vsel %vm891_vm11, %v855_v8, %v890_v12  ;;  %v922_v36 = vsel %vm918_vm12, %v899_v13, 0.0  ;;  %v1262_v25 = vand.u32 4294901760, %v1261_v2  ;;  %v1141_v8 = vld [vmem:[#allocation6 + $0x260] sm:$0xff]  ;;  %v1273_v11 = vsub.f32 %v4845_v50, %v1272_v5 }
 0x28b   : > { %v919_v35 = vsel %vm918_vm12, %v892_v31, 0.0  ;;  %923 = vadd.xlane.f32.xlu2 %v922_v36  ;;  %v1278_v0 = vand.u32 4294901760, %v4860_v6  ;;  %v4872_v12 = vsub.f32 %v1143_v3, %v4862_v7  ;;  %v4876_v13 = vand.u32 4294901760, %v1141_v8  ;;  %v1129_v2 = vld [vmem:[#allocation6 + $0x200] sm:$0xff] }
 0x28c   : > { %920 = vadd.xlane.f32.xlu0 %v919_v35  ;;  %v1274_v28 = vand.u32 4294901760, %v1273_v11  ;;  %v4882_v35 = vand.u32 4294901760, %v1139_v24 }
 0x28d   : > { %v1279_v31 = vsub.f32 %v4860_v6, %v1278_v0  ;;  %v1284_v36 = vand.u32 4294901760, %v4872_v12  ;;  %v4887_v14 = vsub.f32 %v1141_v8, %v4876_v13  ;;  %v4942_v8 = vand.u32 4294901760, %v1129_v2 }
 0x28f   : > { %v847_v17 = vpop.permute.xlu1 %846  ;;  %v1280_v16 = vand.u32 4294901760, %v1279_v31  ;;  %v1285_v9 = vsub.f32 %v4872_v12, %v1284_v36  ;;  %v4954_v31 = vsub.f32 %v1129_v2, %v4942_v8 }
 0x290   : > { %v879_v20 = vperm.slane %v847_v17, %v4625_v52  ;;  %v1155_v52 = vld [vmem:[#allocation6 + $0x2d0] sm:$0xff]  ;;  %v4894_v17 = vsub.f32 %v1139_v24, %v4882_v35 }
 0x291   : > { %v4792_v43 = vand.u32 4294901760, %v1155_v52 }
 0x292   : > { %v913_v1 = vsel %vm891_vm11, %v879_v20, %v912_v22  ;;  %v4896_v20 = vand.u32 4294901760, %v1137_v15  ;;  %v1290_v22 = vand.u32 4294901760, %v4887_v14  ;;  %v1296_v37 = vand.u32 4294901760, %v4894_v17 }
 0x293   : > { %v928_v23 = vsel %vm918_vm12, %v913_v1, 0.0  ;;  %v4801_v44 = vsub.f32 %v1155_v52, %v4792_v43  ;;  %1394 = vmatpush.msra.mxu3 %v4792_v43  ;;  %1198 = vmatpush.msra.mxu0 %v4792_v43  ;;  %v1135_v1 = vld [vmem:[#allocation6 + $0x230] sm:$0xff] }
 0x294   : > { %929 = vadd.xlane.f32.xlu0 %v928_v23  ;;  %v1286_v23 = vand.u32 4294901760, %v1285_v9  ;;  %v4904_v30 = vsub.f32 %v1137_v15, %v4896_v20  ;;  %v4906_v52 = vand.u32 4294901760, %v1135_v1  ;;  %v1291_v32 = vsub.f32 %v4887_v14, %v1290_v22 }
 0x295   : > { %v1248_v48 = vand.u32 4294901760, %v4801_v44  ;;  %1343 = vmatpush.msra.mxu2 %v4801_v44  ;;  %1396 = vmatpush.msra.mxu3 %v4804_v46  ;;  %v1297_v39 = vsub.f32 %v4894_v17, %v1296_v37 }
 0x296   : > { %1200 = vmatpush.msra.mxu0 %v4804_v46  ;;  %v1302_v47 = vand.u32 4294901760, %v4904_v30  ;;  %v4919_v42 = vsub.f32 %v1135_v1, %v4906_v52  ;;  %v1292_v53 = vand.u32 4294901760, %v1291_v32  ;;  %v1326_v1 = vand.u32 4294901760, %v4954_v31 }
 0x297   : > { %v1249_v54 = vsub.f32 %v4801_v44, %v1248_v48  ;;  %1346 = vmatpush.msra.mxu2 %v4813_v49  ;;  %1398 = vmatpush.msra.mxu3 %v4817_v51  ;;  %v1298_v19 = vand.u32 4294901760, %v1297_v39  ;;  %v1183_v44 = vld [vmem:[#allocation6 + $0x3b0] sm:$0xff] }
 0x298   : > { %1202 = vmatpush.msra.mxu0 %v4817_v51  ;;  %v1308_v58 = vand.u32 4294901760, %v4919_v42 }
 0x299   : > { %v1250_v57 = vand.u32 4294901760, %v1249_v54  ;;  %1349 = vmatpush.msra.mxu2 %v4828_v56  ;;  %1400 = vmatpush.msra.mxu3 %v4825_v38  ;;  %v1131_v54 = vld [vmem:[#allocation6 + $0x210] sm:$0xff] }
 0x29a   : > { %1204 = vmatpush.msra.mxu0 %v4825_v38  ;;  %v1309_v4 = vsub.f32 %v4919_v42, %v1308_v58 }
 0x29b   : > { %1251 = vmatpush.msra.mxu1 %v1250_v57  ;;  %1352 = vmatpush.msra.mxu2 %v4836_v45  ;;  %v1303_v57 = vsub.f32 %v4904_v30, %v1302_v47  ;;  %v1177_v45 = vld [vmem:[#allocation6 + $0x380] sm:$0xff] }
 0x29c   : > { %1402 = vmatpush.msra.mxu3 %v4838_v59  ;;  %1206 = vmatpush.msra.mxu0 %v4838_v59  ;;  %v1310_v24 = vand.u32 4294901760, %v1309_v4  ;;  %v1187_v4 = vld [vmem:[#allocation6 + $0x3d0] sm:$0xff] }
 0x29d   : > { %1257 = vmatpush.msra.mxu1 %v1256_v62  ;;  %1355 = vmatpush.msra.mxu2 %v4845_v50  ;;  %v4936_v62 = vand.u32 4294901760, %v1131_v54  ;;  %v1304_v3 = vand.u32 4294901760, %v1303_v57 }
 0x29e   : > { %1404 = vmatpush.msra.mxu3 %v4847_v63  ;;  %1208 = vmatpush.msra.mxu0 %v4847_v63 }
 0x29f   : > { %1263 = vmatpush.msra.mxu1 %v1262_v25  ;;  %1358 = vmatpush.msra.mxu2 %v4860_v6  ;;  %v1314_v25 = vand.u32 4294901760, %v4931_v61 }
 0x2a0   : > { %1406 = vmatpush.msra.mxu3 %v4862_v7  ;;  %1210 = vmatpush.msra.mxu0 %v4862_v7 }
 0x2a1   : > { %1269 = vmatpush.msra.mxu1 %v1268_v10  ;;  %1361 = vmatpush.msra.mxu2 %v4872_v12  ;;  %v4947_v10 = vsub.f32 %v1131_v54, %v4936_v62  ;;  %v1189_v54 = vld [vmem:[#allocation6 + $0x3e0] sm:$0xff] }
 0x2a2   : > { %1408 = vmatpush.msra.mxu3 %v4876_v13  ;;  %1212 = vmatpush.msra.mxu0 %v4876_v13  ;;  %v4975_v57 = vand.u32 4294901760, %v1189_v54 }
 0x2a3   : > { %1275 = vmatpush.msra.mxu1 %v1274_v28  ;;  %1364 = vmatpush.msra.mxu2 %v4887_v14  ;;  %v1315_v28 = vsub.f32 %v4931_v61, %v1314_v25 }
 0x2a4   : > { %1410 = vmatpush.msra.mxu3 %v4882_v35  ;;  %1214 = vmatpush.msra.mxu0 %v4882_v35 }
 0x2a5   : > { %1281 = vmatpush.msra.mxu1 %v1280_v16  ;;  %1367 = vmatpush.msra.mxu2 %v4894_v17  ;;  %v1320_v16 = vand.u32 4294901760, %v4947_v10  ;;  %v1316_v9 = vand.u32 4294901760, %v1315_v28 }
 0x2a6   : > { %1412 = vmatpush.msra.mxu3 %v4896_v20  ;;  %1216 = vmatpush.msra.mxu0 %v4896_v20 }
 0x2a7   : > { %1287 = vmatpush.msra.mxu1 %v1286_v23  ;;  %1370 = vmatpush.msra.mxu2 %v4904_v30  ;;  %v1191_v23 = vld [vmem:[#allocation6 + $0x3f0] sm:$0xff]  ;;  %v1321_v34 = vsub.f32 %v4947_v10, %v1320_v16 }
 0x2a8   : > { %1414 = vmatpush.msra.mxu3 %v4906_v52  ;;  %1218 = vmatpush.msra.mxu0 %v4906_v52  ;;  %v4967_v39 = vand.u32 4294901760, %v1191_v23 }
 0x2a9   : > { %1293 = vmatpush.msra.mxu1 %v1292_v53  ;;  %1373 = vmatpush.msra.mxu2 %v4919_v42  ;;  %v1327_v53 = vsub.f32 %v4954_v31, %v1326_v1 }
 0x2aa   : > { %1416 = vmatpush.msra.mxu3 %v4921_v27  ;;  %1220 = vmatpush.msra.mxu0 %v4921_v27  ;;  %v4978_v2 = vsub.f32 %v1191_v23, %v4967_v39 }
 0x2ab   : > { %1299 = vmatpush.msra.mxu1 %v1298_v19  ;;  %1376 = vmatpush.msra.mxu2 %v4931_v61  ;;  %v1322_v19 = vand.u32 4294901760, %v1321_v34 }
 0x2ac   : > { %1418 = vmatpush.msra.mxu3 %v4936_v62  ;;  %1222 = vmatpush.msra.mxu0 %v4936_v62  ;;  %v1577_v40 = vand.u32 4294901760, %v4978_v2 }
 0x2ad   : > { %1305 = vmatpush.msra.mxu1 %v1304_v3  ;;  %1379 = vmatpush.msra.mxu2 %v4947_v10  ;;  %v1328_v3 = vand.u32 4294901760, %v1327_v53 }
 0x2ae   : > { %1420 = vmatpush.msra.mxu3 %v4942_v8  ;;  %1224 = vmatpush.msra.mxu0 %v4942_v8  ;;  %v1578_v41 = vsub.f32 %v4978_v2, %v1577_v40 }
 0x2af   : > { %1311 = vmatpush.msra.mxu1 %v1310_v24  ;;  %1382 = vmatpush.msra.mxu2 %v4954_v31  ;;  %v4987_v24 = vsub.f32 %v1189_v54, %v4975_v57 }
 0x2b0   : > { %1431 = vmatpush.msrb.mxu0 %v1236_v18  ;;  %v4984_v18 = vand.u32 4294901760, %v1187_v4 }
 0x2b1   : > { %1317 = vmatpush.msra.mxu1 %v1316_v9  ;;  %1535 = vmatpush.msrb.mxu2 %v4967_v39  ;;  %v1185_v9 = vld [vmem:[#allocation6 + $0x3c0] sm:$0xff] }
 0x2b2   : > { %1435 = vmatpush.msrb.mxu0 %v1242_v33  ;;  %v1583_v33 = vand.u32 4294901760, %v4987_v24  ;;  %v5000_v53 = vsub.f32 %v1187_v4, %v4984_v18 }
 0x2b3   : > { %1323 = vmatpush.msra.mxu1 %v1322_v19  ;;  %1537 = vmatpush.msrb.mxu2 %v4975_v57  ;;  %v1579_v19 = vand.u32 4294901760, %v1578_v41 }
 0x2b4   : > { %1439 = vmatpush.msrb.mxu0 %v1248_v48 }
 0x2b5   : > { %1329 = vmatpush.msra.mxu1 %v1328_v3  ;;  %1539 = vmatpush.msrb.mxu2 %v4984_v18  ;;  %v1584_v3 = vsub.f32 %v4987_v24, %v1583_v33 }
 0x2b6   : > { %1443 = vmatpush.msrb.mxu0 %v1254_v55  ;;  %v1181_v55 = vld [vmem:[#allocation6 + $0x3a0] sm:$0xff]  ;;  %1580 = vmatpush.msrb.mxu3 %v1579_v19 }
 0x2b7   : > { %1498 = vmatpush.msrb.mxu1 %v4778_v26  ;;  %v1589_v26 = vand.u32 4294901760, %v5000_v53  ;;  %v1585_v4 = vand.u32 4294901760, %v1584_v3  ;;  %v5052_v3 = vand.u32 4294901760, %v1177_v45 }
 0x2b8   : > { %1447 = vmatpush.msrb.mxu0 %v1260_v60 }
 0x2b9   : > { %1500 = vmatpush.msrb.mxu1 %v4783_v29  ;;  %v1179_v29 = vld [vmem:[#allocation6 + $0x390] sm:$0xff]  ;;  %1586 = vmatpush.msrb.mxu3 %v1585_v4  ;;  %v1590_v56 = vsub.f32 %v5000_v53, %v1589_v26 }
 0x2ba   : > { %1451 = vmatpush.msrb.mxu0 %v1266_v21  ;;  %v5035_v41 = vand.u32 4294901760, %v1179_v29 }
 0x2bb   : > { %1502 = vmatpush.msrb.mxu1 %v4792_v43 }
 0x2bc   : > { %1455 = vmatpush.msrb.mxu0 %v1272_v5  ;;  %v5055_v50 = vsub.f32 %v1179_v29, %v5035_v41  ;;  %v1175_v5 = vld [vmem:[#allocation6 + $0x370] sm:$0xff] }
 0x2bd   : > { %1504 = vmatpush.msrb.mxu1 %v4804_v46 }
 0x2be   : > { %1459 = vmatpush.msrb.mxu0 %v1278_v0  ;;  %v7072_v6 = vand.u32 4294901760, %v5055_v50  ;;  %v5071_v0 = vand.u32 4294901760, %v1175_v5 }
 0x2bf   : > { %1506 = vmatpush.msrb.mxu1 %v4817_v51 }
 0x2c0   : > { %1463 = vmatpush.msrb.mxu0 %v1284_v36  ;;  %v1614_v12 = vsub.f32 %v5055_v50, %v7072_v6 }
 0x2c1   : > { %1508 = vmatpush.msrb.mxu1 %v4825_v38 }
 0x2c2   : > { %1467 = vmatpush.msrb.mxu0 %v1290_v22  ;;  %v1615_v14 = vand.u32 4294901760, %v1614_v12 }
 0x2c3   : > { %1510 = vmatpush.msrb.mxu1 %v4838_v59  ;;  %v5089_v59 = vsub.f32 %v1177_v45, %v5052_v3 }
 0x2c4   : > { %1471 = vmatpush.msrb.mxu0 %v1296_v37  ;;  %v1169_v37 = vld [vmem:[#allocation6 + $0x340] sm:$0xff] }
 0x2c5   : > { %1512 = vmatpush.msrb.mxu1 %v4847_v63  ;;  %v5098_v63 = vsub.f32 %v1175_v5, %v5071_v0  ;;  %v7071_v17 = vand.u32 4294901760, %v5089_v59  ;;  %v5140_v12 = vand.u32 4294901760, %v1169_v37 }
 0x2c6   : > { %1475 = vmatpush.msrb.mxu0 %v1302_v47 }
 0x2c7   : > { %1514 = vmatpush.msrb.mxu1 %v4862_v7  ;;  %v1620_v30 = vsub.f32 %v5089_v59, %v7071_v17 }
 0x2c8   : > { %1479 = vmatpush.msrb.mxu0 %v1308_v58 }
 0x2c9   : > { %1516 = vmatpush.msrb.mxu1 %v4876_v13 }
 0x2ca   : > { %1483 = vmatpush.msrb.mxu0 %v1314_v25 }
 0x2cb   : > { %1518 = vmatpush.msrb.mxu1 %v4882_v35 }
 0x2cc   : > { %1487 = vmatpush.msrb.mxu0 %v1320_v16 }
 0x2cd   : > { %1520 = vmatpush.msrb.mxu1 %v4896_v20 }
 0x2ce   : > { %1491 = vmatpush.msrb.mxu0 %v1326_v1 }
 0x2cf   : > { %1522 = vmatpush.msrb.mxu1 %v4906_v52 }
 0x2d1   : > { %1524 = vmatpush.msrb.mxu1 %v4921_v27 }
 0x2d3   : > { %1526 = vmatpush.msrb.mxu1 %v4936_v62  ;;  %v1161_v62 = vld [vmem:[#allocation6 + $0x300] sm:$0xff] }
 0x2d5   : > { %1528 = vmatpush.msrb.mxu1 %v4942_v8 }
 0x2f7   : > { %v927_v11 = vpop.xlane.xlu1 %926 }
 0x2f8   : > { %v4093_v15 = vmul.f32 -2.0, %v927_v11 }
 0x2fa   : > { %v943_v32 = vmul.f32 1.442695, %v4093_v15 }
 0x2fc   : > { %4185 = vpow2.f32 %v943_v32  ;;  %v4996_v32 = vand.u32 4294901760, %v1185_v9 }
 0x2fe   : > { %v924_v11 = vpop.xlane.xlu2 %923  ;;  %1541 = vmatpush.msrb.mxu2 %v4996_v32  ;;  %v5015_v49 = vsub.f32 %v1185_v9, %v4996_v32 }
 0x2ff   : > { %v4092_v28 = vmul.f32 -2.0, %v924_v11  ;;  %v921_v15 = vpop.xlane.xlu0 %920  ;;  %v5008_v11 = vand.u32 4294901760, %v1183_v44 }
 0x300   : > { %v4091_v23 = vmul.f32 -2.0, %v921_v15  ;;  %v5020_v15 = vand.u32 4294901760, %v1181_v55  ;;  %v7062_v60 = vand.u32 4294901760, %v5015_v49 }
 0x301   : > { %v941_v34 = vmul.f32 1.442695, %v4092_v28  ;;  %1543 = vmatpush.msrb.mxu2 %v5008_v11 }
 0x302   : > { %v4186_v48 = vpop.eup %4185  ;;  %v939_v54 = vmul.f32 1.442695, %v4091_v23  ;;  %v5023_v23 = vsub.f32 %v1183_v44, %v5008_v11  ;;  %v5039_v43 = vsub.f32 %v1181_v55, %v5020_v15  ;;  %v1591_v44 = vand.u32 4294901760, %v1590_v56 }
 0x303   : > { %v5010_v28 = vadd.f32 1.0, %v4186_v48  ;;  %4187 = vpow2.f32 %v941_v34  ;;  %1545 = vmatpush.msrb.mxu2 %v5020_v15  ;;  %v1596_v48 = vsub.f32 %v5015_v49, %v7062_v60 }
 0x304   : > { %4189 = vpow2.f32 %v939_v54  ;;  %v7061_v9 = vand.u32 4294901760, %v5023_v23  ;;  %v7073_v19 = vand.u32 4294901760, %v5039_v43  ;;  %1592 = vmatpush.msrb.mxu3 %v1591_v44  ;;  %v1173_v44 = vld [vmem:[#allocation6 + $0x360] sm:$0xff] }
 0x305   : > { %4191 = vrcp.f32 %v5010_v28  ;;  %1547 = vmatpush.msrb.mxu2 %v5035_v41  ;;  %v990_v36 = vand.u32 2147483647, %v5010_v28  ;;  %v5095_v22 = vand.u32 4294901760, %v1173_v44  ;;  %vm986_vm13 = vweird.f32 %v5010_v28 }
 0x306   : > { %v1602_v54 = vsub.f32 %v5023_v23, %v7061_v9  ;;  %v1608_v29 = vsub.f32 %v5039_v43, %v7073_v19 }
 0x307   : > { %v930_v34 = vpop.xlane.xlu0 %929  ;;  %1549 = vmatpush.msrb.mxu2 %v5052_v3  ;;  %vm5129_vm15 = vcmp.eq.f32.partialorder %v990_v36, 8.507059e+37 }
 0x308   : > { %v4094_v21 = vmul.f32 -2.0, %v930_v34  ;;  %v1597_v34 = vand.u32 4294901760, %v1596_v48  ;;  %v1603_v9 = vand.u32 4294901760, %v1602_v54  ;;  %v992_v48 = vand.u32 2147483648, %v5010_v28 }
 0x309   : > { %v4188_v46 = vpop.eup %4187  ;;  %1551 = vmatpush.msrb.mxu2 %v5071_v0  ;;  %v1609_v54 = vand.u32 4294901760, %v1608_v29 }
 0x30a   : > { %v4190_v55 = vpop.eup %4189  ;;  %v5059_v4 = vadd.f32 1.0, %v4188_v46  ;;  %v945_v56 = vmul.f32 1.442695, %v4094_v21  ;;  %1598 = vmatpush.msrb.mxu3 %v1597_v34 }
 0x30b   : > { %v5061_v60 = vpop.eup %4191  ;;  %v5063_v51 = vadd.f32 1.0, %v4190_v55  ;;  %v5110_v55 = vor.u32 1.1754944e-38, %v992_v48  ;;  %1553 = vmatpush.msrb.mxu2 %v5095_v22 }
 0x30c   : > { %v982_v21 = vmul.f32 %v5061_v60, %v5010_v28  ;;  %4193 = vrcp.f32 %v5059_v4  ;;  %1604 = vmatpush.msrb.mxu3 %v1603_v9  ;;  %v1171_v9 = vld [vmem:[#allocation6 + $0x350] sm:$0xff]  ;;  %vm987_vm14 = vweird.f32 %v5061_v60  ;;  %vm971_vm0 = vweird.f32 %v5059_v4 }
 0x30d   : > { %4195 = vrcp.f32 %v5063_v51  ;;  %v5122_v47 = vand.u32 4294901760, %v1171_v9  ;;  %v975_v58 = vand.u32 2147483647, %v5059_v4  ;;  %vm956_vm1 = vweird.f32 %v5063_v51  ;;  %vm5161_vm2 = vmor %vm986_vm13, %vm987_vm14 }
 0x30e   : > { %v983_v38 = vsub.f32 1.0, %v982_v21  ;;  %4197 = vpow2.f32 %v945_v56  ;;  %1610 = vmatpush.msrb.mxu3 %v1609_v54  ;;  %v7064_v56 = vand.u32 4294901760, %v5098_v63  ;;  %v5125_v21 = vsub.f32 %v1173_v44, %v5095_v22 }
 0x30f   : > { %1555 = vmatpush.msrb.mxu2 %v5122_v47  ;;  %v960_v20 = vand.u32 2147483647, %v5063_v51  ;;  %vm5200_vm5 = vcmp.eq.f32.partialorder %v975_v58, 8.507059e+37 }
 0x310   : > { %v984_v45 = vmul.f32 %v5061_v60, %v983_v38  ;;  %1616 = vmatpush.msrb.mxu3 %v1615_v14  ;;  %v1167_v38 = vld [vmem:[#allocation6 + $0x330] sm:$0xff]  ;;  %v1626_v44 = vsub.f32 %v5098_v63, %v7064_v56  ;;  %v1621_v14 = vand.u32 4294901760, %v1620_v30  ;;  %v7063_v61 = vand.u32 4294901760, %v5125_v21 }
 0x311   : > { %v5151_v35 = vand.u32 4294901760, %v1167_v38  ;;  %1557 = vmatpush.msrb.mxu2 %v5140_v12  ;;  %vm5204_vm6 = vcmp.eq.f32.partialorder %v960_v20, 8.507059e+37 }
 0x312   : > { %v5100_v46 = vpop.eup %4193  ;;  %v985_v42 = vadd.f32 %v5061_v60, %v984_v45  ;;  %v1165_v45 = vld [vmem:[#allocation6 + $0x320] sm:$0xff]  ;;  %1622 = vmatpush.msrb.mxu3 %v1621_v14  ;;  %v1627_v30 = vand.u32 4294901760, %v1626_v44  ;;  %v5169_v44 = vsub.f32 %v1171_v9, %v5122_v47  ;;  %v1163_v14 = vld [vmem:[#allocation6 + $0x310] sm:$0xff]  ;;  %v1632_v52 = vsub.f32 %v5125_v21, %v7063_v61 }
 0x313   : > { %v5107_v7 = vpop.eup %4195  ;;  %v967_v5 = vmul.f32 %v5100_v46, %v5059_v4  ;;  %vm972_vm3 = vweird.f32 %v5100_v46  ;;  %1559 = vmatpush.msrb.mxu2 %v5151_v35  ;;  %v5184_v9 = vand.u32 4294901760, %v1165_v45  ;;  %v5198_v25 = vand.u32 4294901760, %v1163_v14 }
 0x314   : > { %v4198_v34 = vpop.eup %4197  ;;  %v952_v29 = vmul.f32 %v5107_v7, %v5063_v51  ;;  %v989_v28 = vsel %vm5161_vm2, %v5061_v60, %v985_v42  ;;  %1628 = vmatpush.msrb.mxu3 %v1627_v30  ;;  %vm957_vm4 = vweird.f32 %v5107_v7  ;;  %v7066_v10 = vand.u32 4294901760, %v5169_v44  ;;  %vm5219_vm7 = vmor %vm971_vm0, %vm972_vm3 }
 0x315   : > { %v968_v48 = vsub.f32 1.0, %v967_v5  ;;  %v5134_v54 = vadd.f32 1.0, %v4198_v34  ;;  %v977_v5 = vand.u32 2147483648, %v5059_v4  ;;  %v5191_v60 = vsub.f32 %v1167_v38, %v5151_v35  ;;  %1561 = vmatpush.msrb.mxu2 %v5184_v9  ;;  %vm5230_vm8 = vmor %vm956_vm1, %vm957_vm4 }
 0x316   : > { %v953_v36 = vsub.f32 1.0, %v952_v29  ;;  %v1633_v30 = vand.u32 4294901760, %v1632_v52  ;;  %v1638_v31 = vsub.f32 %v5169_v44, %v7066_v10  ;;  %v994_v1 = vsel %vm5129_vm15, %v5110_v55, %v989_v28  ;;  %v4211_v10 = vld [vmem:[%s4497_s12 + $0x20] sm:$0xff] }
 0x317   : > { %4199 = vrcp.f32 %v5134_v54  ;;  %v969_v34 = vmul.f32 %v5100_v46, %v968_v48  ;;  %v962_v48 = vand.u32 2147483648, %v5063_v51  ;;  %v978_v56 = vor.u32 1.1754944e-38, %v977_v5  ;;  %1563 = vmatpush.msrb.mxu2 %v5198_v25 }
 0x318   : > { %v954_v29 = vmul.f32 %v5107_v7, %v953_v36  ;;  %v5172_v36 = vsub.f32 %v1169_v37, %v5140_v12  ;;  %1634 = vmatpush.msrb.mxu3 %v1633_v30  ;;  %v1639_v55 = vand.u32 4294901760, %v1638_v31  ;;  %v7070_v20 = vand.u32 4294901760, %v5191_v60 }
 0x319   : > { %v970_v37 = vadd.f32 %v5100_v46, %v969_v34  ;;  %v963_v5 = vor.u32 1.1754944e-38, %v962_v48  ;;  %v5240_v48 = vsub.f32 %v1165_v45, %v5184_v9  ;;  %v1007_v30 = vand.u32 2147483648, %v5134_v54 }
 0x31a   : > { %v7065_v16 = vand.u32 4294901760, %v5172_v36  ;;  %v955_v42 = vadd.f32 %v5107_v7, %v954_v29  ;;  %v1005_v29 = vand.u32 2147483647, %v5134_v54  ;;  %1640 = vmatpush.msrb.mxu3 %v1639_v55  ;;  %v1650_v8 = vsub.f32 %v5191_v60, %v7070_v20 }
 0x31b   : > { %v974_v51 = vsel %vm5219_vm7, %v5100_v46, %v970_v37  ;;  %v7069_v45 = vand.u32 4294901760, %v5240_v48  ;;  %v5256_v58 = vmul.f32 %v4211_v10, %v994_v1  ;;  %vm1001_vm10 = vweird.f32 %v5134_v54 }
 0x31c   : > { %v1644_v13 = vsub.f32 %v5172_v36, %v7065_v16  ;;  %v959_v28 = vsel %vm5230_vm8, %v5107_v7, %v955_v42  ;;  %v5253_v16 = vand.u32 4294901760, %v1161_v62  ;;  %v5259_v7 = vsub.f32 %v1163_v14, %v5198_v25 }
 0x31d   : > { %v4200_v61 = vpop.eup %4199  ;;  %7190 = vst [vmem:[#allocation12_spill] sm:$0xff] %v5256_v58  ;;  %v964_v37 = vsel %vm5204_vm6, %v963_v5, %v959_v28  ;;  %v1651_v42 = vand.u32 4294901760, %v1650_v8  ;;  %v979_v14 = vsel %vm5200_vm5, %v978_v56, %v974_v51  ;;  %vm1006_vm12 = vcmp.eq.f32.partialorder %v1005_v29, 8.507059e+37  ;;  %v4212_v56 = vld [vmem:[%s4497_s12] sm:$0xff]  ;;  %v4218_v5 = vld [vmem:[%s4497_s12 + $0x38] sm:$0xff] }
 0x31e   : > { %v997_v34 = vmul.f32 %v4200_v61, %v5134_v54  ;;  %v1645_v31 = vand.u32 4294901760, %v1644_v13  ;;  %vm1002_vm9 = vweird.f32 %v4200_v61  ;;  %1565 = vmatpush.msrb.mxu2 %v5253_v16  ;;  %v5268_v10 = vsub.f32 %v1161_v62, %v5253_v16  ;;  %v4213_v54 = vld [vmem:[%s4497_s12 + $0x8] sm:$0xff] }
 0x31f   : > { %v7068_v38 = vand.u32 4294901760, %v5259_v7  ;;  %vm5274_vm11 = vmor %vm1001_vm10, %vm1002_vm9  ;;  %v1008_v55 = vor.u32 1.1754944e-38, %v1007_v30  ;;  %v5280_v27 = vmul.f32 %v4212_v56, %v964_v37  ;;  %v5283_v51 = vmul.f32 %v4213_v54, %v964_v37 }
 0x320   : > { %v998_v52 = vsub.f32 1.0, %v997_v34  ;;  %1646 = vmatpush.msrb.mxu3 %v1645_v31  ;;  %v1656_v34 = vsub.f32 %v5240_v48, %v7069_v45  ;;  %v7067_v13 = vand.u32 4294901760, %v5268_v10  ;;  %v4215_v31 = vld [vmem:[%s4497_s12 + $0x10] sm:$0xff] }
 0x321   : > { %7193 = vst [vmem:[#allocation13_spill] sm:$0xff] %v5280_v27  ;;  %v1662_v29 = vsub.f32 %v5259_v7, %v7068_v38  ;;  %v5294_v8 = vmul.f32 %v4215_v31, %v979_v14 }
 0x322   : > { %v999_v46 = vmul.f32 %v4200_v61, %v998_v52  ;;  %1652 = vmatpush.msrb.mxu3 %v1651_v42  ;;  %v1657_v62 = vand.u32 4294901760, %v1656_v34  ;;  %7194 = vst [vmem:[#allocation14_spill] sm:$0xff] %v5283_v51  ;;  %v4214_v52 = vld [vmem:[%s4497_s12 + $0x28] sm:$0xff]  ;;  %v1668_v37 = vsub.f32 %v5268_v10, %v7067_v13  ;;  %v4216_v42 = vld [vmem:[%s4497_s12 + $0x18] sm:$0xff] }
 0x323   : > { %v5291_v30 = vmul.f32 %v4214_v52, %v994_v1  ;;  %7196 = vst [vmem:[#allocation16_spill] sm:$0xff] %v5294_v8  ;;  %v5300_v34 = vmul.f32 %v4216_v42, %v979_v14  ;;  %v1663_v1 = vand.u32 4294901760, %v1662_v29  ;;  %v1046_v52 = vmax.f32 %v5280_v27, %v5256_v58  ;;  %v1172_v58 = vld [vmem:[#allocation6 + $0x358] sm:$0xff] }
 0x324   : > { %v1000_v4 = vadd.f32 %v4200_v61, %v999_v46  ;;  %1658 = vmatpush.msrb.mxu3 %v1657_v62  ;;  %v1669_v54 = vand.u32 4294901760, %v1668_v37 }
 0x325   : > { %7195 = vst [vmem:[#allocation15_spill] sm:$0xff] %v5291_v30  ;;  %v1055_v62 = vmax.f32 %v5283_v51, %v5291_v30 }
 0x326   : > { %v1004_v28 = vsel %vm5274_vm11, %v4200_v61, %v1000_v4  ;;  %7197 = vst [vmem:[#allocation17_spill] sm:$0xff] %v5300_v34  ;;  %v4217_v61 = vld [vmem:[%s4497_s12 + $0x30] sm:$0xff]  ;;  %1664 = vmatpush.msrb.mxu3 %v1663_v1  ;;  %s3993_s12 = scalar_lea.hbm %s7060_s5, %s4103_s24 }
 0x327   : > { %v1009_v46 = vsel %vm1006_vm12, %v1008_v55, %v1004_v28  ;;  %s3996_s30 = sshll.u32 %s3993_s12, 4  ;;  %s3997_s30 = int_to_ptr.hbm [resolvable:$true] %s3996_s30 }
 0x328   : > { %v5303_v4 = vmul.f32 %v4217_v61, %v1009_v46  ;;  %v5306_v56 = vmul.f32 %v4218_v5, %v1009_v46  ;;  %1670 = vmatpush.msrb.mxu3 %v1669_v54  ;;  %s4293_s9 = sshra.s32 %s3997_s30, 4  ;;  %s4294_s9 = int_to_ptr.hbm [resolvable:$true] %s4293_s9 }
 0x329   : > { %s4295_s10 = scalar_lea.hbm %s4294_s9, 64  ;;  %p4300_p11 = scmp.lt.s32.totalorder %s4294_s9, %s7060_s5 }
 0x32a   : > { %7198 = vst [vmem:[#allocation18_spill] sm:$0xff] %v5303_v4  ;;  %v1047_v55 = vmax.f32 %v5294_v8, %v5303_v4  ;;  %v1056_v14 = vmax.f32 %v5300_v34, %v5306_v56  ;;  %v1180_v34 = vld [vmem:[#allocation6 + $0x398] sm:$0xff]  ;;  %p4296_p1 = scmp.ne.s32.totalorder %s4294_s9, %s4295_s10  ;;  %p4301_p9 = scmp.lt.s32.totalorder %s4299_s6, %s4295_s10 }
 0x32b   : > { %7199 = vst [vmem:[#allocation19_spill] sm:$0xff] %v5306_v56 }
 0x32c   : > { %v1048_v28 = vmax.f32 %v1046_v52, %v1047_v55  ;;  %v1057_v31 = vmax.f32 %v1055_v62, %v1056_v14  ;;  %p4297_p4 = pnand %p4296_p1, %p4461_p3  ;;  %p4302_p2 = por %p4301_p9, %p4300_p11 }
 0x32e   : > { %v1049_v46 = vrot.slane %v1048_v28, 4  ;;  %v1058_v42 = vrot.slane %v1057_v31, 4  ;;  %p4298_p8 = pneg %p4297_p4 }
 0x330   : > { %v1050_v29 = vmax.f32 %v1048_v28, %v1049_v46  ;;  %v1059_v37 = vmax.f32 %v1057_v31, %v1058_v42  ;;  %v1150_v46 = vld [vmem:[#allocation6 + $0x2a8] sm:$0xff]  ;;  %v7209_v42 = vand.u32 4294901760, %v5169_v44  ;;  %p4303_p10 = pnand %p4302_p2, %p4298_p8 }
 0x332   : > { %v1051_v61 = vrot.slane %v1050_v29, 2  ;;  %v1060_v5 = vrot.slane %v1059_v37, 2 }
 0x334   : > { %v1052_v13 = vmax.f32 %v1050_v29, %v1051_v61  ;;  %v1061_v38 = vmax.f32 %v1059_v37, %v1060_v5  ;;  %v5426_v37 = vand.u32 4294901760, %v1150_v46  ;;  %v7210_v61 = vand.u32 4294901760, %v5172_v36 }
 0x336   : > { %v1053_v45 = vrot.slane %v1052_v13, 1  ;;  %v1062_v20 = vrot.slane %v1061_v38, 1 }
 0x338   : > { %v1054_v1 = vmax.f32 %v1052_v13, %v1053_v45  ;;  %v1063_v17 = vmax.f32 %v1061_v38, %v1062_v20 }
 0x33a   : > { %v5316_v6 = vand.u32 4294901760, %v1054_v1  ;;  %v5318_v19 = vand.u32 4294901760, %v1063_v17 }
 0x33c   : > { %1331 = vmatmul.f32.vlgmr.msra.gmra.mxu1 %v5316_v6  ;;  %v5322_v54 = vsub.f32 %v1054_v1, %v5316_v6  ;;  %v5325_v52 = vsub.f32 %v1063_v17, %v5318_v19 }
 0x33d   : > { %1731 = vmatpush.msra.mxu1 %v4967_v39 }
 0x33e   : > { %7200 = vst [vmem:[#allocation20_spill] sm:$0xff] %v5325_v52  ;;  %1385 = vmatmul.f32.vlgmr.msra.gmra.mxu2 %v5322_v54  ;;  %v5330_v55 = vand.u32 4294901760, %v5322_v54  ;;  %v5333_v20 = vand.u32 4294901760, %v5325_v52 }
 0x33f   : > { %1733 = vmatpush.msra.mxu1 %v4975_v57  ;;  %1772 = vmatpush.msra.mxu2 %v1577_v40 }
 0x340   : > { %7201 = vst [vmem:[#allocation21_spill] sm:$0xff] %v5333_v20  ;;  %1424 = vmatmul.f32.vlgmr.msra.gmra.mxu3 %v5330_v55  ;;  %v1228_v17 = vsub.f32 %v5322_v54, %v5330_v55  ;;  %v1569_v45 = vsub.f32 %v5325_v52, %v5333_v20 }
 0x341   : > { %1735 = vmatpush.msra.mxu1 %v4984_v18  ;;  %1776 = vmatpush.msra.mxu2 %v1583_v33  ;;  %v1158_v33 = vld [vmem:[#allocation6 + $0x2e8] sm:$0xff] }
 0x342   : > { %1839 = vmatpush.msra.mxu3 %v4967_v39  ;;  %v5347_v38 = vand.u32 4294901760, %v1228_v17  ;;  %v5356_v40 = vand.u32 4294901760, %v1569_v45  ;;  %v7202_v39 = vand.u32 4294901760, %v5015_v49  ;;  %v7211_v17 = vand.u32 4294901760, %v5191_v60 }
 0x343   : > { %1737 = vmatpush.msra.mxu1 %v4996_v32  ;;  %1780 = vmatpush.msra.mxu2 %v1589_v26  ;;  %v1156_v26 = vld [vmem:[#allocation6 + $0x2d8] sm:$0xff] }
 0x344   : > { %1841 = vmatpush.msra.mxu3 %v4975_v57  ;;  %1230 = vmatmul.f32.vlgmr.msra.gmra.mxu0 %v5347_v38  ;;  %v7203_v57 = vand.u32 4294901760, %v5023_v23  ;;  %v5392_v62 = vand.u32 4294901760, %v1156_v26 }
 0x345   : > { %1530 = vmatmul.f32.vlgmr.msrb.gmra.mxu1 %v5316_v6  ;;  %1678 = vmatpush.msra.mxu0 %v4978_v2  ;;  %v1160_v2 = vld [vmem:[#allocation6 + $0x2f8] sm:$0xff] }
 0x346   : > { %1739 = vmatpush.msra.mxu1 %v5008_v11  ;;  %1784 = vmatpush.msra.mxu2 %v7202_v39  ;;  %v5411_v31 = vsub.f32 %v1156_v26, %v5392_v62 }
 0x347   : > { %1843 = vmatpush.msra.mxu3 %v4984_v18  ;;  %1571 = vmatmul.f32.vlgmr.msrb.gmra.mxu2 %v5356_v40  ;;  %v7204_v18 = vand.u32 4294901760, %v5039_v43 }
 0x348   : > { %1681 = vmatpush.msra.mxu0 %v4987_v24  ;;  %1741 = vmatpush.msra.mxu1 %v5020_v15  ;;  %v5375_v24 = vand.u32 4294901760, %v1160_v2  ;;  %v7084_v5 = vand.u32 4294901760, %v5411_v31 }
 0x349   : > { %1788 = vmatpush.msra.mxu2 %v7203_v57  ;;  %1845 = vmatpush.msra.mxu3 %v4996_v32  ;;  %v7205_v32 = vand.u32 4294901760, %v5055_v50  ;;  %v1144_v57 = vld [vmem:[#allocation6 + $0x278] sm:$0xff] }
 0x34a   : > { %1672 = vmatmul.f32.vlgmr.msrb.gmra.mxu3 %v5318_v19  ;;  %1684 = vmatpush.msra.mxu0 %v5000_v53  ;;  %v5382_v53 = vand.u32 4294901760, %v1158_v33  ;;  %v5390_v13 = vsub.f32 %v1160_v2, %v5375_v24  ;;  %v7212_v2 = vand.u32 4294901760, %v5240_v48  ;;  %v5468_v26 = vand.u32 4294901760, %v1144_v57 }
 0x34b   : > { %1743 = vmatpush.msra.mxu1 %v5035_v41  ;;  %1792 = vmatpush.msra.mxu2 %v7204_v18  ;;  %v1931_v18 = vsub.f32 %v5411_v31, %v7084_v5  ;;  %v1188_v5 = vld [vmem:[#allocation6 + $0x3d8] sm:$0xff] }
 0x34c   : > { %1847 = vmatpush.msra.mxu3 %v5008_v11  ;;  %1687 = vmatpush.msra.mxu0 %v5015_v49  ;;  %v1154_v11 = vld [vmem:[#allocation6 + $0x2c8] sm:$0xff]  ;;  %v7206_v49 = vand.u32 4294901760, %v5089_v59  ;;  %v5400_v14 = vsub.f32 %v1158_v33, %v5382_v53 }
 0x34d   : > { %1745 = vmatpush.msra.mxu1 %v5052_v3  ;;  %1796 = vmatpush.msra.mxu2 %v7205_v32  ;;  %v5402_v28 = vand.u32 4294901760, %v1154_v11 }
 0x34e   : > { %1849 = vmatpush.msra.mxu3 %v5020_v15  ;;  %1493 = vmatmul.f32.vlgmr.msrb.gmra.mxu0 %v5316_v6  ;;  %v1152_v15 = vld [vmem:[#allocation6 + $0x2b8] sm:$0xff] }
 0x34f   : > { %1690 = vmatpush.msra.mxu0 %v5023_v23  ;;  %1747 = vmatpush.msra.mxu1 %v5071_v0  ;;  %v7207_v23 = vand.u32 4294901760, %v5098_v63  ;;  %v5422_v29 = vsub.f32 %v1154_v11, %v5402_v28  ;;  %v7213_v11 = vand.u32 4294901760, %v5259_v7 }
 0x350   : > { %1800 = vmatpush.msra.mxu2 %v7206_v49  ;;  %1851 = vmatpush.msra.mxu3 %v5035_v41  ;;  %v7208_v41 = vand.u32 4294901760, %v5125_v21 }
 0x351   : > { %1693 = vmatpush.msra.mxu0 %v5039_v43  ;;  %1749 = vmatpush.msra.mxu1 %v5095_v22  ;;  %v7088_v43 = vand.u32 4294901760, %v5390_v13  ;;  %v7082_v45 = vand.u32 4294901760, %v5422_v29 }
 0x352   : > { %1804 = vmatpush.msra.mxu2 %v7207_v23  ;;  %1853 = vmatpush.msra.mxu3 %v5052_v3  ;;  %v5413_v3 = vand.u32 4294901760, %v1152_v15  ;;  %v1140_v23 = vld [vmem:[#allocation6 + $0x258] sm:$0xff] }
 0x353   : > { %1696 = vmatpush.msra.mxu0 %v5055_v50  ;;  %1751 = vmatpush.msra.mxu1 %v5122_v47  ;;  %v1148_v50 = vld [vmem:[#allocation6 + $0x298] sm:$0xff]  ;;  %v1937_v49 = vsub.f32 %v5422_v29, %v7082_v45 }
 0x354   : > { %1808 = vmatpush.msra.mxu2 %v7208_v41  ;;  %1855 = vmatpush.msra.mxu3 %v5071_v0  ;;  %v7086_v0 = vand.u32 4294901760, %v5400_v14  ;;  %v5436_v1 = vsub.f32 %v1152_v15, %v5413_v3 }
 0x355   : > { %1699 = vmatpush.msra.mxu0 %v5089_v59  ;;  %1753 = vmatpush.msra.mxu1 %v5140_v12  ;;  %v1146_v59 = vld [vmem:[#allocation6 + $0x288] sm:$0xff] }
 0x356   : > { %1812 = vmatpush.msra.mxu2 %v7209_v42  ;;  %1857 = vmatpush.msra.mxu3 %v5095_v22  ;;  %v1919_v22 = vsub.f32 %v5390_v13, %v7088_v43  ;;  %v5449_v39 = vand.u32 4294901760, %v1146_v59  ;;  %v7081_v33 = vand.u32 4294901760, %v5436_v1  ;;  %v1184_v43 = vld [vmem:[#allocation6 + $0x3b8] sm:$0xff] }
 0x357   : > { %1702 = vmatpush.msra.mxu0 %v5098_v63  ;;  %1755 = vmatpush.msra.mxu1 %v5151_v35  ;;  %v5438_v63 = vand.u32 4294901760, %v1148_v50 }
 0x358   : > { %1816 = vmatpush.msra.mxu2 %v7210_v61  ;;  %1859 = vmatpush.msra.mxu3 %v5122_v47  ;;  %v1925_v47 = vsub.f32 %v5400_v14, %v7086_v0  ;;  %v5477_v15 = vsub.f32 %v1146_v59, %v5449_v39  ;;  %v1138_v59 = vld [vmem:[#allocation6 + $0x248] sm:$0xff]  ;;  %v5495_v61 = vand.u32 4294901760, %v1140_v23 }
 0x359   : > { %1705 = vmatpush.msra.mxu0 %v5125_v21  ;;  %1757 = vmatpush.msra.mxu1 %v5184_v9  ;;  %v5454_v21 = vsub.f32 %v1150_v46, %v5426_v37  ;;  %v5464_v32 = vsub.f32 %v1148_v50, %v5438_v63  ;;  %v1932_v46 = vand.u32 4294901760, %v1931_v18  ;;  %v1943_v50 = vsub.f32 %v5436_v1, %v7081_v33  ;;  %v1186_v0 = vld [vmem:[#allocation6 + $0x3c8] sm:$0xff] }
 0x35a   : > { %1820 = vmatpush.msra.mxu2 %v7211_v17  ;;  %1861 = vmatpush.msra.mxu3 %v5140_v12  ;;  %v1920_v12 = vand.u32 4294901760, %v1919_v22  ;;  %v1938_v22 = vand.u32 4294901760, %v1937_v49  ;;  %v7074_v17 = vand.u32 4294901760, %v5477_v15  ;;  %v1132_v49 = vld [vmem:[#allocation6 + $0x218] sm:$0xff] }
 0x35b   : > { %1708 = vmatpush.msra.mxu0 %v5169_v44  ;;  %1759 = vmatpush.msra.mxu1 %v5198_v25  ;;  %v1142_v44 = vld [vmem:[#allocation6 + $0x268] sm:$0xff]  ;;  %v7075_v42 = vand.u32 4294901760, %v5464_v32 }
 0x35c   : > { %1824 = vmatpush.msra.mxu2 %v7212_v2  ;;  %1863 = vmatpush.msra.mxu3 %v5151_v35  ;;  %v1926_v35 = vand.u32 4294901760, %v1925_v47  ;;  %v5482_v41 = vand.u32 4294901760, %v1142_v44  ;;  %v1136_v47 = vld [vmem:[#allocation6 + $0x238] sm:$0xff]  ;;  %v5507_v2 = vand.u32 4294901760, %v1138_v59 }
 0x35d   : > { %1711 = vmatpush.msra.mxu0 %v5172_v36  ;;  %1761 = vmatpush.msra.mxu1 %v5253_v16  ;;  %v7078_v36 = vand.u32 4294901760, %v5454_v21  ;;  %v1955_v18 = vsub.f32 %v5464_v32, %v7075_v42  ;;  %v5543_v42 = vand.u32 4294901760, %v1132_v49 }
 0x35e   : > { %1828 = vmatpush.msra.mxu2 %v7213_v11  ;;  %1865 = vmatpush.msra.mxu3 %v5184_v9  ;;  %v7214_v9 = vand.u32 4294901760, %v5268_v10  ;;  %v5519_v11 = vand.u32 4294901760, %v1136_v47 }
 0x35f   : > { %1765 = vmatmul.f32.vlgmr.msra.gmra.mxu1 %v5333_v20  ;;  %1714 = vmatpush.msra.mxu0 %v5191_v60  ;;  %v5493_v60 = vsub.f32 %v1144_v57, %v5468_v26  ;;  %v5505_v57 = vsub.f32 %v1142_v44, %v5482_v41  ;;  %v5517_v44 = vsub.f32 %v1140_v23, %v5495_v61 }
 0x360   : > { %1921 = vmatpush.msrb.mxu1 %v1920_v12  ;;  %1832 = vmatpush.msra.mxu2 %v7214_v9  ;;  %v1944_v12 = vand.u32 4294901760, %v1943_v50  ;;  %v5529_v23 = vsub.f32 %v1138_v59, %v5507_v2  ;;  %v5541_v59 = vsub.f32 %v1136_v47, %v5519_v11 }
 0x361   : > { %1867 = vmatpush.msra.mxu3 %v5198_v25  ;;  %1834 = vmatmul.f32.vlgmr.msra.gmra.mxu2 %v5318_v19  ;;  %v1949_v25 = vsub.f32 %v5454_v21, %v7078_v36  ;;  %v5565_v36 = vsub.f32 %v1132_v49, %v5543_v42  ;;  %v1192_v49 = vld [vmem:[#allocation6 + $0x3f8] sm:$0xff] }
 0x362   : > { %1927 = vmatpush.msrb.mxu1 %v1926_v35  ;;  %2019 = vmatpush.msrb.mxu2 %v5390_v13  ;;  %v1961_v35 = vsub.f32 %v5477_v15, %v7074_v17  ;;  %v7079_v17 = vand.u32 4294901760, %v5517_v44  ;;  %v5591_v45 = vand.u32 4294901760, %v1192_v49 }
 0x363   : > { %1717 = vmatpush.msra.mxu0 %v5240_v48  ;;  %1869 = vmatpush.msra.mxu3 %v5253_v16  ;;  %v1134_v48 = vld [vmem:[#allocation6 + $0x228] sm:$0xff]  ;;  %v7076_v16 = vand.u32 4294901760, %v5493_v60  ;;  %v1950_v9 = vand.u32 4294901760, %v1949_v25 }
 0x364   : > { %1871 = vmatmul.f32.vlgmr.msra.gmra.mxu3 %v5318_v19  ;;  %1933 = vmatpush.msrb.mxu1 %v1932_v46  ;;  %v7077_v46 = vand.u32 4294901760, %v5505_v57  ;;  %v5531_v50 = vand.u32 4294901760, %v1134_v48 }
 0x365   : > { %2022 = vmatpush.msrb.mxu2 %v5400_v14  ;;  %2072 = vmatpush.msrb.mxu3 %v5375_v24  ;;  %v1967_v25 = vsub.f32 %v5493_v60, %v7076_v16 }
 0x366   : > { %1720 = vmatpush.msra.mxu0 %v5259_v7  ;;  %1939 = vmatpush.msrb.mxu1 %v1938_v22  ;;  %v1956_v7 = vand.u32 4294901760, %v1955_v18  ;;  %v1130_v22 = vld [vmem:[#allocation6 + $0x208] sm:$0xff]  ;;  %v7080_v18 = vand.u32 4294901760, %v5529_v23  ;;  %v5553_v16 = vsub.f32 %v1134_v48, %v5531_v50 }
 0x367   : > { %2025 = vmatpush.msrb.mxu2 %v5411_v31  ;;  %2074 = vmatpush.msrb.mxu3 %v5382_v53  ;;  %v5555_v47 = vand.u32 4294901760, %v1130_v22 }
 0x368   : > { %1723 = vmatpush.msra.mxu0 %v5268_v10  ;;  %1945 = vmatpush.msrb.mxu1 %v1944_v12  ;;  %v1962_v10 = vand.u32 4294901760, %v1961_v35  ;;  %v1973_v12 = vsub.f32 %v5505_v57, %v7077_v46  ;;  %v1968_v35 = vand.u32 4294901760, %v1967_v25  ;;  %v7083_v46 = vand.u32 4294901760, %v5541_v59 }
 0x369   : > { %1726 = vmatmul.f32.vlgmr.msra.gmra.mxu0 %v5325_v52  ;;  %2028 = vmatpush.msrb.mxu2 %v5422_v29  ;;  %v7085_v25 = vand.u32 4294901760, %v5553_v16  ;;  %v5650_v52 = vand.u32 4294901760, %v1180_v34 }
 0x36a   : > { %1876 = vmatpush.msrb.mxu0 %v5375_v24  ;;  %2076 = vmatpush.msrb.mxu3 %v5392_v62  ;;  %v1974_v48 = vand.u32 4294901760, %v1973_v12  ;;  %v1991_v12 = vsub.f32 %v5541_v59, %v7083_v46 }
 0x36b   : > { %1951 = vmatpush.msrb.mxu1 %v1950_v9  ;;  %2031 = vmatpush.msrb.mxu2 %v5436_v1  ;;  %v1979_v9 = vsub.f32 %v5517_v44, %v7079_v17  ;;  %v5575_v17 = vsub.f32 %v1130_v22, %v5555_v47  ;;  %v1190_v22 = vld [vmem:[#allocation6 + $0x3e8] sm:$0xff]  ;;  %v5674_v51 = vsub.f32 %v1180_v34, %v5650_v52 }
 0x36c   : > { %1878 = vmatpush.msrb.mxu0 %v5382_v53  ;;  %2078 = vmatpush.msrb.mxu3 %v5402_v28  ;;  %v1992_v46 = vand.u32 4294901760, %v1991_v12  ;;  %v5608_v12 = vsub.f32 %v1192_v49, %v5591_v45  ;;  %v5620_v49 = vand.u32 4294901760, %v1186_v0 }
 0x36d   : > { %1957 = vmatpush.msrb.mxu1 %v1956_v7  ;;  %2034 = vmatpush.msrb.mxu2 %v5454_v21  ;;  %v1985_v7 = vsub.f32 %v5529_v23, %v7080_v18  ;;  %7215 = vst [vmem:[#allocation22_spill] sm:$0xff] %v5575_v17  ;;  %v7087_v18 = vand.u32 4294901760, %v5565_v36 }
 0x36e   : > { %1880 = vmatpush.msrb.mxu0 %v5392_v62  ;;  %2080 = vmatpush.msrb.mxu3 %v5413_v3  ;;  %v7099_v30 = vand.u32 4294901760, %v5608_v12 }
 0x36f   : > { %1963 = vmatpush.msrb.mxu1 %v1962_v10  ;;  %2037 = vmatpush.msrb.mxu2 %v5464_v32  ;;  %v1980_v10 = vand.u32 4294901760, %v1979_v9  ;;  %v1986_v33 = vand.u32 4294901760, %v1985_v7  ;;  %v7089_v9 = vand.u32 4294901760, %v5575_v17  ;;  %v5599_v7 = vand.u32 4294901760, %v1190_v22 }
 0x370   : > { %1882 = vmatpush.msrb.mxu0 %v5402_v28  ;;  %2082 = vmatpush.msrb.mxu3 %v5426_v37 }
 0x371   : > { %1969 = vmatpush.msrb.mxu1 %v1968_v35  ;;  %2040 = vmatpush.msrb.mxu2 %v5477_v15  ;;  %v1997_v35 = vsub.f32 %v5553_v16, %v7085_v25 }
 0x372   : > { %1884 = vmatpush.msrb.mxu0 %v5413_v3  ;;  %2084 = vmatpush.msrb.mxu3 %v5438_v63 }
 0x373   : > { %1975 = vmatpush.msrb.mxu1 %v1974_v48  ;;  %2043 = vmatpush.msrb.mxu2 %v5493_v60  ;;  %v2003_v48 = vsub.f32 %v5565_v36, %v7087_v18  ;;  %v1998_v25 = vand.u32 4294901760, %v1997_v35  ;;  %v5612_v18 = vand.u32 4294901760, %v1188_v5  ;;  %v5616_v35 = vsub.f32 %v1190_v22, %v5599_v7 }
 0x374   : > { %1886 = vmatpush.msrb.mxu0 %v5426_v37  ;;  %2086 = vmatpush.msrb.mxu3 %v5449_v39 }
 0x375   : > { %1981 = vmatpush.msrb.mxu1 %v1980_v10  ;;  %2046 = vmatpush.msrb.mxu2 %v5505_v57  ;;  %v2009_v10 = vsub.f32 %v5575_v17, %v7089_v9  ;;  %v1182_v9 = vld [vmem:[#allocation6 + $0x3a8] sm:$0xff]  ;;  %v5629_v22 = vsub.f32 %v1188_v5, %v5612_v18  ;;  %v2260_v5 = vsub.f32 %v5608_v12, %v7099_v30  ;;  %v1176_v30 = vld [vmem:[#allocation6 + $0x378] sm:$0xff] }
 0x376   : > { %1888 = vmatpush.msrb.mxu0 %v5438_v63  ;;  %2088 = vmatpush.msrb.mxu3 %v5468_v26  ;;  %v5676_v8 = vand.u32 4294901760, %v1176_v30 }
 0x377   : > { %1987 = vmatpush.msrb.mxu1 %v1986_v33  ;;  %2049 = vmatpush.msrb.mxu2 %v5517_v44  ;;  %v2004_v33 = vand.u32 4294901760, %v2003_v48  ;;  %v2010_v56 = vand.u32 4294901760, %v2009_v10  ;;  %v5638_v10 = vsub.f32 %v1186_v0, %v5620_v49  ;;  %v1178_v48 = vld [vmem:[#allocation6 + $0x388] sm:$0xff]  ;;  %v2261_v4 = vand.u32 4294901760, %v2260_v5 }
 0x378   : > { %1890 = vmatpush.msrb.mxu0 %v5449_v39  ;;  %2090 = vmatpush.msrb.mxu3 %v5482_v41  ;;  %v5663_v20 = vand.u32 4294901760, %v1178_v48 }
 0x379   : > { %1993 = vmatpush.msrb.mxu1 %v1992_v46  ;;  %2052 = vmatpush.msrb.mxu2 %v5529_v23  ;;  %v5624_v46 = vand.u32 4294901760, %v1184_v43  ;;  %7216 = vst [vmem:[#allocation23_spill] sm:$0xff] %v5638_v10 }
 0x37a   : > { %1892 = vmatpush.msrb.mxu0 %v5468_v26  ;;  %2092 = vmatpush.msrb.mxu3 %v5495_v61  ;;  %v5687_v34 = vsub.f32 %v1178_v48, %v5663_v20  ;;  %v5699_v48 = vsub.f32 %v1176_v30, %v5676_v8 }
 0x37b   : > { %1999 = vmatpush.msrb.mxu1 %v1998_v25  ;;  %2055 = vmatpush.msrb.mxu2 %v5541_v59  ;;  %v5633_v25 = vand.u32 4294901760, %v1182_v9 }
 0x37c   : > { %1894 = vmatpush.msrb.mxu0 %v5482_v41  ;;  %2094 = vmatpush.msrb.mxu3 %v5507_v2 }
 0x37d   : > { %2005 = vmatpush.msrb.mxu1 %v2004_v33  ;;  %2058 = vmatpush.msrb.mxu2 %v5553_v16  ;;  %v5645_v33 = vsub.f32 %v1184_v43, %v5624_v46  ;;  %v5658_v43 = vsub.f32 %v1182_v9, %v5633_v25 }
 0x37e   : > { %1896 = vmatpush.msrb.mxu0 %v5495_v61  ;;  %2096 = vmatpush.msrb.mxu3 %v5519_v11 }
 0x37f   : > { %2011 = vmatpush.msrb.mxu1 %v2010_v56  ;;  %2061 = vmatpush.msrb.mxu2 %v5565_v36  ;;  %7217 = vst [vmem:[#allocation24_spill] sm:$0xff] %v5645_v33  ;;  %v7218_v56 = vand.u32 4294901760, %v5616_v35 }
 0x380   : > { %1898 = vmatpush.msrb.mxu0 %v5507_v2  ;;  %2098 = vmatpush.msrb.mxu3 %v5531_v50  ;;  %7219 = vst [vmem:[#allocation25_spill] sm:$0xff] %v5658_v43 }
 0x381   : > { %2013 = vmatmul.f32.vlgmr.msrb.gmra.mxu1 %v5316_v6  ;;  %2064 = vmatpush.msrb.mxu2 %v5575_v17  ;;  %v2266_v0 = vsub.f32 %v5616_v35, %v7218_v56  ;;  %v1174_v56 = vld [vmem:[#allocation6 + $0x368] sm:$0xff] }
 0x382   : > { %2180 = vmatpush.msra.mxu1 %v5375_v24  ;;  %1900 = vmatpush.msrb.mxu0 %v5519_v11  ;;  %v7220_v24 = vand.u32 4294901760, %v5629_v22  ;;  %v5689_v27 = vand.u32 4294901760, %v1174_v56  ;;  %v1170_v17 = vld [vmem:[#allocation6 + $0x348] sm:$0xff] }
 0x383   : > { %2100 = vmatpush.msrb.mxu3 %v5543_v42  ;;  %2067 = vmatmul.f32.vlgmr.msrb.gmra.mxu2 %v5322_v54  ;;  %v2267_v54 = vand.u32 4294901760, %v2266_v0  ;;  %v7222_v0 = vand.u32 4294901760, %v5645_v33 }
 0x384   : > { %2182 = vmatpush.msra.mxu1 %v5382_v53  ;;  %2217 = vmatpush.msra.mxu2 %v5591_v45  ;;  %v2272_v9 = vsub.f32 %v5629_v22, %v7220_v24  ;;  %v7221_v53 = vand.u32 4294901760, %v5638_v10  ;;  %v5711_v30 = vsub.f32 %v1174_v56, %v5689_v27 }
 0x385   : > { %1902 = vmatpush.msrb.mxu0 %v5531_v50  ;;  %2102 = vmatpush.msrb.mxu3 %v5555_v47  ;;  %v2284_v5 = vsub.f32 %v5645_v33, %v7222_v0  ;;  %v1168_v33 = vld [vmem:[#allocation6 + $0x338] sm:$0xff] }
 0x386   : > { %2106 = vmatmul.f32.vlgmr.msrb.gmra.mxu3 %v5330_v55  ;;  %2184 = vmatpush.msra.mxu1 %v5392_v62  ;;  %v2278_v24 = vsub.f32 %v5638_v10, %v7221_v53  ;;  %v2273_v55 = vand.u32 4294901760, %v2272_v9  ;;  %v5701_v53 = vand.u32 4294901760, %v1172_v58  ;;  %v5713_v62 = vand.u32 4294901760, %v1170_v17  ;;  %v1166_v10 = vld [vmem:[#allocation6 + $0x328] sm:$0xff]  ;;  %v1164_v9 = vld [vmem:[#allocation6 + $0x318] sm:$0xff] }
 0x387   : > { %2219 = vmatpush.msra.mxu2 %v5599_v7  ;;  %2262 = vmatpush.msra.mxu3 %v2261_v4  ;;  %v7223_v4 = vand.u32 4294901760, %v5658_v43 }
 0x388   : > { %1904 = vmatpush.msrb.mxu0 %v5543_v42  ;;  %2186 = vmatpush.msra.mxu1 %v5402_v28  ;;  %v2279_v28 = vand.u32 4294901760, %v2278_v24  ;;  %v5724_v56 = vsub.f32 %v1172_v58, %v5701_v53  ;;  %v5737_v58 = vsub.f32 %v1170_v17, %v5713_v62 }
 0x389   : > { %2221 = vmatpush.msra.mxu2 %v5612_v18  ;;  %2268 = vmatpush.msra.mxu3 %v2267_v54  ;;  %v2290_v0 = vsub.f32 %v5658_v43, %v7223_v4  ;;  %v2285_v54 = vand.u32 4294901760, %v2284_v5  ;;  %v7224_v4 = vand.u32 4294901760, %v5390_v13  ;;  %v5726_v43 = vand.u32 4294901760, %v1168_v33 }
 0x38a   : > { %1906 = vmatpush.msrb.mxu0 %v5555_v47  ;;  %2188 = vmatpush.msra.mxu1 %v5413_v3  ;;  %v7225_v3 = vand.u32 4294901760, %v5674_v51  ;;  %v7226_v13 = vand.u32 4294901760, %v5400_v14  ;;  %v7227_v5 = vand.u32 4294901760, %v5687_v34  ;;  %v7228_v14 = vand.u32 4294901760, %v5411_v31 }
 0x38b   : > { %1912 = vmatmul.f32.vlgmr.msrb.gmra.mxu0 %v5347_v38  ;;  %2223 = vmatpush.msra.mxu2 %v5620_v49  ;;  %v2291_v38 = vand.u32 4294901760, %v2290_v0  ;;  %v7229_v0 = vand.u32 4294901760, %v5699_v48  ;;  %v5750_v17 = vsub.f32 %v1168_v33, %v5726_v43  ;;  %v7230_v31 = vand.u32 4294901760, %v5422_v29 }
 0x38c   : > { %2113 = vmatpush.msra.mxu0 %v7224_v4  ;;  %2274 = vmatpush.msra.mxu3 %v2273_v55  ;;  %v2296_v24 = vsub.f32 %v5674_v51, %v7225_v3  ;;  %v2302_v55 = vsub.f32 %v5687_v34, %v7227_v5  ;;  %v2313_v4 = vand.u32 4294901760, %v5711_v30  ;;  %v5739_v3 = vand.u32 4294901760, %v1166_v10  ;;  %v1162_v5 = vld [vmem:[#allocation6 + $0x308] sm:$0xff] }
 0x38d   : > { %2190 = vmatpush.msra.mxu1 %v5426_v37  ;;  %2225 = vmatpush.msra.mxu2 %v5624_v46  ;;  %v7231_v29 = vand.u32 4294901760, %v5436_v1 }
 0x38e   : > { %2117 = vmatpush.msra.mxu0 %v7226_v13  ;;  %2280 = vmatpush.msra.mxu3 %v2279_v28  ;;  %v2297_v37 = vand.u32 4294901760, %v2296_v24  ;;  %v2308_v28 = vsub.f32 %v5699_v48, %v7229_v0  ;;  %v2319_v13 = vand.u32 4294901760, %v5724_v56  ;;  %v2314_v24 = vsub.f32 %v5711_v30, %v2313_v4 }
 0x38f   : > { %2192 = vmatpush.msra.mxu1 %v5438_v63  ;;  %2227 = vmatpush.msra.mxu2 %v5633_v25  ;;  %v5754_v63 = vand.u32 4294901760, %v1164_v9  ;;  %v5763_v33 = vsub.f32 %v1166_v10, %v5739_v3  ;;  %v2331_v0 = vand.u32 4294901760, %v5750_v17  ;;  %v7232_v10 = vand.u32 4294901760, %v5454_v21 }
 0x390   : > { %2121 = vmatpush.msra.mxu0 %v7228_v14  ;;  %2286 = vmatpush.msra.mxu3 %v2285_v54  ;;  %v2303_v54 = vand.u32 4294901760, %v2302_v55  ;;  %v2325_v14 = vand.u32 4294901760, %v5737_v58  ;;  %v2320_v55 = vsub.f32 %v5724_v56, %v2319_v13  ;;  %v2315_v1 = vand.u32 4294901760, %v2314_v24 }
 0x391   : > { %2194 = vmatpush.msra.mxu1 %v5449_v39  ;;  %2229 = vmatpush.msra.mxu2 %v5650_v52  ;;  %v5767_v39 = vand.u32 4294901760, %v1162_v5 }
 0x392   : > { %2125 = vmatpush.msra.mxu0 %v7230_v31  ;;  %2292 = vmatpush.msra.mxu3 %v2291_v38  ;;  %v2309_v38 = vand.u32 4294901760, %v2308_v28  ;;  %v2337_v28 = vand.u32 4294901760, %v5763_v33  ;;  %v2321_v21 = vand.u32 4294901760, %v2320_v55  ;;  %v2332_v31 = vsub.f32 %v5750_v17, %v2331_v0 }
 0x393   : > { %2196 = vmatpush.msra.mxu1 %v5468_v26  ;;  %2231 = vmatpush.msra.mxu2 %v5663_v20  ;;  %v5778_v26 = vsub.f32 %v1164_v9, %v5754_v63  ;;  %v7233_v9 = vand.u32 4294901760, %v5464_v32  ;;  %v7238_v55 = vand.u32 4294901760, %v5529_v23  ;;  %v7241_v23 = vand.u32 4294901760, %v5553_v16  ;;  %v7245_v16 = vld [vmem:[#allocation22_spill] sm:$0xff] }
 0x394   : > { %2129 = vmatpush.msra.mxu0 %v7231_v29  ;;  %2298 = vmatpush.msra.mxu3 %v2297_v37  ;;  %v2326_v37 = vsub.f32 %v5737_v58, %v2325_v14  ;;  %v2338_v32 = vsub.f32 %v5763_v33, %v2337_v28  ;;  %v2333_v29 = vand.u32 4294901760, %v2332_v31  ;;  %v1092_v31 = vld [vmem:[#allocation6 + $0xe0] sm:$0xff] }
 0x395   : > { %2198 = vmatpush.msra.mxu1 %v5482_v41  ;;  %2233 = vmatpush.msra.mxu2 %v5676_v8  ;;  %v5789_v41 = vsub.f32 %v1162_v5, %v5767_v39 }
 0x396   : > { %2133 = vmatpush.msra.mxu0 %v7232_v10  ;;  %2304 = vmatpush.msra.mxu3 %v2303_v54  ;;  %v7234_v54 = vand.u32 4294901760, %v5477_v15  ;;  %v2327_v5 = vand.u32 4294901760, %v2326_v37  ;;  %v7242_v10 = vand.u32 4294901760, %v5616_v35  ;;  %v7247_v37 = vld [vmem:[#allocation23_spill] sm:$0xff] }
 0x397   : > { %2200 = vmatpush.msra.mxu1 %v5495_v61  ;;  %2235 = vmatpush.msra.mxu2 %v5689_v27  ;;  %v2343_v61 = vand.u32 4294901760, %v5778_v26  ;;  %v2349_v24 = vand.u32 4294901760, %v5789_v41 }
 0x398   : > { %2137 = vmatpush.msra.mxu0 %v7233_v9  ;;  %2310 = vmatpush.msra.mxu3 %v2309_v38  ;;  %v7236_v38 = vand.u32 4294901760, %v5505_v57  ;;  %v7248_v9 = vand.u32 4294901760, %v7247_v37 }
 0x399   : > { %2202 = vmatpush.msra.mxu1 %v5507_v2  ;;  %2237 = vmatpush.msra.mxu2 %v5701_v53  ;;  %v7235_v2 = vand.u32 4294901760, %v5493_v60  ;;  %v2344_v15 = vsub.f32 %v5778_v26, %v2343_v61  ;;  %v2350_v60 = vsub.f32 %v5789_v41, %v2349_v24 }
 0x39a   : > { %2141 = vmatpush.msra.mxu0 %v7234_v54  ;;  %2316 = vmatpush.msra.mxu3 %v2315_v1  ;;  %v7246_v1 = vand.u32 4294901760, %v7245_v16 }
 0x39b   : > { %2204 = vmatpush.msra.mxu1 %v5519_v11  ;;  %2239 = vmatpush.msra.mxu2 %v5713_v62  ;;  %v2339_v11 = vand.u32 4294901760, %v2338_v32  ;;  %v2345_v57 = vand.u32 4294901760, %v2344_v15  ;;  %v7255_v32 = vld [vmem:[#allocation13_spill] sm:$0xff]  ;;  %v1086_v15 = vld [vmem:[#allocation6 + $0xb0] sm:$0xff] }
 0x39c   : > { %2145 = vmatpush.msra.mxu0 %v7235_v2  ;;  %2322 = vmatpush.msra.mxu3 %v2321_v21  ;;  %v7256_v2 = vld [vmem:[#allocation16_spill] sm:$0xff] }
 0x39d   : > { %2206 = vmatpush.msra.mxu1 %v5531_v50  ;;  %2241 = vmatpush.msra.mxu2 %v5726_v43  ;;  %v7237_v50 = vand.u32 4294901760, %v5517_v44  ;;  %v7239_v44 = vand.u32 4294901760, %v5541_v59  ;;  %v7244_v59 = vand.u32 4294901760, %v5629_v22 }
 0x39e   : > { %2149 = vmatpush.msra.mxu0 %v7236_v38  ;;  %2328 = vmatpush.msra.mxu3 %v2327_v5 }
 0x39f   : > { %2208 = vmatpush.msra.mxu1 %v5543_v42  ;;  %2243 = vmatpush.msra.mxu2 %v5739_v3  ;;  %v2351_v42 = vand.u32 4294901760, %v2350_v60 }
 0x3a0   : > { %2153 = vmatpush.msra.mxu0 %v7237_v50  ;;  %2334 = vmatpush.msra.mxu3 %v2333_v29  ;;  %v7257_v29 = vand.u32 4294901760, %v5699_v48  ;;  %v1084_v50 = vld [vmem:[#allocation6 + $0xa0] sm:$0xff] }
 0x3a1   : > { %2210 = vmatpush.msra.mxu1 %v5555_v47  ;;  %2245 = vmatpush.msra.mxu2 %v5754_v63  ;;  %v7240_v47 = vand.u32 4294901760, %v5608_v12 }
 0x3a2   : > { %2157 = vmatpush.msra.mxu0 %v7238_v55  ;;  %2340 = vmatpush.msra.mxu3 %v2339_v11 }
 0x3a3   : > { %2212 = vmatmul.f32.vlgmr.msra.gmra.mxu1 %v5316_v6  ;;  %2247 = vmatpush.msra.mxu2 %v5767_v39 }
 0x3a4   : > { %2413 = vmatpush.msrb.mxu1 %v5591_v45  ;;  %2161 = vmatpush.msra.mxu0 %v7239_v44 }
 0x3a5   : > { %2346 = vmatpush.msra.mxu3 %v2345_v57  ;;  %2253 = vmatmul.f32.vlgmr.msra.gmra.mxu2 %v5356_v40  ;;  %v7243_v40 = vand.u32 4294901760, %v5565_v36  ;;  %v7258_v57 = vld [vmem:[#allocation12_spill] sm:$0xff] }
 0x3a6   : > { %2415 = vmatpush.msrb.mxu1 %v5599_v7  ;;  %2454 = vmatpush.msrb.mxu2 %v7240_v47  ;;  %v5923_v47 = vand.u32 4294901760, %v1084_v50 }
 0x3a7   : > { %2165 = vmatpush.msra.mxu0 %v7241_v23  ;;  %2352 = vmatpush.msra.mxu3 %v2351_v42  ;;  %v7259_v42 = vld [vmem:[#allocation18_spill] sm:$0xff] }
 0x3a8   : > { %2354 = vmatmul.f32.vlgmr.msra.gmra.mxu3 %v5318_v19  ;;  %2417 = vmatpush.msrb.mxu1 %v5612_v18 }
 0x3a9   : > { %2458 = vmatpush.msrb.mxu2 %v7242_v10  ;;  %2521 = vmatpush.msrb.mxu3 %v5591_v45  ;;  %v7249_v45 = vld [vmem:[#allocation24_spill] sm:$0xff] }
 0x3aa   : > { %2169 = vmatpush.msra.mxu0 %v7243_v40  ;;  %2419 = vmatpush.msrb.mxu1 %v5620_v49  ;;  %v7250_v36 = vand.u32 4294901760, %v7249_v45 }
 0x3ab   : > { %2462 = vmatpush.msrb.mxu2 %v7244_v59  ;;  %2523 = vmatpush.msrb.mxu3 %v5599_v7  ;;  %v1094_v7 = vld [vmem:[#allocation6 + $0xf0] sm:$0xff] }
 0x3ac   : > { %2173 = vmatpush.msra.mxu0 %v7246_v1  ;;  %2421 = vmatpush.msrb.mxu1 %v5624_v46  ;;  %v1078_v59 = vld [vmem:[#allocation6 + $0x70] sm:$0xff] }
 0x3ad   : > { %2175 = vmatmul.f32.vlgmr.msra.gmra.mxu0 %v5316_v6  ;;  %2466 = vmatpush.msrb.mxu2 %v7248_v9  ;;  %v7251_v6 = vld [vmem:[#allocation25_spill] sm:$0xff]  ;;  %v1076_v9 = vld [vmem:[#allocation6 + $0x60] sm:$0xff] }
 0x3ae   : > { %2360 = vmatpush.msrb.mxu0 %v5608_v12  ;;  %2525 = vmatpush.msrb.mxu3 %v5612_v18  ;;  %v7252_v21 = vand.u32 4294901760, %v7251_v6  ;;  %v5867_v18 = vand.u32 4294901760, %v1094_v7  ;;  %v7253_v12 = vand.u32 4294901760, %v5674_v51 }
 0x3af   : > { %2423 = vmatpush.msrb.mxu1 %v5633_v25  ;;  %2470 = vmatpush.msrb.mxu2 %v7250_v36  ;;  %v1074_v36 = vld [vmem:[#allocation6 + $0x50] sm:$0xff] }
 0x3b0   : > { %2363 = vmatpush.msrb.mxu0 %v5616_v35  ;;  %2527 = vmatpush.msrb.mxu3 %v5620_v49  ;;  %v1090_v35 = vld [vmem:[#allocation6 + $0xd0] sm:$0xff]  ;;  %v5874_v49 = vand.u32 4294901760, %v1092_v31  ;;  %v5882_v54 = vsub.f32 %v1094_v7, %v5867_v18 }
 0x3b1   : > { %2425 = vmatpush.msrb.mxu1 %v5650_v52  ;;  %2474 = vmatpush.msrb.mxu2 %v7252_v21  ;;  %v5884_v5 = vand.u32 4294901760, %v1090_v35 }
 0x3b2   : > { %2366 = vmatpush.msrb.mxu0 %v5629_v22  ;;  %2529 = vmatpush.msrb.mxu3 %v5624_v46  ;;  %v7254_v22 = vand.u32 4294901760, %v5687_v34  ;;  %v1088_v46 = vld [vmem:[#allocation6 + $0xc0] sm:$0xff]  ;;  %v7131_v11 = vand.u32 4294901760, %v5882_v54 }
 0x3b3   : > { %2427 = vmatpush.msrb.mxu1 %v5663_v20  ;;  %2478 = vmatpush.msrb.mxu2 %v7253_v12  ;;  %v5896_v38 = vand.u32 4294901760, %v1088_v46  ;;  %v5905_v60 = vsub.f32 %v1090_v35, %v5884_v5  ;;  %v1072_v35 = vld [vmem:[#allocation6 + $0x40] sm:$0xff] }
 0x3b4   : > { %2369 = vmatpush.msrb.mxu0 %v7247_v37  ;;  %2531 = vmatpush.msrb.mxu3 %v5633_v25  ;;  %v1019_v25 = vadd.f32 %v7256_v2, %v7255_v32 }
 0x3b5   : > { %2429 = vmatpush.msrb.mxu1 %v5676_v8  ;;  %2482 = vmatpush.msrb.mxu2 %v7254_v22  ;;  %v5993_v22 = vand.u32 4294901760, %v1074_v36 }
 0x3b6   : > { %2372 = vmatpush.msrb.mxu0 %v7249_v45  ;;  %2533 = vmatpush.msrb.mxu3 %v5650_v52  ;;  %v5894_v52 = vsub.f32 %v1092_v31, %v5874_v49  ;;  %v1020_v55 = vadd.f32 %v1019_v25, %v7258_v57  ;;  %v1070_v25 = vld [vmem:[#allocation6 + $0x30] sm:$0xff] }
 0x3b7   : > { %2431 = vmatpush.msrb.mxu1 %v5689_v27  ;;  %2486 = vmatpush.msrb.mxu2 %v7257_v29 }
 0x3b8   : > { %2375 = vmatpush.msrb.mxu0 %v7251_v6  ;;  %2535 = vmatpush.msrb.mxu3 %v5663_v20  ;;  %v5907_v20 = vand.u32 4294901760, %v1086_v15  ;;  %v1021_v44 = vadd.f32 %v1020_v55, %v7259_v42  ;;  %v7260_v6 = vld [vmem:[#allocation21_spill] sm:$0xff] }
 0x3b9   : > { %2433 = vmatpush.msrb.mxu1 %v5701_v53  ;;  %2490 = vmatpush.msrb.mxu2 %v2313_v4  ;;  %v1082_v4 = vld [vmem:[#allocation6 + $0x90] sm:$0xff] }
 0x3ba   : > { %2378 = vmatpush.msrb.mxu0 %v5674_v51  ;;  %2537 = vmatpush.msrb.mxu3 %v5676_v8  ;;  %v7130_v51 = vand.u32 4294901760, %v5894_v52  ;;  %v5917_v8 = vsub.f32 %v1088_v46, %v5896_v38  ;;  %v5932_v23 = vsub.f32 %v1086_v15, %v5907_v20  ;;  %v5934_v10 = vand.u32 4294901760, %v1082_v4 }
 0x3bb   : > { %2435 = vmatpush.msrb.mxu1 %v5713_v62  ;;  %2494 = vmatpush.msrb.mxu2 %v2319_v13  ;;  %v1080_v13 = vld [vmem:[#allocation6 + $0x80] sm:$0xff]  ;;  %v1022_v16 = vrot.slane %v1021_v44, 4 }
 0x3bc   : > { %2381 = vmatpush.msrb.mxu0 %v5687_v34  ;;  %2539 = vmatpush.msrb.mxu3 %v5689_v27  ;;  %v2601_v27 = vsub.f32 %v5882_v54, %v7131_v11  ;;  %v7129_v34 = vand.u32 4294901760, %v5905_v60  ;;  %v5945_v40 = vand.u32 4294901760, %v1080_v13  ;;  %v7126_v1 = vand.u32 4294901760, %v5932_v23 }
 0x3bd   : > { %2437 = vmatpush.msrb.mxu1 %v5726_v43  ;;  %2498 = vmatpush.msrb.mxu2 %v2325_v14  ;;  %v4356_v14 = vmov 32.0   ;;  %v5960_v37 = vsub.f32 %v1082_v4, %v5934_v10 }
 0x3be   : > { %2384 = vmatpush.msrb.mxu0 %v5699_v48  ;;  %2541 = vmatpush.msrb.mxu3 %v5701_v53  ;;  %4201 = vrcp.f32 %v4356_v14  ;;  %v2607_v48 = vsub.f32 %v5894_v52, %v7130_v51  ;;  %v7127_v53 = vand.u32 4294901760, %v5917_v8  ;;  %v5973_v45 = vsub.f32 %v1080_v13, %v5945_v40  ;;  %v1066_v14 = vld [vmem:[#allocation6 + $0x10] sm:$0xff] }
 0x3bf   : > { %2439 = vmatpush.msrb.mxu1 %v5739_v3  ;;  %2502 = vmatpush.msrb.mxu2 %v2331_v0  ;;  %v5951_v0 = vsub.f32 %v1084_v50, %v5923_v47  ;;  %v2625_v31 = vsub.f32 %v5932_v23, %v7126_v1  ;;  %v7121_v12 = vand.u32 4294901760, %v5960_v37  ;;  %v6006_v50 = vand.u32 4294901760, %v1072_v35  ;;  %v1118_v1 = vld [vmem:[#allocation6 + $0x1b0] sm:$0xff] }
 0x3c0   : > { %2387 = vmatpush.msrb.mxu0 %v5711_v30  ;;  %2543 = vmatpush.msrb.mxu3 %v5713_v62  ;;  %v2602_v62 = vand.u32 4294901760, %v2601_v27  ;;  %v2613_v30 = vsub.f32 %v5905_v60, %v7129_v34  ;;  %v7120_v46 = vand.u32 4294901760, %v5973_v45  ;;  %v6016_v13 = vsub.f32 %v1074_v36, %v5993_v22 }
 0x3c1   : > { %2441 = vmatpush.msrb.mxu1 %v5754_v63  ;;  %2506 = vmatpush.msrb.mxu2 %v2337_v28  ;;  %v5965_v28 = vand.u32 4294901760, %v1078_v59  ;;  %v2626_v4 = vand.u32 4294901760, %v2625_v31  ;;  %v6018_v27 = vand.u32 4294901760, %v1070_v25  ;;  %v6042_v31 = vand.u32 4294901760, %v1066_v14 }
 0x3c2   : > { %2390 = vmatpush.msrb.mxu0 %v5724_v56  ;;  %2545 = vmatpush.msrb.mxu3 %v5726_v43  ;;  %v2608_v43 = vand.u32 4294901760, %v2607_v48  ;;  %v2619_v56 = vsub.f32 %v5917_v8, %v7127_v53  ;;  %v2614_v21 = vand.u32 4294901760, %v2613_v30  ;;  %v6138_v51 = vand.u32 4294901760, %v1118_v1 }
 0x3c3   : > { %2443 = vmatpush.msrb.mxu1 %v5767_v39  ;;  %2510 = vmatpush.msrb.mxu2 %v2343_v61  ;;  %v5981_v61 = vand.u32 4294901760, %v1076_v9 }
 0x3c4   : > { %2393 = vmatpush.msrb.mxu0 %v5737_v58  ;;  %2547 = vmatpush.msrb.mxu3 %v5739_v3  ;;  %v5975_v7 = vpop.eup %4201  ;;  %v7125_v58 = vand.u32 4294901760, %v5951_v0  ;;  %v1023_v3 = vadd.f32 %v1022_v16, %v1021_v44  ;;  %v1068_v44 = vld [vmem:[#allocation6 + $0x20] sm:$0xff] }
 0x3c5   : > { %2447 = vmatmul.f32.vlgmr.msrb.gmra.mxu1 %v7260_v6  ;;  %2514 = vmatpush.msrb.mxu2 %v2349_v24  ;;  %v5991_v24 = vsub.f32 %v1078_v59, %v5965_v28  ;;  %v1038_v29 = vmul.f32 32.0, %v5975_v7  ;;  %v6004_v15 = vsub.f32 %v1076_v9, %v5981_v61  ;;  %v6030_v30 = vand.u32 4294901760, %v1068_v44 }
 0x3c6   : > { %2603 = vmatpush.msra.mxu1 %v2602_v62  ;;  %2396 = vmatpush.msrb.mxu0 %v5750_v17  ;;  %v2620_v17 = vand.u32 4294901760, %v2619_v56  ;;  %v1024_v55 = vrot.slane %v1023_v3, 2  ;;  %v6028_v62 = vsub.f32 %v1072_v35, %v6006_v50  ;;  %v7261_v56 = vld [vmem:[#allocation20_spill] sm:$0xff]  ;;  %v7116_v6 = vand.u32 4294901760, %v6016_v13 }
 0x3c7   : > { %2549 = vmatpush.msrb.mxu3 %v5754_v63  ;;  %2516 = vmatmul.f32.vlgmr.msrb.gmra.mxu2 %v5318_v19  ;;  %v2631_v63 = vsub.f32 %v5951_v0, %v7125_v58  ;;  %v1039_v48 = vsub.f32 1.0, %v1038_v29  ;;  %v7117_v16 = vand.u32 4294901760, %v6004_v15  ;;  %vm1042_vm13 = vweird.f32 %v5975_v7 }
 0x3c8   : > { %2609 = vmatpush.msra.mxu1 %v2608_v43  ;;  %2701 = vmatpush.msra.mxu2 %v5882_v54  ;;  %v1064_v43 = vld [vmem:[#allocation6] sm:$0xff] }
 0x3c9   : > { %2399 = vmatpush.msrb.mxu0 %v5763_v33  ;;  %2551 = vmatpush.msrb.mxu3 %v5767_v39  ;;  %v2637_v33 = vsub.f32 %v5960_v37, %v7121_v12  ;;  %v7118_v39 = vand.u32 4294901760, %v5991_v24  ;;  %v2632_v59 = vand.u32 4294901760, %v2631_v63  ;;  %v2655_v35 = vsub.f32 %v6004_v15, %v7117_v16  ;;  %v7262_v63 = vld [vmem:[#allocation14_spill] sm:$0xff]  ;;  %v7266_v16 = vld [vmem:[#allocation15_spill] sm:$0xff] }
 0x3ca   : > { %2553 = vmatmul.f32.vlgmr.msrb.gmra.mxu3 %v5318_v19  ;;  %2615 = vmatpush.msra.mxu1 %v2614_v21  ;;  %v2643_v19 = vsub.f32 %v5973_v45, %v7120_v46  ;;  %v6040_v21 = vsub.f32 %v1070_v25, %v6018_v27  ;;  %v6053_v25 = vsub.f32 %v1068_v44, %v6030_v30  ;;  %v6055_v29 = vand.u32 4294901760, %v1064_v43 }
 0x3cb   : > { %2704 = vmatpush.msra.mxu2 %v5894_v52  ;;  %2754 = vmatpush.msra.mxu3 %v5867_v18  ;;  %v2638_v9 = vand.u32 4294901760, %v2637_v33  ;;  %v2649_v36 = vsub.f32 %v5991_v24, %v7118_v39 }
 0x3cc   : > { %2402 = vmatpush.msrb.mxu0 %v5778_v26  ;;  %2621 = vmatpush.msra.mxu1 %v2620_v17  ;;  %v1025_v26 = vadd.f32 %v1024_v55, %v1023_v3  ;;  %v1040_v3 = vmul.f32 %v5975_v7, %v1039_v48  ;;  %v7119_v17 = vand.u32 4294901760, %v6028_v62  ;;  %v7263_v55 = vld [vmem:[#allocation17_spill] sm:$0xff]  ;;  %v2661_v48 = vsub.f32 %v6016_v13, %v7116_v6 }
 0x3cd   : > { %2707 = vmatpush.msra.mxu2 %v5905_v60  ;;  %2756 = vmatpush.msra.mxu3 %v5874_v49  ;;  %v7123_v44 = vand.u32 4294901760, %v6040_v21  ;;  %v7122_v6 = vand.u32 4294901760, %v6053_v25 }
 0x3ce   : > { %2405 = vmatpush.msrb.mxu0 %v5789_v41  ;;  %2627 = vmatpush.msra.mxu1 %v2626_v4  ;;  %v2644_v41 = vand.u32 4294901760, %v2643_v19  ;;  %v1028_v4 = vadd.f32 %v7263_v55, %v7262_v63  ;;  %v1026_v33 = vrot.slane %v1025_v26, 1  ;;  %v2650_v19 = vand.u32 4294901760, %v2649_v36  ;;  %v1110_v55 = vld [vmem:[#allocation6 + $0x170] sm:$0xff] }
 0x3cf   : > { %2408 = vmatmul.f32.vlgmr.msrb.gmra.mxu0 %v7261_v56  ;;  %2710 = vmatpush.msra.mxu2 %v5917_v8  ;;  %v1041_v56 = vadd.f32 %v5975_v7, %v1040_v3  ;;  %v2667_v36 = vsub.f32 %v6028_v62, %v7119_v17  ;;  %v1126_v3 = vld [vmem:[#allocation6 + $0x1f0] sm:$0xff]  ;;  %v6196_v32 = vand.u32 4294901760, %v1110_v55 }
 0x3d0   : > { %2558 = vmatpush.msra.mxu0 %v5867_v18  ;;  %2758 = vmatpush.msra.mxu3 %v5884_v5  ;;  %v1029_v39 = vadd.f32 %v1028_v4, %v7266_v16  ;;  %v1027_v46 = vadd.f32 %v1026_v33, %v1025_v26  ;;  %v2679_v26 = vsub.f32 %v6053_v25, %v7122_v6  ;;  %v6102_v33 = vand.u32 4294901760, %v1126_v3  ;;  %v1122_v6 = vld [vmem:[#allocation6 + $0x1d0] sm:$0xff] }
 0x3d1   : > { %2633 = vmatpush.msra.mxu1 %v2632_v59  ;;  %2713 = vmatpush.msra.mxu2 %v5932_v23  ;;  %v6067_v59 = vsub.f32 %v1066_v14, %v6042_v31  ;;  %v6079_v14 = vsub.f32 %v1064_v43, %v6055_v29  ;;  %v7267_v43 = vld [vmem:[#allocation19_spill] sm:$0xff]  ;;  %v6095_v4 = vsel %vm1042_vm13, %v5975_v7, %v1041_v56  ;;  %v6124_v58 = vand.u32 4294901760, %v1122_v6 }
 0x3d2   : > { %2560 = vmatpush.msra.mxu0 %v5874_v49  ;;  %2760 = vmatpush.msra.mxu3 %v5896_v38  ;;  %v1030_v12 = vadd.f32 %v1029_v39, %v7267_v43 }
 0x3d3   : > { %2639 = vmatpush.msra.mxu1 %v2638_v9  ;;  %2716 = vmatpush.msra.mxu2 %v5951_v0  ;;  %7264 = vst [vmem:[#allocation22_spill] sm:$0xff] %v6067_v59  ;;  %v2656_v9 = vand.u32 4294901760, %v2655_v35  ;;  %v2673_v35 = vsub.f32 %v6040_v21, %v7123_v44  ;;  %v7124_v17 = vand.u32 4294901760, %v6067_v59  ;;  %v7128_v39 = vand.u32 4294901760, %v6079_v14 }
 0x3d4   : > { %2562 = vmatpush.msra.mxu0 %v5884_v5  ;;  %2762 = vmatpush.msra.mxu3 %v5907_v20  ;;  %7265 = vst [vmem:[#allocation23_spill] sm:$0xff] %v6079_v14  ;;  %v1031_v44 = vrot.slane %v1030_v12, 4 }
 0x3d5   : > { %2645 = vmatpush.msra.mxu1 %v2644_v41  ;;  %2719 = vmatpush.msra.mxu2 %v5960_v37  ;;  %v2662_v41 = vand.u32 4294901760, %v2661_v48  ;;  %v2668_v48 = vand.u32 4294901760, %v2667_v36  ;;  %v2674_v7 = vand.u32 4294901760, %v2673_v35  ;;  %v2685_v56 = vsub.f32 %v6067_v59, %v7124_v17 }
 0x3d6   : > { %2564 = vmatpush.msra.mxu0 %v5896_v38  ;;  %2764 = vmatpush.msra.mxu3 %v5923_v47  ;;  %v2691_v35 = vsub.f32 %v6079_v14, %v7128_v39  ;;  %v6120_v17 = vsub.f32 %v1126_v3, %v6102_v33  ;;  %v1116_v39 = vld [vmem:[#allocation6 + $0x1a0] sm:$0xff] }
 0x3d7   : > { %2651 = vmatpush.msra.mxu1 %v2650_v19  ;;  %2722 = vmatpush.msra.mxu2 %v5973_v45  ;;  %v1124_v19 = vld [vmem:[#allocation6 + $0x1e0] sm:$0xff]  ;;  %v6150_v11 = vand.u32 4294901760, %v1116_v39 }
 0x3d8   : > { %2566 = vmatpush.msra.mxu0 %v5907_v20  ;;  %2766 = vmatpush.msra.mxu3 %v5934_v10  ;;  %v6111_v36 = vand.u32 4294901760, %v1124_v19  ;;  %v2692_v34 = vand.u32 4294901760, %v2691_v35 }
 0x3d9   : > { %2657 = vmatpush.msra.mxu1 %v2656_v9  ;;  %2725 = vmatpush.msra.mxu2 %v5991_v24  ;;  %v1044_v9 = vmul.f32 %v6095_v4, %v1027_v46  ;;  %v1120_v46 = vld [vmem:[#allocation6 + $0x1c0] sm:$0xff]  ;;  %v6178_v16 = vsub.f32 %v1116_v39, %v6150_v11 }
 0x3da   : > { %2568 = vmatpush.msra.mxu0 %v5923_v47  ;;  %2768 = vmatpush.msra.mxu3 %v5945_v40  ;;  %v6130_v53 = vsub.f32 %v1124_v19, %v6111_v36  ;;  %v6134_v3 = vand.u32 4294901760, %v1120_v46  ;;  %v6143_v19 = vsub.f32 %v1122_v6, %v6124_v58  ;;  %v7271_v6 = vand.u32 4294901760, %v6120_v17 }
 0x3db   : > { %2663 = vmatpush.msra.mxu1 %v2662_v41  ;;  %2728 = vmatpush.msra.mxu2 %v6004_v15  ;;  %v2680_v41 = vand.u32 4294901760, %v2679_v26  ;;  %v6127_v26 = vand.u32 4294901760, %v1044_v9  ;;  %7275 = vst [vmem:[#allocation27_spill] sm:$0xff] %v6178_v16 }
 0x3dc   : > { %2570 = vmatpush.msra.mxu0 %v5934_v10  ;;  %2770 = vmatpush.msra.mxu3 %v5965_v28  ;;  %7268 = vst [vmem:[#allocation24_spill] sm:$0xff] %v6143_v19 }
 0x3dd   : > { %2669 = vmatpush.msra.mxu1 %v2668_v48  ;;  %2731 = vmatpush.msra.mxu2 %v6016_v13  ;;  %v2686_v48 = vand.u32 4294901760, %v2685_v56  ;;  %v1032_v56 = vadd.f32 %v1031_v44, %v1030_v12  ;;  %v6155_v12 = vsub.f32 %v1120_v46, %v6134_v3  ;;  %v2942_v44 = vsub.f32 %v6120_v17, %v7271_v6 }
 0x3de   : > { %2572 = vmatpush.msra.mxu0 %v5945_v40  ;;  %2772 = vmatpush.msra.mxu3 %v5981_v61 }
 0x3df   : > { %2675 = vmatpush.msra.mxu1 %v2674_v7  ;;  %2734 = vmatpush.msra.mxu2 %v6028_v62  ;;  %v1114_v7 = vld [vmem:[#allocation6 + $0x190] sm:$0xff]  ;;  %7270 = vst [vmem:[#allocation21_spill] sm:$0xff] %v6155_v12  ;;  %v1033_v35 = vrot.slane %v1032_v56, 2  ;;  %v2943_v42 = vand.u32 4294901760, %v2942_v44 }
 0x3e0   : > { %2574 = vmatpush.msra.mxu0 %v5965_v28  ;;  %2774 = vmatpush.msra.mxu3 %v5993_v22  ;;  %v6167_v46 = vand.u32 4294901760, %v1114_v7 }
 0x3e1   : > { %2681 = vmatpush.msra.mxu1 %v2680_v41  ;;  %2737 = vmatpush.msra.mxu2 %v6040_v21  ;;  %v6147_v41 = vsub.f32 %v1044_v9, %v6127_v26  ;;  %v6162_v9 = vsub.f32 %v1118_v1, %v6138_v51  ;;  %v7274_v1 = vand.u32 4294901760, %v6130_v53  ;;  %v1034_v2 = vadd.f32 %v1033_v35, %v1032_v56  ;;  %v1106_v35 = vld [vmem:[#allocation6 + $0x150] sm:$0xff] }
 0x3e2   : > { %2576 = vmatpush.msra.mxu0 %v5981_v61  ;;  %2776 = vmatpush.msra.mxu3 %v6006_v50  ;;  %v6194_v43 = vsub.f32 %v1114_v7, %v6167_v46  ;;  %v7277_v7 = vand.u32 4294901760, %v6155_v12 }
 0x3e3   : > { %2687 = vmatpush.msra.mxu1 %v2686_v48  ;;  %2740 = vmatpush.msra.mxu2 %v6053_v25  ;;  %7269 = vst [vmem:[#allocation25_spill] sm:$0xff] %v6147_v41  ;;  %v1112_v48 = vld [vmem:[#allocation6 + $0x180] sm:$0xff]  ;;  %v2948_v6 = vsub.f32 %v6130_v53, %v7274_v1 }
 0x3e4   : > { %2578 = vmatpush.msra.mxu0 %v5993_v22  ;;  %2778 = vmatpush.msra.mxu3 %v6018_v27  ;;  %7272 = vst [vmem:[#allocation20_spill] sm:$0xff] %v6162_v9  ;;  %v6183_v63 = vand.u32 4294901760, %v1112_v48  ;;  %v1108_v1 = vld [vmem:[#allocation6 + $0x160] sm:$0xff] }
 0x3e5   : > { %2693 = vmatpush.msra.mxu1 %v2692_v34  ;;  %2743 = vmatpush.msra.mxu2 %v6067_v59  ;;  %v6172_v34 = vand.u32 4294901760, %v6147_v41  ;;  %v2949_v44 = vand.u32 4294901760, %v2948_v6  ;;  %v7278_v6 = vand.u32 4294901760, %v6162_v9  ;;  %v6235_v59 = vpop.f32.mrf.mxu2 }
 0x3e6   : > { %2580 = vmatpush.msra.mxu0 %v6006_v50  ;;  %2780 = vmatpush.msra.mxu3 %v6030_v30  ;;  %v6209_v57 = vsub.f32 %v1112_v48, %v6183_v63  ;;  %7283 = vst [vmem:[#allocation31_spill] sm:$0xff] %v6235_v59  ;;  %v6247_v59 = vpop.f32.mrf.mxu3 }
 0x3e7   : > { %2695 = vmatmul.f32.vlgmr.msra.gmra.mxu1 %v6127_v26  ;;  %2746 = vmatpush.msra.mxu2 %v6079_v14  ;;  %7273 = vst [vmem:[#allocation26_spill] sm:$0xff] %v6172_v34  ;;  %v2592_v56 = vsub.f32 %v6147_v41, %v6172_v34  ;;  %v6211_v14 = vand.u32 4294901760, %v1108_v1 }
 0x3e8   : > { %2862 = vmatpush.msrb.mxu1 %v5867_v18  ;;  %2582 = vmatpush.msra.mxu0 %v6018_v27  ;;  %v7276_v18 = vand.u32 4294901760, %v6143_v19  ;;  %7284 = vst [vmem:[#allocation32_spill] sm:$0xff] %v6247_v59 }
 0x3e9   : > { %2782 = vmatpush.msra.mxu3 %v6042_v31  ;;  %2749 = vmatmul.f32.vlgmr.msra.gmra.mxu2 %v6147_v41  ;;  %v1104_v41 = vld [vmem:[#allocation6 + $0x140] sm:$0xff] }
 0x3ea   : > { %2864 = vmatpush.msrb.mxu1 %v5874_v49  ;;  %2899 = vmatpush.msrb.mxu2 %v6102_v33  ;;  %v2954_v39 = vsub.f32 %v6143_v19, %v7276_v18  ;;  %v2960_v18 = vsub.f32 %v6155_v12, %v7277_v7  ;;  %v2966_v49 = vsub.f32 %v6162_v9, %v7278_v6  ;;  %v6217_v19 = vpop.f32.mrf.mxu1  ;;  %v6230_v6 = vand.u32 4294901760, %v2592_v56  ;;  %v1102_v9 = vld [vmem:[#allocation6 + $0x130] sm:$0xff]  ;;  %v1100_v56 = vld [vmem:[#allocation6 + $0x120] sm:$0xff] }
 0x3eb   : > { %2584 = vmatpush.msra.mxu0 %v6030_v30  ;;  %2784 = vmatpush.msra.mxu3 %v6055_v29  ;;  %7279 = vst [vmem:[#allocation28_spill] sm:$0xff] %v6217_v19  ;;  %v6225_v12 = vsub.f32 %v1110_v55, %v6196_v32  ;;  %v7282_v19 = vand.u32 4294901760, %v6178_v16 }
 0x3ec   : > { %2788 = vmatmul.f32.vlgmr.msra.gmra.mxu3 %v6172_v34  ;;  %2866 = vmatpush.msrb.mxu1 %v5884_v5  ;;  %v1035_v34 = vrot.slane %v1034_v2, 1  ;;  %v6219_v5 = vpop.f32.mrf.mxu0  ;;  %v2955_v48 = vand.u32 4294901760, %v2954_v39  ;;  %7281 = vst [vmem:[#allocation30_spill] sm:$0xff] %v6230_v6  ;;  %v6241_v39 = vsub.f32 %v1108_v1, %v6211_v14 }
 0x3ed   : > { %2901 = vmatpush.msrb.mxu2 %v6111_v36  ;;  %2944 = vmatpush.msrb.mxu3 %v2943_v42  ;;  %7280 = vst [vmem:[#allocation29_spill] sm:$0xff] %v6219_v5  ;;  %v6227_v42 = vand.u32 4294901760, %v1106_v35  ;;  %v2972_v5 = vsub.f32 %v6178_v16, %v7282_v19  ;;  %v2967_v19 = vand.u32 4294901760, %v2966_v49  ;;  %v7285_v16 = vand.u32 4294901760, %v5882_v54 }
 0x3ee   : > { %2586 = vmatpush.msra.mxu0 %v6042_v31  ;;  %2868 = vmatpush.msrb.mxu1 %v5896_v38  ;;  %v2961_v38 = vand.u32 4294901760, %v2960_v18  ;;  %v1036_v7 = vadd.f32 %v1035_v34, %v1034_v2  ;;  %v7145_v18 = vand.u32 4294901760, %v6225_v12  ;;  %v7287_v54 = vand.u32 4294901760, %v5894_v52 }
 0x3ef   : > { %2903 = vmatpush.msrb.mxu2 %v6124_v58  ;;  %2950 = vmatpush.msrb.mxu3 %v2949_v44  ;;  %v6243_v44 = vand.u32 4294901760, %v1104_v41  ;;  %v6256_v55 = vsub.f32 %v1106_v35, %v6227_v42  ;;  %v2973_v2 = vand.u32 4294901760, %v2972_v5  ;;  %v7146_v49 = vand.u32 4294901760, %v6241_v39 }
 0x3f0   : > { %2588 = vmatpush.msra.mxu0 %v6055_v29  ;;  %2870 = vmatpush.msrb.mxu1 %v5907_v20  ;;  %v7286_v20 = vand.u32 4294901760, %v6194_v43  ;;  %v1045_v52 = vmul.f32 %v6095_v4, %v1036_v7  ;;  %v7292_v7 = vand.u32 4294901760, %v5917_v8  ;;  %v6308_v8 = vpop.f32.mrf.mxu2 }
 0x3f1   : > { %2594 = vmatmul.f32.vlgmr.msra.gmra.mxu0 %v6230_v6  ;;  %2905 = vmatpush.msrb.mxu2 %v6134_v3  ;;  %v6258_v6 = vand.u32 4294901760, %v1102_v9  ;;  %v6269_v35 = vsub.f32 %v1104_v41, %v6243_v44  ;;  %v3001_v41 = vand.u32 4294901760, %v6256_v55  ;;  %7293 = vst [vmem:[#allocation35_spill] sm:$0xff] %v6308_v8 }
 0x3f2   : > { %2795 = vmatpush.msrb.mxu0 %v7285_v16  ;;  %2956 = vmatpush.msrb.mxu3 %v2955_v48  ;;  %v2978_v1 = vsub.f32 %v6194_v43, %v7286_v20  ;;  %v7288_v16 = vand.u32 4294901760, %v6209_v57  ;;  %v6271_v48 = vand.u32 4294901760, %v1100_v56  ;;  %v1098_v20 = vld [vmem:[#allocation6 + $0x110] sm:$0xff] }
 0x3f3   : > { %2872 = vmatpush.msrb.mxu1 %v5923_v47  ;;  %2907 = vmatpush.msrb.mxu2 %v6138_v51  ;;  %v7289_v47 = vand.u32 4294901760, %v5905_v60  ;;  %v6289_v60 = vpop.f32.mrf.mxu1 }
 0x3f4   : > { %2799 = vmatpush.msrb.mxu0 %v7287_v54  ;;  %2962 = vmatpush.msrb.mxu3 %v2961_v38  ;;  %v2984_v34 = vsub.f32 %v6209_v57, %v7288_v16  ;;  %v2979_v5 = vand.u32 4294901760, %v2978_v1  ;;  %v2990_v38 = vsub.f32 %v6225_v12, %v7145_v18  ;;  %v6283_v54 = vsub.f32 %v1102_v9, %v6258_v6  ;;  %v1096_v16 = vld [vmem:[#allocation6 + $0x100] sm:$0xff]  ;;  %v6291_v4 = vpop.f32.mrf.mxu0 }
 0x3f5   : > { %2874 = vmatpush.msrb.mxu1 %v5934_v10  ;;  %2909 = vmatpush.msrb.mxu2 %v6150_v11  ;;  %v6287_v10 = vand.u32 4294901760, %v1098_v20  ;;  %7290 = vst [vmem:[#allocation33_spill] sm:$0xff] %v6289_v60  ;;  %v2996_v9 = vsub.f32 %v6241_v39, %v7146_v49  ;;  %v3007_v1 = vand.u32 4294901760, %v6269_v35  ;;  %v6306_v18 = vand.u32 4294901760, %v1045_v52  ;;  %v6321_v49 = vpop.f32.mrf.mxu3  ;;  %v7335_v60 = vld [vmem:[#allocation25_spill] sm:$0xff] }
 0x3f6   : > { %2803 = vmatpush.msrb.mxu0 %v7289_v47  ;;  %2968 = vmatpush.msrb.mxu3 %v2967_v19  ;;  %7291 = vst [vmem:[#allocation34_spill] sm:$0xff] %v6291_v4  ;;  %v2985_v19 = vand.u32 4294901760, %v2984_v34  ;;  %v6304_v47 = vand.u32 4294901760, %v1096_v16  ;;  %v2991_v34 = vand.u32 4294901760, %v2990_v38 }
 0x3f7   : > { %2876 = vmatpush.msrb.mxu1 %v5945_v40  ;;  %2911 = vmatpush.msrb.mxu2 %v6167_v46  ;;  %v6300_v40 = vsub.f32 %v1100_v56, %v6271_v48  ;;  %v3002_v56 = vsub.f32 %v6256_v55, %v3001_v41  ;;  %7295 = vst [vmem:[#allocation36_spill] sm:$0xff] %v6321_v49 }
 0x3f8   : > { %2807 = vmatpush.msrb.mxu0 %v7292_v7  ;;  %2974 = vmatpush.msrb.mxu3 %v2973_v2  ;;  %v7294_v2 = vand.u32 4294901760, %v5932_v23  ;;  %v3013_v7 = vand.u32 4294901760, %v6283_v54  ;;  %v7296_v23 = vand.u32 4294901760, %v5951_v0  ;;  %v3008_v38 = vsub.f32 %v6269_v35, %v3007_v1 }
 0x3f9   : > { %2878 = vmatpush.msrb.mxu1 %v5965_v28  ;;  %2913 = vmatpush.msrb.mxu2 %v6183_v63  ;;  %v6319_v28 = vsub.f32 %v1098_v20, %v6287_v10  ;;  %v6335_v20 = vsub.f32 %v1096_v16, %v6304_v47  ;;  %v7298_v0 = vand.u32 4294901760, %v5960_v37  ;;  %v7301_v16 = vand.u32 4294901760, %v5973_v45 }
 0x3fa   : > { %2811 = vmatpush.msrb.mxu0 %v7294_v2  ;;  %2980 = vmatpush.msrb.mxu3 %v2979_v5  ;;  %v2997_v5 = vand.u32 4294901760, %v2996_v9  ;;  %v7147_v2 = vand.u32 4294901760, %v6300_v40  ;;  %v3014_v9 = vsub.f32 %v6283_v54, %v3013_v7  ;;  %v3009_v37 = vand.u32 4294901760, %v3008_v38 }
 0x3fb   : > { %2880 = vmatpush.msrb.mxu1 %v5981_v61  ;;  %2915 = vmatpush.msrb.mxu2 %v6196_v32  ;;  %v6332_v61 = vsub.f32 %v1045_v52, %v6306_v18  ;;  %v6345_v52 = vpop.f32.mrf.mxu1  ;;  %v7304_v45 = vand.u32 4294901760, %v5991_v24 }
 0x3fc   : > { %2815 = vmatpush.msrb.mxu0 %v7296_v23  ;;  %2986 = vmatpush.msrb.mxu3 %v2985_v19  ;;  %v3003_v19 = vand.u32 4294901760, %v3002_v56  ;;  %7299 = vst [vmem:[#allocation38_spill] sm:$0xff] %v6345_v52  ;;  %v6347_v23 = vpop.f32.mrf.mxu0  ;;  %v3031_v56 = vand.u32 4294901760, %v6335_v20 }
 0x3fd   : > { %2882 = vmatpush.msrb.mxu1 %v5993_v22  ;;  %2917 = vmatpush.msrb.mxu2 %v6211_v14  ;;  %7297 = vst [vmem:[#allocation37_spill] sm:$0xff] %v6332_v61  ;;  %v3025_v22 = vand.u32 4294901760, %v6319_v28  ;;  %v6369_v38 = vpop.f32.mrf.mxu3 }
 0x3fe   : > { %2819 = vmatpush.msrb.mxu0 %v7298_v0  ;;  %2992 = vmatpush.msrb.mxu3 %v2991_v34  ;;  %7300 = vst [vmem:[#allocation39_spill] sm:$0xff] %v6347_v23  ;;  %v3020_v34 = vsub.f32 %v6300_v40, %v7147_v2  ;;  %v6360_v0 = vpop.f32.mrf.mxu2  ;;  %v1111_v23 = vld [vmem:[#allocation6 + $0x178] sm:$0xff] }
 0x3ff   : > { %2884 = vmatpush.msrb.mxu1 %v6006_v50  ;;  %2919 = vmatpush.msrb.mxu2 %v6227_v42  ;;  %v6357_v50 = vand.u32 4294901760, %v6332_v61  ;;  %7303 = vst [vmem:[#allocation41_spill] sm:$0xff] %v6360_v0 }
 0x400   : > { %2823 = vmatpush.msrb.mxu0 %v7301_v16  ;;  %2998 = vmatpush.msrb.mxu3 %v2997_v5  ;;  %v3015_v5 = vand.u32 4294901760, %v3014_v9  ;;  %7305 = vst [vmem:[#allocation42_spill] sm:$0xff] %v6369_v38  ;;  %v7306_v16 = vand.u32 4294901760, %v6004_v15  ;;  %v3021_v2 = vand.u32 4294901760, %v3020_v34  ;;  %v1115_v38 = vld [vmem:[#allocation6 + $0x198] sm:$0xff] }
 0x401   : > { %2886 = vmatpush.msrb.mxu1 %v6018_v27  ;;  %2921 = vmatpush.msrb.mxu2 %v6243_v44  ;;  %7302 = vst [vmem:[#allocation40_spill] sm:$0xff] %v6357_v50  ;;  %v3026_v27 = vsub.f32 %v6319_v28, %v3025_v22  ;;  %v2933_v24 = vsub.f32 %v6332_v61, %v6357_v50 }
 0x402   : > { %2827 = vmatpush.msrb.mxu0 %v7304_v45  ;;  %3004 = vmatpush.msrb.mxu3 %v3003_v19  ;;  %v7307_v19 = vand.u32 4294901760, %v6016_v13 }
 0x403   : > { %2888 = vmatpush.msrb.mxu1 %v6030_v30  ;;  %2923 = vmatpush.msrb.mxu2 %v6258_v6  ;;  %v3032_v30 = vsub.f32 %v6335_v20, %v3031_v56  ;;  %v3027_v15 = vand.u32 4294901760, %v3026_v27  ;;  %v2014_v9 = vpop.f32.mrf.mxu1  ;;  %v6388_v34 = vand.u32 4294901760, %v2933_v24 }
 0x404   : > { %2831 = vmatpush.msrb.mxu0 %v7306_v16  ;;  %3010 = vmatpush.msrb.mxu3 %v3009_v37  ;;  %v7311_v16 = vand.u32 4294901760, %v6053_v25 }
 0x405   : > { %2890 = vmatpush.msrb.mxu1 %v6042_v31  ;;  %2925 = vmatpush.msrb.mxu2 %v6271_v48  ;;  %v7308_v31 = vand.u32 4294901760, %v6028_v62  ;;  %v3033_v13 = vand.u32 4294901760, %v3032_v30  ;;  %v7313_v30 = vld [vmem:[#allocation22_spill] sm:$0xff] }
 0x406   : > { %2835 = vmatpush.msrb.mxu0 %v7307_v19  ;;  %3016 = vmatpush.msrb.mxu3 %v3015_v5  ;;  %v2068_v5 = vpop.f32.mrf.mxu2  ;;  %v7314_v19 = vand.u32 4294901760, %v7313_v30 }
 0x407   : > { %2892 = vmatpush.msrb.mxu1 %v6055_v29  ;;  %2927 = vmatpush.msrb.mxu2 %v6287_v10  ;;  %v7309_v29 = vand.u32 4294901760, %v6040_v21  ;;  %v7312_v21 = vand.u32 4294901760, %v6130_v53 }
 0x408   : > { %2839 = vmatpush.msrb.mxu0 %v7308_v31  ;;  %3022 = vmatpush.msrb.mxu3 %v3021_v2  ;;  %v1913_v37 = vpop.f32.mrf.mxu0  ;;  %v7310_v2 = vand.u32 4294901760, %v6120_v17  ;;  %v7317_v31 = vld [vmem:[#allocation23_spill] sm:$0xff] }
 0x409   : > { %2894 = vmatmul.f32.vlgmr.msrb.gmra.mxu1 %v6127_v26  ;;  %2929 = vmatpush.msrb.mxu2 %v6304_v47  ;;  %v2015_v45 = vadd.f32 %v2014_v9, %v1913_v37  ;;  %v2107_v27 = vpop.f32.mrf.mxu3  ;;  %v7318_v9 = vand.u32 4294901760, %v7317_v31  ;;  %v7319_v37 = vld [vmem:[#allocation21_spill] sm:$0xff] }
 0x40a   : > { %3095 = vmatpush.msra.mxu1 %v6102_v33  ;;  %2843 = vmatpush.msrb.mxu0 %v7309_v29  ;;  %v7323_v29 = vld [vmem:[#allocation27_spill] sm:$0xff]  ;;  %v1085_v31 = vld [vmem:[#allocation6 + $0xa8] sm:$0xff] }
 0x40b   : > { %3028 = vmatpush.msrb.mxu3 %v3027_v15  ;;  %2935 = vmatmul.f32.vlgmr.msrb.gmra.mxu2 %v6388_v34  ;;  %v2069_v62 = vadd.f32 %v2068_v5, %v2015_v45  ;;  %v7315_v15 = vld [vmem:[#allocation24_spill] sm:$0xff]  ;;  %v7324_v5 = vand.u32 4294901760, %v7323_v29 }
 0x40c   : > { %3097 = vmatpush.msra.mxu1 %v6111_v36  ;;  %3136 = vmatpush.msra.mxu2 %v7310_v2  ;;  %v7316_v25 = vand.u32 4294901760, %v7315_v15  ;;  %v7326_v2 = vand.u32 4294901760, %v6209_v57 }
 0x40d   : > { %2847 = vmatpush.msrb.mxu0 %v7311_v16  ;;  %3034 = vmatpush.msrb.mxu3 %v3033_v13  ;;  %v6399_v24 = vadd.f32 %v2107_v27, %v2069_v62  ;;  %v7320_v13 = vand.u32 4294901760, %v7319_v37  ;;  %v1093_v62 = vld [vmem:[#allocation6 + $0xe8] sm:$0xff] }
 0x40e   : > { %3036 = vmatmul.f32.vlgmr.msrb.gmra.mxu3 %v6306_v18  ;;  %3099 = vmatpush.msra.mxu1 %v6124_v58 }
 0x40f   : > { %3140 = vmatpush.msra.mxu2 %v7312_v21  ;;  %3203 = vmatpush.msra.mxu3 %v6102_v33  ;;  %v7321_v33 = vld [vmem:[#allocation20_spill] sm:$0xff]  ;;  %v1087_v21 = vld [vmem:[#allocation6 + $0xb8] sm:$0xff] }
 0x410   : > { %2851 = vmatpush.msrb.mxu0 %v7314_v19  ;;  %3101 = vmatpush.msra.mxu1 %v6134_v3  ;;  %v7322_v45 = vand.u32 4294901760, %v7321_v33 }
 0x411   : > { %3144 = vmatpush.msra.mxu2 %v7316_v25  ;;  %3205 = vmatpush.msra.mxu3 %v6111_v36  ;;  %v1095_v36 = vld [vmem:[#allocation6 + $0xf8] sm:$0xff] }
 0x412   : > { %2855 = vmatpush.msrb.mxu0 %v7318_v9  ;;  %3103 = vmatpush.msra.mxu1 %v6138_v51  ;;  %v1083_v9 = vld [vmem:[#allocation6 + $0x98] sm:$0xff] }
 0x413   : > { %2857 = vmatmul.f32.vlgmr.msrb.gmra.mxu0 %v6127_v26  ;;  %3148 = vmatpush.msra.mxu2 %v7320_v13  ;;  %v1081_v13 = vld [vmem:[#allocation6 + $0x88] sm:$0xff] }
 0x414   : > { %3042 = vmatpush.msra.mxu0 %v6120_v17  ;;  %3207 = vmatpush.msra.mxu3 %v6124_v58  ;;  %v6430_v58 = vand.u32 4294901760, %v1095_v36  ;;  %v7325_v17 = vand.u32 4294901760, %v6194_v43 }
 0x415   : > { %3105 = vmatpush.msra.mxu1 %v6150_v11  ;;  %3152 = vmatpush.msra.mxu2 %v7322_v45  ;;  %v1079_v45 = vld [vmem:[#allocation6 + $0x78] sm:$0xff] }
 0x416   : > { %3045 = vmatpush.msra.mxu0 %v6130_v53  ;;  %3209 = vmatpush.msra.mxu3 %v6134_v3  ;;  %v1091_v53 = vld [vmem:[#allocation6 + $0xd8] sm:$0xff]  ;;  %v6437_v3 = vand.u32 4294901760, %v1093_v62  ;;  %v6445_v27 = vsub.f32 %v1095_v36, %v6430_v58  ;;  %v7329_v36 = vand.u32 4294901760, %v6300_v40 }
 0x417   : > { %3107 = vmatpush.msra.mxu1 %v6167_v46  ;;  %3156 = vmatpush.msra.mxu2 %v7324_v5  ;;  %v6447_v16 = vand.u32 4294901760, %v1091_v53 }
 0x418   : > { %3048 = vmatpush.msra.mxu0 %v7315_v15  ;;  %3211 = vmatpush.msra.mxu3 %v6138_v51  ;;  %v1089_v51 = vld [vmem:[#allocation6 + $0xc8] sm:$0xff]  ;;  %v6455_v30 = vsub.f32 %v1093_v62, %v6437_v3  ;;  %v7163_v15 = vand.u32 4294901760, %v6445_v27 }
 0x419   : > { %3109 = vmatpush.msra.mxu1 %v6183_v63  ;;  %3160 = vmatpush.msra.mxu2 %v7325_v17  ;;  %v6457_v19 = vand.u32 4294901760, %v1089_v51  ;;  %v6466_v25 = vsub.f32 %v1091_v53, %v6447_v16  ;;  %v1077_v62 = vld [vmem:[#allocation6 + $0x68] sm:$0xff]  ;;  %v6524_v17 = vand.u32 4294901760, %v1079_v45 }
 0x41a   : > { %3051 = vmatpush.msra.mxu0 %v7319_v37  ;;  %3213 = vmatpush.msra.mxu3 %v6150_v11  ;;  %v7327_v11 = vand.u32 4294901760, %v6225_v12  ;;  %v6482_v37 = vand.u32 4294901760, %v1085_v31 }
 0x41b   : > { %3111 = vmatpush.msra.mxu1 %v6196_v32  ;;  %3164 = vmatpush.msra.mxu2 %v7326_v2 }
 0x41c   : > { %3054 = vmatpush.msra.mxu0 %v7321_v33  ;;  %3215 = vmatpush.msra.mxu3 %v6167_v46  ;;  %v7328_v46 = vand.u32 4294901760, %v6241_v39  ;;  %v6493_v33 = vand.u32 4294901760, %v1083_v9 }
 0x41d   : > { %3113 = vmatpush.msra.mxu1 %v6211_v14  ;;  %3168 = vmatpush.msra.mxu2 %v7327_v11 }
 0x41e   : > { %3057 = vmatpush.msra.mxu0 %v7323_v29  ;;  %3217 = vmatpush.msra.mxu3 %v6183_v63  ;;  %v6468_v63 = vand.u32 4294901760, %v1087_v21  ;;  %v6519_v5 = vsub.f32 %v1083_v9, %v6493_v33  ;;  %v1073_v9 = vld [vmem:[#allocation6 + $0x48] sm:$0xff] }
 0x41f   : > { %3115 = vmatpush.msra.mxu1 %v6227_v42  ;;  %3172 = vmatpush.msra.mxu2 %v7328_v46 }
 0x420   : > { %3060 = vmatpush.msra.mxu0 %v6194_v43  ;;  %3219 = vmatpush.msra.mxu3 %v6196_v32  ;;  %v7161_v32 = vand.u32 4294901760, %v6455_v30  ;;  %v6477_v43 = vsub.f32 %v1089_v51, %v6457_v19  ;;  %v1075_v51 = vld [vmem:[#allocation6 + $0x58] sm:$0xff]  ;;  %v2213_v11 = vpop.f32.mrf.mxu1 }
 0x421   : > { %3117 = vmatpush.msra.mxu1 %v6243_v44  ;;  %3176 = vmatpush.msra.mxu2 %v3001_v41  ;;  %v6491_v41 = vsub.f32 %v1087_v21, %v6468_v63 }
 0x422   : > { %3063 = vmatpush.msra.mxu0 %v6209_v57  ;;  %3221 = vmatpush.msra.mxu3 %v6211_v14  ;;  %v3283_v57 = vsub.f32 %v6445_v27, %v7163_v15  ;;  %v7159_v14 = vand.u32 4294901760, %v6466_v25 }
 0x423   : > { %3119 = vmatpush.msra.mxu1 %v6258_v6  ;;  %3180 = vmatpush.msra.mxu2 %v3007_v1  ;;  %v6504_v1 = vand.u32 4294901760, %v1081_v13  ;;  %v7155_v29 = vand.u32 4294901760, %v6491_v41 }
 0x424   : > { %3066 = vmatpush.msra.mxu0 %v6225_v12  ;;  %3223 = vmatpush.msra.mxu3 %v6227_v42  ;;  %v3289_v12 = vsub.f32 %v6455_v30, %v7161_v32  ;;  %v7157_v42 = vand.u32 4294901760, %v6477_v43  ;;  %v1119_v32 = vld [vmem:[#allocation6 + $0x1b8] sm:$0xff] }
 0x425   : > { %3121 = vmatpush.msra.mxu1 %v6271_v48  ;;  %3184 = vmatpush.msra.mxu2 %v3013_v7  ;;  %v6510_v7 = vsub.f32 %v1085_v31, %v6482_v37  ;;  %v6532_v2 = vsub.f32 %v1081_v13, %v6504_v1  ;;  %v3307_v46 = vsub.f32 %v6491_v41, %v7155_v29  ;;  %v7151_v31 = vand.u32 4294901760, %v6519_v5 }
 0x426   : > { %3069 = vmatpush.msra.mxu0 %v6241_v39  ;;  %3225 = vmatpush.msra.mxu3 %v6243_v44  ;;  %v3284_v39 = vand.u32 4294901760, %v3283_v57  ;;  %v3295_v44 = vsub.f32 %v6466_v25, %v7159_v14  ;;  %v6551_v13 = vand.u32 4294901760, %v1075_v51  ;;  %v1121_v14 = vld [vmem:[#allocation6 + $0x1c8] sm:$0xff] }
 0x427   : > { %3123 = vmatpush.msra.mxu1 %v6287_v10  ;;  %3188 = vmatpush.msra.mxu2 %v7329_v36  ;;  %v1071_v36 = vld [vmem:[#allocation6 + $0x38] sm:$0xff] }
 0x428   : > { %3072 = vmatpush.msra.mxu0 %v6256_v55  ;;  %3227 = vmatpush.msra.mxu3 %v6258_v6  ;;  %v3290_v6 = vand.u32 4294901760, %v3289_v12  ;;  %v3301_v55 = vsub.f32 %v6477_v43, %v7157_v42  ;;  %v3296_v21 = vand.u32 4294901760, %v3295_v44  ;;  %v2254_v57 = vpop.f32.mrf.mxu2  ;;  %v7148_v12 = vand.u32 4294901760, %v6532_v2  ;;  %v1123_v42 = vld [vmem:[#allocation6 + $0x1d8] sm:$0xff] }
 0x429   : > { %3125 = vmatpush.msra.mxu1 %v6304_v47  ;;  %3192 = vmatpush.msra.mxu2 %v3025_v22  ;;  %v6563_v44 = vand.u32 4294901760, %v1073_v9 }
 0x42a   : > { %3075 = vmatpush.msra.mxu0 %v6269_v35  ;;  %3229 = vmatpush.msra.mxu3 %v6271_v48  ;;  %v2176_v53 = vpop.f32.mrf.mxu0  ;;  %v7154_v35 = vand.u32 4294901760, %v6510_v7  ;;  %v6539_v48 = vand.u32 4294901760, %v1077_v62 }
 0x42b   : > { %3129 = vmatmul.f32.vlgmr.msra.gmra.mxu1 %v6357_v50  ;;  %3196 = vmatpush.msra.mxu2 %v3031_v56  ;;  %v2177_v22 = vadd.f32 %v2176_v53, %v6399_v24  ;;  %v6549_v24 = vsub.f32 %v1079_v45, %v6524_v17 }
 0x42c   : > { %3285 = vmatpush.msrb.mxu1 %v3284_v39  ;;  %3078 = vmatpush.msra.mxu0 %v6283_v54  ;;  %v3302_v54 = vand.u32 4294901760, %v3301_v55  ;;  %v3313_v45 = vsub.f32 %v6510_v7, %v7154_v35  ;;  %v6561_v39 = vsub.f32 %v1077_v62, %v6539_v48  ;;  %v2355_v55 = vpop.f32.mrf.mxu3 }
 0x42d   : > { %3231 = vmatpush.msra.mxu3 %v6287_v10  ;;  %3198 = vmatmul.f32.vlgmr.msra.gmra.mxu2 %v6306_v18  ;;  %v2214_v56 = vadd.f32 %v2213_v11, %v2177_v22  ;;  %v7149_v62 = vand.u32 4294901760, %v6549_v24  ;;  %v6575_v22 = vsub.f32 %v1075_v51, %v6551_v13  ;;  %v6577_v11 = vand.u32 4294901760, %v1071_v36 }
 0x42e   : > { %3291 = vmatpush.msrb.mxu1 %v3290_v6  ;;  %3383 = vmatpush.msrb.mxu2 %v6445_v27  ;;  %v3308_v6 = vand.u32 4294901760, %v3307_v46  ;;  %v1067_v46 = vld [vmem:[#allocation6 + $0x18] sm:$0xff]  ;;  %v6587_v51 = vsub.f32 %v1073_v9, %v6563_v44 }
 0x42f   : > { %3081 = vmatpush.msra.mxu0 %v6300_v40  ;;  %3233 = vmatpush.msra.mxu3 %v6304_v47  ;;  %v2255_v10 = vadd.f32 %v2254_v57, %v2214_v56  ;;  %v3319_v40 = vsub.f32 %v6519_v5, %v7151_v31  ;;  %v1069_v47 = vld [vmem:[#allocation6 + $0x28] sm:$0xff]  ;;  %v3314_v56 = vand.u32 4294901760, %v3313_v45  ;;  %v7150_v57 = vand.u32 4294901760, %v6561_v39 }
 0x430   : > { %3235 = vmatmul.f32.vlgmr.msra.gmra.mxu3 %v6306_v18  ;;  %3297 = vmatpush.msrb.mxu1 %v3296_v21  ;;  %v3325_v21 = vsub.f32 %v6532_v2, %v7148_v12  ;;  %v3331_v45 = vsub.f32 %v6549_v24, %v7149_v62  ;;  %v6599_v9 = vsub.f32 %v1071_v36, %v6577_v11  ;;  %v6601_v12 = vand.u32 4294901760, %v1067_v46 }
 0x431   : > { %3386 = vmatpush.msrb.mxu2 %v6455_v30  ;;  %3436 = vmatpush.msrb.mxu3 %v6430_v58  ;;  %v6571_v53 = vadd.f32 %v2355_v55, %v2255_v10  ;;  %v6589_v10 = vand.u32 4294901760, %v1069_v47  ;;  %v7152_v55 = vand.u32 4294901760, %v6575_v22 }
 0x432   : > { %3084 = vmatpush.msra.mxu0 %v6319_v28  ;;  %3303 = vmatpush.msrb.mxu1 %v3302_v54  ;;  %v3320_v28 = vand.u32 4294901760, %v3319_v40  ;;  %v1065_v54 = vld [vmem:[#allocation6 + $0x8] sm:$0xff]  ;;  %v7153_v40 = vand.u32 4294901760, %v6587_v51  ;;  %v6623_v31 = vsub.f32 %v1067_v46, %v6601_v12  ;;  %v1127_v46 = vld [vmem:[#allocation6 + $0x1f8] sm:$0xff] }
 0x433   : > { %3389 = vmatpush.msrb.mxu2 %v6466_v25  ;;  %3438 = vmatpush.msrb.mxu3 %v6437_v3  ;;  %v6611_v62 = vsub.f32 %v1069_v47, %v6589_v10  ;;  %v6613_v36 = vand.u32 4294901760, %v1065_v54  ;;  %v6649_v29 = vand.u32 4294901760, %v1127_v46 }
 0x434   : > { %3087 = vmatpush.msra.mxu0 %v6335_v20  ;;  %3309 = vmatpush.msrb.mxu1 %v3308_v6  ;;  %v3326_v20 = vand.u32 4294901760, %v3325_v21  ;;  %v3337_v6 = vsub.f32 %v6561_v39, %v7150_v57  ;;  %v3332_v21 = vand.u32 4294901760, %v3331_v45  ;;  %v7156_v57 = vand.u32 4294901760, %v6599_v9  ;;  %7330 = vst [vmem:[#allocation22_spill] sm:$0xff] %v6623_v31 }
 0x435   : > { %3090 = vmatmul.f32.vlgmr.msra.gmra.mxu0 %v6332_v61  ;;  %3392 = vmatpush.msrb.mxu2 %v6477_v43  ;;  %v7158_v45 = vand.u32 4294901760, %v6611_v62 }
 0x436   : > { %3240 = vmatpush.msrb.mxu0 %v6430_v58  ;;  %3440 = vmatpush.msrb.mxu3 %v6447_v16  ;;  %v3338_v47 = vand.u32 4294901760, %v3337_v6  ;;  %v3355_v6 = vsub.f32 %v6599_v9, %v7156_v57 }
 0x437   : > { %3315 = vmatpush.msrb.mxu1 %v3314_v56  ;;  %3395 = vmatpush.msrb.mxu2 %v6491_v41  ;;  %v3343_v56 = vsub.f32 %v6575_v22, %v7152_v55  ;;  %v6633_v55 = vsub.f32 %v1065_v54, %v6613_v36  ;;  %v1125_v54 = vld [vmem:[#allocation6 + $0x1e8] sm:$0xff] }
 0x438   : > { %3242 = vmatpush.msrb.mxu0 %v6437_v3  ;;  %3442 = vmatpush.msrb.mxu3 %v6457_v19  ;;  %v3356_v57 = vand.u32 4294901760, %v3355_v6  ;;  %v6666_v6 = vsub.f32 %v1127_v46, %v6649_v29  ;;  %v6678_v46 = vand.u32 4294901760, %v1121_v14 }
 0x439   : > { %3321 = vmatpush.msrb.mxu1 %v3320_v28  ;;  %3398 = vmatpush.msrb.mxu2 %v6510_v7  ;;  %v3349_v28 = vsub.f32 %v6587_v51, %v7153_v40  ;;  %7331 = vst [vmem:[#allocation24_spill] sm:$0xff] %v6633_v55  ;;  %v7160_v40 = vand.u32 4294901760, %v6623_v31 }
 0x43a   : > { %3244 = vmatpush.msrb.mxu0 %v6447_v16  ;;  %3444 = vmatpush.msrb.mxu3 %v6468_v63  ;;  %v7166_v61 = vand.u32 4294901760, %v6666_v6 }
 0x43b   : > { %3327 = vmatpush.msrb.mxu1 %v3326_v20  ;;  %3401 = vmatpush.msrb.mxu2 %v6519_v5  ;;  %v3344_v20 = vand.u32 4294901760, %v3343_v56  ;;  %v3350_v35 = vand.u32 4294901760, %v3349_v28  ;;  %v7162_v56 = vand.u32 4294901760, %v6633_v55  ;;  %v6657_v28 = vand.u32 4294901760, %v1125_v54 }
 0x43c   : > { %3246 = vmatpush.msrb.mxu0 %v6457_v19  ;;  %3446 = vmatpush.msrb.mxu3 %v6482_v37 }
 0x43d   : > { %3333 = vmatpush.msrb.mxu1 %v3332_v21  ;;  %3404 = vmatpush.msrb.mxu2 %v6532_v2  ;;  %v3361_v21 = vsub.f32 %v6611_v62, %v7158_v45 }
 0x43e   : > { %3248 = vmatpush.msrb.mxu0 %v6468_v63  ;;  %3448 = vmatpush.msrb.mxu3 %v6493_v33 }
 0x43f   : > { %3339 = vmatpush.msrb.mxu1 %v3338_v47  ;;  %3407 = vmatpush.msrb.mxu2 %v6549_v24  ;;  %v3367_v47 = vsub.f32 %v6623_v31, %v7160_v40  ;;  %v3362_v45 = vand.u32 4294901760, %v3361_v21  ;;  %v6670_v40 = vand.u32 4294901760, %v1123_v42  ;;  %v6674_v21 = vsub.f32 %v1125_v54, %v6657_v28 }
 0x440   : > { %3250 = vmatpush.msrb.mxu0 %v6482_v37  ;;  %3450 = vmatpush.msrb.mxu3 %v6504_v1 }
 0x441   : > { %3345 = vmatpush.msrb.mxu1 %v3344_v20  ;;  %3410 = vmatpush.msrb.mxu2 %v6561_v39  ;;  %v3373_v20 = vsub.f32 %v6633_v55, %v7162_v56  ;;  %v1117_v56 = vld [vmem:[#allocation6 + $0x1a8] sm:$0xff]  ;;  %v6687_v54 = vsub.f32 %v1123_v42, %v6670_v40  ;;  %v3624_v42 = vsub.f32 %v6666_v6, %v7166_v61 }
 0x442   : > { %3252 = vmatpush.msrb.mxu0 %v6493_v33  ;;  %3452 = vmatpush.msrb.mxu3 %v6524_v17  ;;  %v2448_v50 = vpop.f32.mrf.mxu1 }
 0x443   : > { %3351 = vmatpush.msrb.mxu1 %v3350_v35  ;;  %3413 = vmatpush.msrb.mxu2 %v6575_v22  ;;  %v3368_v35 = vand.u32 4294901760, %v3367_v47  ;;  %v3374_v15 = vand.u32 4294901760, %v3373_v20  ;;  %7332 = vst [vmem:[#allocation23_spill] sm:$0xff] %v6687_v54  ;;  %v6696_v20 = vsub.f32 %v1121_v14, %v6678_v46  ;;  %v1113_v47 = vld [vmem:[#allocation6 + $0x188] sm:$0xff]  ;;  %v6708_v14 = vand.u32 4294901760, %v1115_v38 }
 0x444   : > { %3254 = vmatpush.msrb.mxu0 %v6504_v1  ;;  %3454 = vmatpush.msrb.mxu3 %v6539_v48  ;;  %v6722_v8 = vand.u32 4294901760, %v1113_v47 }
 0x445   : > { %3357 = vmatpush.msrb.mxu1 %v3356_v57  ;;  %3416 = vmatpush.msrb.mxu2 %v6587_v51  ;;  %v6682_v57 = vand.u32 4294901760, %v1119_v32  ;;  %v6733_v59 = vsub.f32 %v1115_v38, %v6708_v14 }
 0x446   : > { %3256 = vmatpush.msrb.mxu0 %v6524_v17  ;;  %3456 = vmatpush.msrb.mxu3 %v6551_v13 }
 0x447   : > { %3363 = vmatpush.msrb.mxu1 %v3362_v45  ;;  %3419 = vmatpush.msrb.mxu2 %v6599_v9  ;;  %v6691_v45 = vand.u32 4294901760, %v1117_v56 }
 0x448   : > { %3258 = vmatpush.msrb.mxu0 %v6539_v48  ;;  %3458 = vmatpush.msrb.mxu3 %v6563_v44 }
 0x449   : > { %3369 = vmatpush.msrb.mxu1 %v3368_v35  ;;  %3422 = vmatpush.msrb.mxu2 %v6611_v62  ;;  %v6703_v35 = vsub.f32 %v1119_v32, %v6682_v57  ;;  %v6717_v52 = vsub.f32 %v1117_v56, %v6691_v45 }
 0x44a   : > { %3260 = vmatpush.msrb.mxu0 %v6551_v13  ;;  %3460 = vmatpush.msrb.mxu3 %v6577_v11  ;;  %v2517_v49 = vpop.f32.mrf.mxu2 }
 0x44b   : > { %3375 = vmatpush.msrb.mxu1 %v3374_v15  ;;  %3425 = vmatpush.msrb.mxu2 %v6623_v31  ;;  %v7333_v15 = vand.u32 4294901760, %v6674_v21  ;;  %7334 = vst [vmem:[#allocation21_spill] sm:$0xff] %v6717_v52 }
 0x44c   : > { %3262 = vmatpush.msrb.mxu0 %v6563_v44  ;;  %3462 = vmatpush.msrb.mxu3 %v6589_v10  ;;  %v2409_v0 = vpop.f32.mrf.mxu0 }
 0x44d   : > { %3377 = vmatmul.f32.vlgmr.msrb.gmra.mxu1 %v6127_v26  ;;  %3428 = vmatpush.msrb.mxu2 %v6633_v55  ;;  %v3630_v61 = vsub.f32 %v6674_v21, %v7333_v15  ;;  %v2410_v32 = vadd.f32 %v2409_v0, %v6571_v53  ;;  %v3625_v15 = vand.u32 4294901760, %v3624_v42  ;;  %v1109_v53 = vld [vmem:[#allocation6 + $0x168] sm:$0xff]  ;;  %v6735_v55 = vand.u32 4294901760, %v1111_v23  ;;  %v1107_v42 = vld [vmem:[#allocation6 + $0x158] sm:$0xff]  ;;  %v2554_v0 = vpop.f32.mrf.mxu3 }
 0x44e   : > { %3544 = vmatpush.msra.mxu1 %v6430_v58  ;;  %3264 = vmatpush.msrb.mxu0 %v6577_v11  ;;  %v7336_v58 = vand.u32 4294901760, %v6687_v54  ;;  %v6748_v31 = vand.u32 4294901760, %v1109_v53 }
 0x44f   : > { %3464 = vmatpush.msrb.mxu3 %v6601_v12  ;;  %3431 = vmatmul.f32.vlgmr.msrb.gmra.mxu2 %v7335_v60  ;;  %v2449_v4 = vadd.f32 %v2448_v50, %v2410_v32  ;;  %v3631_v60 = vand.u32 4294901760, %v3630_v61  ;;  %v7337_v32 = vld [vmem:[#allocation26_spill] sm:$0xff] }
 0x450   : > { %3546 = vmatpush.msra.mxu1 %v6437_v3  ;;  %3581 = vmatpush.msra.mxu2 %v6649_v29  ;;  %v3636_v56 = vsub.f32 %v6687_v54, %v7336_v58  ;;  %v7338_v58 = vand.u32 4294901760, %v6696_v20  ;;  %v6746_v54 = vsub.f32 %v1113_v47, %v6722_v8  ;;  %v6762_v3 = vand.u32 4294901760, %v1107_v42  ;;  %v7342_v47 = vld [vmem:[#allocation30_spill] sm:$0xff] }
 0x451   : > { %3266 = vmatpush.msrb.mxu0 %v6589_v10  ;;  %3466 = vmatpush.msrb.mxu3 %v6613_v36  ;;  %v2518_v50 = vadd.f32 %v2517_v49, %v2449_v4  ;;  %v7340_v4 = vand.u32 4294901760, %v6703_v35 }
 0x452   : > { %3470 = vmatmul.f32.vlgmr.msrb.gmra.mxu3 %v7337_v32  ;;  %3548 = vmatpush.msra.mxu1 %v6447_v16  ;;  %v3642_v38 = vsub.f32 %v6696_v20, %v7338_v58  ;;  %v1105_v16 = vld [vmem:[#allocation6 + $0x148] sm:$0xff]  ;;  %v3637_v32 = vand.u32 4294901760, %v3636_v56  ;;  %v6760_v58 = vsub.f32 %v1111_v23, %v6735_v55  ;;  %v6772_v23 = vsub.f32 %v1109_v53, %v6748_v31  ;;  %v1099_v56 = vld [vmem:[#allocation6 + $0x118] sm:$0xff] }
 0x453   : > { %3583 = vmatpush.msra.mxu2 %v6657_v28  ;;  %3626 = vmatpush.msra.mxu3 %v3625_v15  ;;  %v6751_v49 = vadd.f32 %v2554_v0, %v2518_v50  ;;  %v3648_v61 = vsub.f32 %v6703_v35, %v7340_v4  ;;  %v7341_v15 = vand.u32 4294901760, %v6717_v52  ;;  %v1103_v50 = vld [vmem:[#allocation6 + $0x138] sm:$0xff]  ;;  %v6774_v4 = vand.u32 4294901760, %v1105_v16 }
 0x454   : > { %3268 = vmatpush.msrb.mxu0 %v6601_v12  ;;  %3550 = vmatpush.msra.mxu1 %v6457_v19  ;;  %v3643_v19 = vand.u32 4294901760, %v3642_v38  ;;  %v6785_v53 = vsub.f32 %v1107_v42, %v6762_v3 }
 0x455   : > { %7339 = vst [vmem:[#allocation20_spill] sm:$0xff] %v6751_v49  ;;  %3585 = vmatpush.msra.mxu2 %v6670_v40  ;;  %3632 = vmatpush.msra.mxu3 %v3631_v60  ;;  %v3654_v0 = vsub.f32 %v6717_v52, %v7341_v15  ;;  %v3649_v60 = vand.u32 4294901760, %v3648_v61  ;;  %v1101_v49 = vld [vmem:[#allocation6 + $0x128] sm:$0xff]  ;;  %v7343_v15 = vand.u32 4294901760, %v6445_v27  ;;  %v6787_v52 = vand.u32 4294901760, %v1103_v50 }
 0x456   : > { %3270 = vmatpush.msrb.mxu0 %v6613_v36  ;;  %3552 = vmatpush.msra.mxu1 %v6468_v63  ;;  %v7344_v63 = vand.u32 4294901760, %v6733_v59  ;;  %v7345_v27 = vand.u32 4294901760, %v6455_v30  ;;  %v6798_v42 = vsub.f32 %v1105_v16, %v6774_v4  ;;  %v7347_v30 = vand.u32 4294901760, %v6466_v25 }
 0x457   : > { %3276 = vmatmul.f32.vlgmr.msrb.gmra.mxu0 %v7342_v47  ;;  %3587 = vmatpush.msra.mxu2 %v6678_v46  ;;  %v3655_v61 = vand.u32 4294901760, %v3654_v0  ;;  %v7348_v0 = vand.u32 4294901760, %v6760_v58  ;;  %v6811_v16 = vsub.f32 %v1103_v50, %v6787_v52  ;;  %v7349_v25 = vand.u32 4294901760, %v6477_v43 }
 0x458   : > { %3477 = vmatpush.msra.mxu0 %v7343_v15  ;;  %3638 = vmatpush.msra.mxu3 %v3637_v32  ;;  %v3660_v38 = vsub.f32 %v6733_v59, %v7344_v63  ;;  %v7346_v32 = vand.u32 4294901760, %v6746_v54  ;;  %v3677_v15 = vand.u32 4294901760, %v6772_v23  ;;  %v6800_v63 = vand.u32 4294901760, %v1101_v49 }
 0x459   : > { %3554 = vmatpush.msra.mxu1 %v6482_v37  ;;  %3589 = vmatpush.msra.mxu2 %v6682_v57  ;;  %v7350_v43 = vand.u32 4294901760, %v6491_v41 }
 0x45a   : > { %3481 = vmatpush.msra.mxu0 %v7345_v27  ;;  %3644 = vmatpush.msra.mxu3 %v3643_v19  ;;  %v3666_v47 = vsub.f32 %v6746_v54, %v7346_v32  ;;  %v3661_v37 = vand.u32 4294901760, %v3660_v38  ;;  %v3672_v19 = vsub.f32 %v6760_v58, %v7348_v0  ;;  %v3683_v27 = vand.u32 4294901760, %v6785_v53  ;;  %v1097_v32 = vld [vmem:[#allocation6 + $0x108] sm:$0xff] }
 0x45b   : > { %3556 = vmatpush.msra.mxu1 %v6493_v33  ;;  %3591 = vmatpush.msra.mxu2 %v6691_v45  ;;  %v6815_v33 = vand.u32 4294901760, %v1099_v56  ;;  %v3678_v38 = vsub.f32 %v6772_v23, %v3677_v15  ;;  %v6824_v50 = vsub.f32 %v1101_v49, %v6800_v63  ;;  %v3695_v0 = vand.u32 4294901760, %v6811_v16 }
 0x45c   : > { %3485 = vmatpush.msra.mxu0 %v7347_v30  ;;  %3650 = vmatpush.msra.mxu3 %v3649_v60  ;;  %v3667_v60 = vand.u32 4294901760, %v3666_v47  ;;  %v3689_v30 = vand.u32 4294901760, %v6798_v42  ;;  %v3684_v47 = vsub.f32 %v6785_v53, %v3683_v27  ;;  %v7351_v49 = vand.u32 4294901760, %v6510_v7 }
 0x45d   : > { %3558 = vmatpush.msra.mxu1 %v6504_v1  ;;  %3593 = vmatpush.msra.mxu2 %v6708_v14  ;;  %v6828_v1 = vand.u32 4294901760, %v1097_v32  ;;  %v3679_v41 = vand.u32 4294901760, %v3678_v38 }
 0x45e   : > { %3489 = vmatpush.msra.mxu0 %v7349_v25  ;;  %3656 = vmatpush.msra.mxu3 %v3655_v61  ;;  %v3673_v61 = vand.u32 4294901760, %v3672_v19  ;;  %v3701_v19 = vand.u32 4294901760, %v6824_v50  ;;  %v3685_v7 = vand.u32 4294901760, %v3684_v47  ;;  %v3696_v25 = vsub.f32 %v6811_v16, %v3695_v0 }
 0x45f   : > { %3560 = vmatpush.msra.mxu1 %v6524_v17  ;;  %3595 = vmatpush.msra.mxu2 %v6722_v8  ;;  %v6839_v17 = vsub.f32 %v1099_v56, %v6815_v33  ;;  %v7352_v56 = vand.u32 4294901760, %v6519_v5  ;;  %v7357_v47 = vand.u32 4294901760, %v6587_v51  ;;  %v7361_v51 = vand.u32 4294901760, %v6666_v6 }
 0x460   : > { %3493 = vmatpush.msra.mxu0 %v7350_v43  ;;  %3662 = vmatpush.msra.mxu3 %v3661_v37  ;;  %v3690_v37 = vsub.f32 %v6798_v42, %v3689_v30  ;;  %v3702_v5 = vsub.f32 %v6824_v50, %v3701_v19  ;;  %v3697_v43 = vand.u32 4294901760, %v3696_v25 }
 0x461   : > { %3562 = vmatpush.msra.mxu1 %v6539_v48  ;;  %3597 = vmatpush.msra.mxu2 %v6735_v55  ;;  %v6850_v48 = vsub.f32 %v1097_v32, %v6828_v1 }
 0x462   : > { %3497 = vmatpush.msra.mxu0 %v7351_v49  ;;  %3668 = vmatpush.msra.mxu3 %v3667_v60  ;;  %v7353_v60 = vand.u32 4294901760, %v6532_v2  ;;  %v3691_v32 = vand.u32 4294901760, %v3690_v37  ;;  %v7359_v49 = vld [vmem:[#allocation29_spill] sm:$0xff]  ;;  %v7362_v37 = vand.u32 4294901760, %v6611_v62 }
 0x463   : > { %3564 = vmatpush.msra.mxu1 %v6551_v13  ;;  %3599 = vmatpush.msra.mxu2 %v6748_v31  ;;  %v3707_v13 = vand.u32 4294901760, %v6839_v17  ;;  %v3713_v38 = vand.u32 4294901760, %v6850_v48 }
 0x464   : > { %3501 = vmatpush.msra.mxu0 %v7352_v56  ;;  %3674 = vmatpush.msra.mxu3 %v3673_v61  ;;  %v7355_v61 = vand.u32 4294901760, %v6561_v39 }
 0x465   : > { %3566 = vmatpush.msra.mxu1 %v6563_v44  ;;  %3601 = vmatpush.msra.mxu2 %v6762_v3  ;;  %v7354_v44 = vand.u32 4294901760, %v6549_v24  ;;  %v3708_v2 = vsub.f32 %v6839_v17, %v3707_v13  ;;  %v3714_v24 = vsub.f32 %v6850_v48, %v3713_v38 }
 0x466   : > { %3505 = vmatpush.msra.mxu0 %v7353_v60  ;;  %3680 = vmatpush.msra.mxu3 %v3679_v41  ;;  %v7360_v41 = vld [vmem:[#allocation28_spill] sm:$0xff]  ;;  %v7367_v60 = vld [vmem:[#allocation23_spill] sm:$0xff] }
 0x467   : > { %3568 = vmatpush.msra.mxu1 %v6577_v11  ;;  %3603 = vmatpush.msra.mxu2 %v6774_v4  ;;  %v3703_v11 = vand.u32 4294901760, %v3702_v5  ;;  %v3709_v39 = vand.u32 4294901760, %v3708_v2  ;;  %v7368_v62 = vand.u32 4294901760, %v7367_v60  ;;  %v7373_v2 = vld [vmem:[#allocation34_spill] sm:$0xff] }
 0x468   : > { %3509 = vmatpush.msra.mxu0 %v7354_v44  ;;  %3686 = vmatpush.msra.mxu3 %v3685_v7  ;;  %v7364_v7 = vand.u32 4294901760, %v6674_v21  ;;  %v7371_v44 = vld [vmem:[#allocation32_spill] sm:$0xff] }
 0x469   : > { %3570 = vmatpush.msra.mxu1 %v6589_v10  ;;  %3605 = vmatpush.msra.mxu2 %v6787_v52  ;;  %v7356_v10 = vand.u32 4294901760, %v6575_v22  ;;  %v7358_v22 = vand.u32 4294901760, %v6599_v9  ;;  %v7363_v9 = vld [vmem:[#allocation31_spill] sm:$0xff] }
 0x46a   : > { %3513 = vmatpush.msra.mxu0 %v7355_v61  ;;  %3692 = vmatpush.msra.mxu3 %v3691_v32  ;;  %v7369_v32 = vld [vmem:[#allocation24_spill] sm:$0xff] }
 0x46b   : > { %3572 = vmatpush.msra.mxu1 %v6601_v12  ;;  %3607 = vmatpush.msra.mxu2 %v6800_v63  ;;  %v3715_v12 = vand.u32 4294901760, %v3714_v24  ;;  %v7370_v5 = vand.u32 4294901760, %v7369_v32  ;;  %v7378_v24 = vand.u32 4294901760, %v6733_v59 }
 0x46c   : > { %3517 = vmatpush.msra.mxu0 %v7356_v10  ;;  %3698 = vmatpush.msra.mxu3 %v3697_v43  ;;  %v7381_v10 = vand.u32 4294901760, %v6760_v58 }
 0x46d   : > { %3574 = vmatpush.msra.mxu1 %v6613_v36  ;;  %3609 = vmatpush.msra.mxu2 %v6815_v33  ;;  %v1333_v36 = vadd.f32 %v7360_v41, %v7359_v49  ;;  %v3922_v49 = vstv %s6997_s17 }
 0x46e   : > { %3521 = vmatpush.msra.mxu0 %v7357_v47  ;;  %3704 = vmatpush.msra.mxu3 %v3703_v11 }
 0x46f   : > { %3576 = vmatmul.f32.vlgmr.msra.gmra.mxu1 %v6127_v26  ;;  %3611 = vmatpush.msra.mxu2 %v6828_v1  ;;  %v1387_v56 = vadd.f32 %v7363_v9, %v1333_v36 }
 0x470   : > { %3777 = vmatpush.msrb.mxu1 %v6649_v29  ;;  %3525 = vmatpush.msra.mxu0 %v7358_v22 }
 0x471   : > { %3710 = vmatpush.msra.mxu3 %v3709_v39  ;;  %3617 = vmatmul.f32.vlgmr.msra.gmra.mxu2 %v6388_v34  ;;  %v7365_v34 = vld [vmem:[#allocation22_spill] sm:$0xff]  ;;  %v1426_v43 = vadd.f32 %v7371_v44, %v1387_v56 }
 0x472   : > { %3779 = vmatpush.msrb.mxu1 %v6657_v28  ;;  %3818 = vmatpush.msrb.mxu2 %v7361_v51  ;;  %v7366_v25 = vand.u32 4294901760, %v7365_v34 }
 0x473   : > { %3529 = vmatpush.msra.mxu0 %v7362_v37  ;;  %3716 = vmatpush.msra.mxu3 %v3715_v12  ;;  %v1495_v61 = vadd.f32 %v7373_v2, %v1426_v43  ;;  %v7389_v2 = vld [vmem:[#allocation13_spill] sm:$0xff] }
 0x474   : > { %3718 = vmatmul.f32.vlgmr.msra.gmra.mxu3 %v6306_v18  ;;  %3781 = vmatpush.msrb.mxu1 %v6670_v40 }
 0x475   : > { %3822 = vmatpush.msrb.mxu2 %v7364_v7  ;;  %3885 = vmatpush.msrb.mxu3 %v6649_v29  ;;  %v7372_v29 = vand.u32 4294901760, %v6696_v20 }
 0x476   : > { %3533 = vmatpush.msra.mxu0 %v7366_v25  ;;  %3783 = vmatpush.msrb.mxu1 %v6678_v46 }
 0x477   : > { %3826 = vmatpush.msrb.mxu2 %v7368_v62  ;;  %3887 = vmatpush.msrb.mxu3 %v6657_v28  ;;  %v7374_v28 = vand.u32 4294901760, %v6703_v35 }
 0x478   : > { %3537 = vmatpush.msra.mxu0 %v7370_v5  ;;  %3785 = vmatpush.msrb.mxu1 %v6682_v57 }
 0x479   : > { %3539 = vmatmul.f32.vlgmr.msra.gmra.mxu0 %v6127_v26  ;;  %3830 = vmatpush.msrb.mxu2 %v7372_v29  ;;  %v7375_v26 = vld [vmem:[#allocation21_spill] sm:$0xff] }
 0x47a   : > { %3724 = vmatpush.msrb.mxu0 %v6666_v6  ;;  %3889 = vmatpush.msrb.mxu3 %v6670_v40  ;;  %v7376_v11 = vand.u32 4294901760, %v7375_v26  ;;  %v7377_v40 = vld [vmem:[#allocation33_spill] sm:$0xff] }
 0x47b   : > { %3787 = vmatpush.msrb.mxu1 %v6691_v45  ;;  %3834 = vmatpush.msrb.mxu2 %v7374_v28  ;;  %v1532_v6 = vadd.f32 %v7377_v40, %v1495_v61  ;;  %v7390_v28 = vld [vmem:[#allocation16_spill] sm:$0xff] }
 0x47c   : > { %3727 = vmatpush.msrb.mxu0 %v6674_v21  ;;  %3891 = vmatpush.msrb.mxu3 %v6678_v46  ;;  %v7379_v21 = vand.u32 4294901760, %v6746_v54  ;;  %v7380_v46 = vld [vmem:[#allocation35_spill] sm:$0xff] }
 0x47d   : > { %3789 = vmatpush.msrb.mxu1 %v6708_v14  ;;  %3838 = vmatpush.msrb.mxu2 %v7376_v11  ;;  %v7391_v11 = vld [vmem:[#allocation12_spill] sm:$0xff] }
 0x47e   : > { %3730 = vmatpush.msrb.mxu0 %v7367_v60  ;;  %3893 = vmatpush.msrb.mxu3 %v6682_v57  ;;  %v1573_v57 = vadd.f32 %v7380_v46, %v1532_v6  ;;  %v7392_v6 = vld [vmem:[#allocation18_spill] sm:$0xff]  ;;  %v7393_v46 = vld [vmem:[#allocation20_spill] sm:$0xff] }
 0x47f   : > { %3791 = vmatpush.msrb.mxu1 %v6722_v8  ;;  %3842 = vmatpush.msrb.mxu2 %v7378_v24 }
 0x480   : > { %3733 = vmatpush.msrb.mxu0 %v6696_v20  ;;  %3895 = vmatpush.msrb.mxu3 %v6691_v45  ;;  %v7382_v45 = vld [vmem:[#allocation36_spill] sm:$0xff] }
 0x481   : > { %3793 = vmatpush.msrb.mxu1 %v6735_v55  ;;  %3846 = vmatpush.msrb.mxu2 %v7379_v21  ;;  %v1674_v20 = vadd.f32 %v7382_v45, %v1573_v57 }
 0x482   : > { %3736 = vmatpush.msrb.mxu0 %v6703_v35  ;;  %3897 = vmatpush.msrb.mxu3 %v6708_v14  ;;  %v7386_v14 = vld [vmem:[#allocation40_spill] sm:$0xff] }
 0x483   : > { %3795 = vmatpush.msrb.mxu1 %v6748_v31  ;;  %3850 = vmatpush.msrb.mxu2 %v7381_v10 }
 0x484   : > { %3739 = vmatpush.msrb.mxu0 %v7375_v26  ;;  %3899 = vmatpush.msrb.mxu3 %v6722_v8  ;;  %v7383_v8 = vld [vmem:[#allocation39_spill] sm:$0xff] }
 0x485   : > { %3797 = vmatpush.msrb.mxu1 %v6762_v3  ;;  %3854 = vmatpush.msrb.mxu2 %v3677_v15  ;;  %v1728_v35 = vadd.f32 %v7383_v8, %v1674_v20 }
 0x486   : > { %3742 = vmatpush.msrb.mxu0 %v6733_v59  ;;  %3901 = vmatpush.msrb.mxu3 %v6735_v55  ;;  %v7384_v59 = vld [vmem:[#allocation38_spill] sm:$0xff]  ;;  %v7385_v55 = vld [vmem:[#allocation41_spill] sm:$0xff] }
 0x487   : > { %3799 = vmatpush.msrb.mxu1 %v6774_v4  ;;  %3858 = vmatpush.msrb.mxu2 %v3683_v27  ;;  %v2789_v27 = vpop.f32.mrf.mxu3 }
 0x488   : > { %3745 = vmatpush.msrb.mxu0 %v6746_v54  ;;  %3903 = vmatpush.msrb.mxu3 %v6748_v31  ;;  %v1767_v31 = vadd.f32 %v7384_v59, %v1728_v35 }
 0x489   : > { %3801 = vmatpush.msrb.mxu1 %v6787_v52  ;;  %3862 = vmatpush.msrb.mxu2 %v3689_v30 }
 0x48a   : > { %3748 = vmatpush.msrb.mxu0 %v6760_v58  ;;  %3905 = vmatpush.msrb.mxu3 %v6762_v3  ;;  %v1836_v54 = vadd.f32 %v7385_v55, %v1767_v31  ;;  %v7387_v3 = vld [vmem:[#allocation42_spill] sm:$0xff] }
 0x48b   : > { %3803 = vmatpush.msrb.mxu1 %v6800_v63  ;;  %3866 = vmatpush.msrb.mxu2 %v3695_v0 }
 0x48c   : > { %3751 = vmatpush.msrb.mxu0 %v6772_v23  ;;  %3907 = vmatpush.msrb.mxu3 %v6774_v4  ;;  %v1873_v58 = vadd.f32 %v7387_v3, %v1836_v54  ;;  %v7388_v4 = vld [vmem:[#allocation37_spill] sm:$0xff] }
 0x48d   : > { %3805 = vmatpush.msrb.mxu1 %v6815_v33  ;;  %3870 = vmatpush.msrb.mxu2 %v3701_v19 }
 0x48e   : > { %3754 = vmatpush.msrb.mxu0 %v6785_v53  ;;  %3909 = vmatpush.msrb.mxu3 %v6787_v52  ;;  %v2595_v52 = vpop.f32.mrf.mxu0  ;;  %v2696_v53 = vpop.f32.mrf.mxu1 }
 0x48f   : > { %3807 = vmatpush.msrb.mxu1 %v6828_v1  ;;  %3874 = vmatpush.msrb.mxu2 %v3707_v13  ;;  %v2596_v23 = vadd.f32 %v2595_v52, %v1873_v58 }
 0x490   : > { %3757 = vmatpush.msrb.mxu0 %v6798_v42  ;;  %3911 = vmatpush.msrb.mxu3 %v6800_v63  ;;  %v2750_v42 = vpop.f32.mrf.mxu2 }
 0x491   : > { %3811 = vmatmul.f32.vlgmr.msrb.gmra.mxu1 %v7386_v14  ;;  %3878 = vmatpush.msrb.mxu2 %v3713_v38  ;;  %v2697_v15 = vadd.f32 %v2696_v53, %v2596_v23 }
 0x492   : > { %3760 = vmatpush.msrb.mxu0 %v6811_v16  ;;  %3913 = vmatpush.msrb.mxu3 %v6815_v33 }
 0x493   : > { %3880 = vmatmul.f32.vlgmr.msrb.gmra.mxu2 %v6306_v18  ;;  %v2751_v63 = vadd.f32 %v2750_v42, %v2697_v15 }
 0x494   : > { %3763 = vmatpush.msrb.mxu0 %v6824_v50  ;;  %3915 = vmatpush.msrb.mxu3 %v6828_v1 }
 0x495   : > { %3917 = vmatmul.f32.vlgmr.msrb.gmra.mxu3 %v6306_v18  ;;  %v2790_v33 = vadd.f32 %v2789_v27, %v2751_v63  ;;  %v3037_v18 = vpop.f32.mrf.mxu3 }
 0x496   : > { %3766 = vmatpush.msrb.mxu0 %v6839_v17  ;;  %v2858_v16 = vpop.f32.mrf.mxu0  ;;  %v2895_v50 = vpop.f32.mrf.mxu1 }
 0x497   : > { %v2859_v30 = vadd.f32 %v2858_v16, %v2790_v33 }
 0x498   : > { %3769 = vmatpush.msrb.mxu0 %v6850_v48  ;;  %v2936_v0 = vpop.f32.mrf.mxu2 }
 0x499   : > { %3772 = vmatmul.f32.vlgmr.msrb.gmra.mxu0 %v7388_v4  ;;  %v2896_v1 = vadd.f32 %v2895_v50, %v2859_v30 }
 0x49b   : > { %v2937_v19 = vadd.f32 %v2936_v0, %v2896_v1 }
 0x49d   : > { %v3038_v17 = vadd.f32 %v3037_v18, %v2937_v19 }
 0x4a8   : > { %v3130_v38 = vpop.f32.mrf.mxu1 }
 0x4b0   : > { %v3199_v47 = vpop.f32.mrf.mxu2 }
 0x4b2   : > { %v3091_v48 = vpop.f32.mrf.mxu0 }
 0x4b3   : > { %v3092_v13 = vadd.f32 %v3091_v48, %v3038_v17  ;;  %v3236_v22 = vpop.f32.mrf.mxu3 }
 0x4b5   : > { %v3131_v39 = vadd.f32 %v3130_v38, %v3092_v13 }
 0x4b7   : > { %v3200_v12 = vadd.f32 %v3199_v47, %v3131_v39 }
 0x4b9   : > { %v3237_v41 = vadd.f32 %v3236_v22, %v3200_v12 }
 0x4bb   : > { %v3923_v36 = vadd.f32 %v3922_v49, %v3237_v41  ;;  %v7394_v41 = vld [vmem:[#allocation14_spill] sm:$0xff] }
 0x4bd   : > { %v4095_v51 = vmul.f32 -1.442695, %v3923_v36 }
 0x4bf   : > { %4203 = vpow2.f32 %v4095_v51  ;;  %v7395_v51 = vld [vmem:[#allocation17_spill] sm:$0xff] }
 0x4c5   : > { %v4204_v37 = vpop.eup %4203 }
 0x4c6   : > { %v3931_v9 = vadd.f32 1.0, %v4204_v37 }
 0x4c8   : > { %4205 = vrcp.f32 %v3931_v9  ;;  %v3944_v25 = vand.u32 2147483648, %v3931_v9  ;;  %v3942_v62 = vand.u32 2147483647, %v3931_v9  ;;  %vm3938_vm15 = vweird.f32 %v3931_v9 }
 0x4ca   : > { %v3945_v5 = vor.u32 1.1754944e-38, %v3944_v25  ;;  %vm3943_vm1 = vcmp.eq.f32.partialorder %v3942_v62, 8.507059e+37  ;;  %v3378_v10 = vpop.f32.mrf.mxu1 }
 0x4ce   : > { %v4206_v56 = vpop.eup %4205 }
 0x4cf   : > { %v3934_v7 = vmul.f32 %v4206_v56, %v3931_v9  ;;  %vm3939_vm14 = vweird.f32 %v4206_v56  ;;  %v7396_v9 = vld [vmem:[#allocation15_spill] sm:$0xff] }
 0x4d0   : > { %vm3940_vm0 = vmor %vm3938_vm15, %vm3939_vm14 }
 0x4d1   : > { %v3935_v34 = vsub.f32 1.0, %v3934_v7  ;;  %v7397_v7 = vld [vmem:[#allocation19_spill] sm:$0xff] }
 0x4d2   : > { %v3432_v20 = vpop.f32.mrf.mxu2 }
 0x4d3   : > { %v3936_v60 = vmul.f32 %v4206_v56, %v3935_v34 }
 0x4d4   : > { %v3277_v21 = vpop.f32.mrf.mxu0 }
 0x4d5   : > { %v3937_v32 = vadd.f32 %v4206_v56, %v3936_v60  ;;  %v3278_v57 = vadd.f32 %v3277_v21, %v7393_v46  ;;  %v3471_v35 = vpop.f32.mrf.mxu3 }
 0x4d7   : > { %v3941_v44 = vsel %vm3940_vm0, %v4206_v56, %v3937_v32  ;;  %v3379_v45 = vadd.f32 %v3378_v10, %v3278_v57 }
 0x4d8   : > { %v3946_v43 = vsel %vm3943_vm1, %v3945_v5, %v3941_v44 }
 0x4d9   : > { %v3963_v29 = vperm.slane %v3946_v43, 0  ;;  %v3433_v8 = vadd.f32 %v3432_v20, %v3379_v45 }
 0x4db   : > { %v3965_v61 = vmul.f32 %v3963_v29, %v7389_v2  ;;  %v3967_v26 = vmul.f32 %v3963_v29, %v7390_v28  ;;  %v3969_v40 = vmul.f32 %v3963_v29, %v7391_v11  ;;  %v3971_v24 = vmul.f32 %v3963_v29, %v7392_v6 }
 0x4dc   : > { %v3472_v31 = vadd.f32 %v3471_v35, %v3433_v8 }
 0x4dd   : > { %3973 = vst [vmem:[%s7006_s19] sm:$0xff] %v3965_v61 }
 0x4de   : > { %3975 = vst [vmem:[%s7006_s19 + $0x10] sm:$0xff] %v3967_v26 }
 0x4df   : > { %3977 = vst [vmem:[%s7006_s19 + $0x20] sm:$0xff] %v3969_v40 }
 0x4e0   : > { %3979 = vst [vmem:[%s7006_s19 + $0x30] sm:$0xff] %v3971_v24 }
 0x4ec   : > { %v3577_v54 = vpop.f32.mrf.mxu1 }
 0x4f4   : > { %v3618_v52 = vpop.f32.mrf.mxu2 }
 0x4f6   : > { %v3540_v59 = vpop.f32.mrf.mxu0 }
 0x4f7   : > { %v3541_v55 = vadd.f32 %v3540_v59, %v3472_v31  ;;  %v3719_v58 = vpop.f32.mrf.mxu3 }
 0x4f9   : > { %v3578_v14 = vadd.f32 %v3577_v54, %v3541_v55 }
 0x4fb   : > { %v3619_v3 = vadd.f32 %v3618_v52, %v3578_v14 }
 0x4fd   : > { %v3720_v23 = vadd.f32 %v3719_v58, %v3619_v3 }
 0x50e   : > { %v3812_v15 = vpop.f32.mrf.mxu1 }
 0x516   : > { %v3773_v4 = vpop.f32.mrf.mxu0  ;;  %v3881_v63 = vpop.f32.mrf.mxu2 }
 0x517   : > { %v3774_v53 = vadd.f32 %v3773_v4, %v3720_v23 }
 0x518   : > { %v3918_v16 = vpop.f32.mrf.mxu3 }
 0x519   : > { %v3813_v42 = vadd.f32 %v3812_v15, %v3774_v53 }
 0x51b   : > { %v3882_v27 = vadd.f32 %v3881_v63, %v3813_v42 }
 0x51d   : > { %v3919_v33 = vadd.f32 %v3918_v16, %v3882_v27 }
 0x51f   : > { %v3924_v30 = vadd.f32 %v3922_v49, %v3919_v33 }
 0x521   : > { %v4096_v50 = vmul.f32 -1.442695, %v3924_v30 }
 0x523   : > { %4207 = vpow2.f32 %v4096_v50 }
 0x529   : > { %v4208_v1 = vpop.eup %4207 }
 0x52a   : > { %v3932_v0 = vadd.f32 1.0, %v4208_v1 }
 0x52c   : > { %4209 = vrcp.f32 %v3932_v0  ;;  %v3959_v48 = vand.u32 2147483648, %v3932_v0  ;;  %v3957_v38 = vand.u32 2147483647, %v3932_v0  ;;  %vm3953_vm3 = vweird.f32 %v3932_v0 }
 0x52e   : > { %v3960_v47 = vor.u32 1.1754944e-38, %v3959_v48  ;;  %vm3958_vm5 = vcmp.eq.f32.partialorder %v3957_v38, 8.507059e+37 }
 0x532   : > { %v4210_v19 = vpop.eup %4209 }
 0x533   : > { %v3949_v18 = vmul.f32 %v4210_v19, %v3932_v0  ;;  %vm3954_vm2 = vweird.f32 %v4210_v19 }
 0x534   : > { %vm3955_vm4 = vmor %vm3953_vm3, %vm3954_vm2 }
 0x535   : > { %v3950_v17 = vsub.f32 1.0, %v3949_v18 }
 0x537   : > { %v3951_v13 = vmul.f32 %v4210_v19, %v3950_v17 }
 0x539   : > { %v3952_v39 = vadd.f32 %v4210_v19, %v3951_v13 }
 0x53b   : > { %v3956_v12 = vsel %vm3955_vm4, %v4210_v19, %v3952_v39 }
 0x53c   : > { %v3961_v22 = vsel %vm3958_vm5, %v3960_v47, %v3956_v12 }
 0x53d   : > { %v3964_v49 = vperm.slane %v3961_v22, 0 }
 0x53f   : > { %v3966_v36 = vmul.f32 %v3964_v49, %v7394_v41  ;;  %v3968_v37 = vmul.f32 %v3964_v49, %v7395_v51  ;;  %v3970_v56 = vmul.f32 %v3964_v49, %v7396_v9  ;;  %v3972_v34 = vmul.f32 %v3964_v49, %v7397_v7 }
 0x541   : > { %3974 = vst [vmem:[%s7006_s19 + $0x8] sm:$0xff] %v3966_v36 }
 0x542   : > { %3976 = vst [vmem:[%s7006_s19 + $0x18] sm:$0xff] %v3968_v37 }
 0x543   : > { %3978 = vst [vmem:[%s7006_s19 + $0x28] sm:$0xff] %v3970_v56 }
 0x544   : > { %3980 = vst [vmem:[%s7006_s19 + $0x38] sm:$0xff] %v3972_v34 }
 0x545   : > { %4306 = shalt.err (!%p4303_p10)
}
 0x546   : > { %s4357_s15 = smov 256   ;;  %s4358_s18 = smov 16  }
 0x547   : > { %4110 = dma.vmem_to_hbm [thread:$0]  (%p4461_p3), %s3995_s25, 1024, %s3997_s30, %s3982_s4, %s4357_s15, %s4357_s15, %s4358_s18  }
 0x548 PF: > { %s4011_s17 = sand.u32 1, %s4337_s20   ;;  %p7398_p12 = scmp.ge.s32.totalorder %s4349_s23, 2 }
 0x549   : > { %s4012_s19 = scalar_lea.sflag [#allocation5], %s4011_s17 }
 0x54a   : > { %p4121_p13 = pnand %p7398_p12, %p4427_p6 }
 0x54c   : > { %p4122_p0 = pneg %p4121_p13 }
 0x54e   : > { %4332 = dma.done.wait (%p4122_p0), %s4012_s19, 1024  }
 0x54f   : > { %4334 = vsyncadd (%p4122_p0), %s4012_s19, 4294966272  ;;  %p20_p5 = scmp.ge.s32.totalorder %s4445_s8, 4   ;;  %s7399_s20 = smov %s4341_s21 }
 0x550   : > { %s7400_s21 = smov %s4345_s22  ;;  %s7401_s22 = smov %s4457_s13 }
 0x551   : > { %s7402_s23 = smov %s4445_s8  ;;  %22 = sbr.rel (!%p20_p5) target bundleno = 8 (0x8), region = 90 }
 0x556   :  { %4018 = vsyncpa [#allocation4], 1 }
 0x557   :  { %4020 = vsyncpa [#allocation4 + $0x1], 1 }
 0x558   :  { %4021 = vsyncpa [#allocation7], 1 }
 0x559   :  { %4022 = vsyncpa [#allocation5], 1 }
 0x55a   :  { %4024 = vsyncpa [#allocation5 + $0x1], 1 }

</bundles_post_ra>
